<compile_context>
chip_gen: v5e
topology: v5e:2x2
jax: 0.10.0
libtpu: 0.0.40
codegen_flags: <defaults>
</compile_context>

<pallas_src>
import math

import jax
import jax.numpy as jnp
from jax import lax
from jax.experimental import pallas as pl

# ---------------- small-shape configuration ---------------------------------
BATCH = 2
IMG = 16                       # image H = W
IN_CH = 3
PATCH = 4                      # scaled-down patch size (orig 16)
HP = IMG // PATCH              # 4 patches per side
NUM_PATCHES = HP * HP          # 16
PATCH_DIM = PATCH * PATCH * IN_CH   # 48
EMBED_DIM = 32                 # ViT embed dim (== in_channels of CrossAttn)
FFN_DIM = 64
DILATION = 2                   # DilateAttention dilation
N_DIL = len(range(0, BATCH, DILATION))   # number of dilated "sequence" entries
CNN_MID = 16                   # stand-in channel count for the CNN stem
CROSS_OUT = 64                 # CrossAttn out_channels (nchannels[3] analogue)
CROSS_HEADS = 4                # scaled-down nhead (orig 32)
CROSS_HEAD_DIM = CROSS_OUT // CROSS_HEADS
CROSS_SCALE = 1.0 / math.sqrt(EMBED_DIM)  # reference divides by embed_dim ** 0.5
NUM_CLASSES = 10
LN_EPS = 1e-5
BN_EPS = 1e-5
BLEND_W = 0.5                  # CrossAttn.weights parameter (init 0.5)
VIT_GROUPS = EMBED_DIM // NUM_PATCHES     # feature-map shuffle groups (=2)
ST = CROSS_HEADS * NUM_PATCHES            # heads-stacked row count (=64)
NEG_INF = -1e30

assert EMBED_DIM % NUM_PATCHES == 0
assert CROSS_OUT % CROSS_HEADS == 0


# ---------------- weight-slab layouts (static; shared by init + kernel) -----
def _make_layout(entries):
    layout, off = {}, 0
    for name, rows in entries:
        layout[name] = (off, rows)
        off += rows
    return layout, off


# lane-width 32 slab (big matmul operands are 8-sublane aligned)
W32_LAYOUT, W32_ROWS = _make_layout([
    ("patch_w", PATCH_DIM), ("wv", EMBED_DIM), ("wo", EMBED_DIM),
    ("w2", FFN_DIM), ("pos", NUM_PATCHES), ("sel", VIT_GROUPS * NUM_PATCHES),
    ("cnn_w", IN_CH), ("avg", BATCH),
    ("patch_b", 1), ("bv", 1), ("bo", 1), ("n1g", 1), ("n1b", 1),
    ("b2", 1), ("n2g", 1), ("n2b", 1), ("cnn_b", 1),
])
# lane-width 64 slab (FFN_DIM == CROSS_OUT == CROSS_HEADS*NUM_PATCHES in this config)
W64_LAYOUT, W64_ROWS = _make_layout([
    ("w1", EMBED_DIM), ("mask", ST), ("place", CROSS_OUT),
    ("b1", 1), ("ln_g", 1), ("ln_b", 1),
])
# lane-width 3*CROSS_OUT slab (merged q|k|v projection)
W192_LAYOUT, W192_ROWS = _make_layout([("qkv_w", EMBED_DIM), ("qkv_b", 1)])
# lane-width NUM_CLASSES slab (folded fc->pool->fc->BN head)
HEAD_LAYOUT, HEAD_ROWS = _make_layout([("w_comb", CROSS_OUT), ("b_comb", 1)])


# ============================ in-kernel helpers ==============================

def _layernorm(x, g, b):
    mu = jnp.mean(x, axis=-1, keepdims=True)
    var = jnp.mean(jnp.square(x - mu), axis=-1, keepdims=True)
    return (x - mu) * lax.rsqrt(var + LN_EPS) * g + b


def _gelu_exact(x):
    # Exact (erf-based) GELU; erf via Abramowitz & Stegun 7.1.26 (|err| < 1.5e-7,
    # float32 noise), only exp / mul / add / select are emitted.
    z = x * 0.7071067811865476
    az = jnp.abs(z)
    t = 1.0 / (1.0 + 0.3275911 * az)
    poly = t * (0.254829592 + t * (-0.284496736 + t * (1.421413741
             + t * (-1.453152027 + t * 1.061405429))))
    erf_abs = 1.0 - poly * jnp.exp(-az * az)
    erf = jnp.where(z >= 0.0, erf_abs, -erf_abs)
    return 0.5 * x * (1.0 + erf)


# ============================ the single fused kernel ========================

def _model_kernel(patches_ref, xcnn_ref, w32_ref, w64_ref, w192_ref, head_ref,
                  o_ref):
    f32 = jnp.float32
    S, E, C = NUM_PATCHES, EMBED_DIM, CROSS_OUT
    HD, H = CROSS_HEAD_DIM, CROSS_HEADS

    def _rd(ref, layout, name):
        off, n = layout[name]
        return ref[pl.ds(off, n), :]

    r32 = lambda name: _rd(w32_ref, W32_LAYOUT, name)
    r64 = lambda name: _rd(w64_ref, W64_LAYOUT, name)
    r192 = lambda name: _rd(w192_ref, W192_LAYOUT, name)
    rhd = lambda name: _rd(head_ref, HEAD_LAYOUT, name)

    # ---------------- ViT block (output shared across the image batch) -------
    ptok = (jnp.dot(patches_ref[...], r32("patch_w"),
                    preferred_element_type=f32) + r32("patch_b"))        # (B*S, E)

    # DilateAttention, exactly factorized: the reference einsum 'bhqk,bhvd->bhqd'
    # has independent k / v indices and softmax rows sum to 1, so the context is
    # the plain sum of value_proj(tokens) over the dilated image batches; q/k
    # projections + softmax are dead and the result is batch-independent.  The
    # cls token never influences the retained rows and is not materialized.
    dil = ptok[0:S, :]
    for j in range(DILATION, BATCH, DILATION):
        dil = dil + ptok[j * S:(j + 1) * S, :]
    dil = dil + float(N_DIL) * r32("pos")        # pos_embed[1:] added once/batch
    ctx = jnp.dot(dil, r32("wv"), preferred_element_type=f32) + r32("bv")
    attn = jnp.dot(ctx, r32("wo"), preferred_element_type=f32) + r32("bo")

    t = _layernorm(attn, r32("n1g"), r32("n1b"))
    hmid = _gelu_exact(jnp.dot(t, r64("w1"), preferred_element_type=f32)
                       + r64("b1"))
    t = t + jnp.dot(hmid, r32("w2"), preferred_element_type=f32) + r32("b2")
    vit_tok = _layernorm(t, r32("n2g"), r32("n2b"))                      # (S, E)

    # -------- tokens -> feature_map -> CrossAttn-token shuffle + merged qkv ---
    # x_vit_tok = reshape(vit_tok.T, (S, E)).  Folded into matmuls against
    # constant selection matrices, so no runtime transpose / reshape on TPU:
    #   qkv_vit = sum_r (sel_r contracted with vit_tok) @ qkv_w[r*S:(r+1)*S] + b
    sel_off = W32_LAYOUT["sel"][0]
    qkv_vit = r192("qkv_b")                                              # (1, 3C)
    for r in range(VIT_GROUPS):
        sel_r = w32_ref[pl.ds(sel_off + r * S, S), :]                    # (S, E)
        p_r = lax.dot_general(sel_r, vit_tok, (((1,), (1,)), ((), ())),
                              preferred_element_type=f32)                # (S, S)
        qkv_vit = qkv_vit + jnp.dot(p_r, w192_ref[pl.ds(r * S, S), :],
                                    preferred_element_type=f32)          # (S, 3C)

    # ------- CNN stand-in + its qkv projection, all batches in one matmul -----
    xc = (jnp.dot(xcnn_ref[...], r32("cnn_w"),
                  preferred_element_type=f32) + r32("cnn_b"))            # (B*S, E)
    qkv_cnn = (jnp.dot(xc, r192("qkv_w"),
                       preferred_element_type=f32) + r192("qkv_b"))      # (B*S, 3C)

    # heads stacked along sublanes: (S, C) -> (H*S, HD)
    def stack_heads(m):
        return jnp.concatenate([m[:, h * HD:(h + 1) * HD] for h in range(H)],
                               axis=0)

    place_off = W64_LAYOUT["place"][0]

    def unstack_heads(m):
        # (H*S, HD) -> (S, C): head blocks moved back to lane blocks with tiny
        # identity-slice matmuls (MXU is idle); avoids both lane-concat
        # relayouts and the previous ctx VMEM scratch round trip.
        out = None
        for h in range(H):
            part = jnp.dot(m[h * S:(h + 1) * S, :],
                           w64_ref[pl.ds(place_off + h * HD, HD), :],
                           preferred_element_type=f32)
            out = part if out is None else out + part
        return out

    # batch-invariant ViT-side q/k/v stacks hoisted out of the batch loop
    q_vit_st = stack_heads(qkv_vit[:, 0:C])
    k_vit_st = stack_heads(qkv_vit[:, C:2 * C])
    v_vit_st = stack_heads(qkv_vit[:, 2 * C:3 * C])
    mask_bias = r64("mask")       # (H*S, H*S): 0 on diagonal head blocks, -1e30 off

    def heads_attn(q_st, k_st, v_st):
        # all heads in a single scores matmul + single AV matmul; the per-head
        # softmax is realized by the block mask-bias (scale is folded into q).
        s = lax.dot_general(q_st, k_st, (((1,), (1,)), ((), ())),
                            preferred_element_type=f32) + mask_bias      # (H*S, H*S)
        m = jnp.max(s, axis=-1, keepdims=True)
        e = jnp.exp(s - m)                        # off-block entries underflow to 0
        denom = jnp.sum(e, axis=-1, keepdims=True)
        av = jnp.dot(e, v_st, preferred_element_type=f32)                # (H*S, HD)
        return av * pl.reciprocal(denom, approx=True)

    normed = []
    for bi in range(BATCH):
        qkv_c = qkv_cnn[bi * S:(bi + 1) * S, :]
        q_cnn_st = stack_heads(qkv_c[:, 0:C])
        k_cnn_st = stack_heads(qkv_c[:, C:2 * C])
        v_cnn_st = stack_heads(qkv_c[:, 2 * C:3 * C])
        att_vit = heads_attn(q_cnn_st, k_vit_st, v_vit_st)   # attended_vit_output
        att_cnn = heads_attn(q_vit_st, k_cnn_st, v_cnn_st)   # attended_cnn_output
        blended = BLEND_W * att_cnn + (1.0 - BLEND_W) * att_vit
        restored = unstack_heads(blended)                     # (S, C)
        normed.append(_layernorm(restored, r64("ln_g"), r64("ln_b")))

    # avg-pool over tokens (both batches in one matmul), then the pre-folded
    # CrossAttn.fc -> MODEL.fc -> BatchNorm head; single (BATCH, classes) store.
    normed_all = jnp.concatenate(normed, axis=0)                         # (B*S, C)
    pooled = jnp.dot(r32("avg"), normed_all, preferred_element_type=f32)  # (B, C)
    o_ref[...] = (jnp.dot(pooled, rhd("w_comb"),
                          preferred_element_type=f32) + rhd("b_comb"))


# ============================ parameter init =================================

def init_linear(key, in_f, out_f, scale=0.05):
    kw, kb = jax.random.split(key)
    w = jax.random.normal(kw, (out_f, in_f), jnp.float32) * scale
    b = jax.random.normal(kb, (out_f,), jnp.float32) * scale
    return w, b


def sinusoidal_pos_embed(n, d):
    pos = jnp.arange(n, dtype=jnp.float32)[:, None]
    div = jnp.exp(jnp.arange(0, d, 2, dtype=jnp.float32) * (-(math.log(10000.0) / d)))
    pe = jnp.zeros((n, d), jnp.float32)
    pe = pe.at[:, 0::2].set(jnp.sin(pos * div))
    pe = pe.at[:, 1::2].set(jnp.cos(pos * div))
    return pe


def _pack_slab(layout, parts):
    rows, width = [], None
    for name, (_, n) in layout.items():
        a = jnp.asarray(parts[name], jnp.float32)
        assert a.shape[0] == n, (name, a.shape, n)
        width = a.shape[1] if width is None else width
        assert a.shape[1] == width, (name, a.shape, width)
        rows.append(a)
    return jnp.concatenate(rows, axis=0)


def init_params(key):
    keys = jax.random.split(key, 11)
    E, C, S, NC = EMBED_DIM, CROSS_OUT, NUM_PATCHES, NUM_CLASSES

    # ---- ViTBlock ----
    patch_w, patch_b = init_linear(keys[0], PATCH_DIM, E)
    pos = sinusoidal_pos_embed(S + 1, E)
    sa = jax.random.split(keys[1], 4)
    _wq, _bq = init_linear(sa[0], E, E)    # provably dead ('bhqk,bhvd' einsum)
    _wk, _bk = init_linear(sa[1], E, E)    # provably dead
    wv, bv = init_linear(sa[2], E, E)
    wo, bo = init_linear(sa[3], E, E)
    w1, b1 = init_linear(keys[2], E, FFN_DIM)
    w2, b2 = init_linear(keys[3], FFN_DIM, E)

    # ---- CrossAttn (ha_layers[0]) + classifier head + CNN stand-in ----
    cwq, cbq = init_linear(keys[4], E, C)
    cwk, cbk = init_linear(keys[5], E, C)
    cwv, cbv = init_linear(keys[6], E, C)
    cwfc, cbfc = init_linear(keys[7], C, C)
    stem_w, stem_b = init_linear(keys[8], IN_CH, CNN_MID)
    main_w, main_b = init_linear(keys[9], CNN_MID, E)
    fc_w, fc_b = init_linear(keys[10], C, NC)
    bn_g = jnp.ones((NC,), jnp.float32)
    bn_b = jnp.zeros((NC,), jnp.float32)

    # ---- algebraic pre-folds (exact; eval mode) ----
    # attention scale folded into query columns of the merged q|k|v projection
    qkv_w = jnp.concatenate([cwq.T * CROSS_SCALE, cwk.T, cwv.T], axis=1)   # (E, 3C)
    qkv_b = jnp.concatenate([cbq * CROSS_SCALE, cbk, cbv]).reshape(1, 3 * C)
    # CNN stand-in: two linear layers (no nonlinearity) folded into one
    cnn_w = stem_w.T @ main_w.T                                            # (IN_CH, E)
    cnn_b = stem_b.reshape(1, CNN_MID) @ main_w.T + main_b.reshape(1, E)
    # CrossAttn.fc -> avg-pool -> MODEL.fc -> BatchNorm1d (eval) folded to (C, NC)
    bn_scale = (bn_g / jnp.sqrt(1.0 + BN_EPS)).reshape(1, NC)
    w_comb = (cwfc.T @ fc_w.T) * bn_scale
    b_comb = ((cbfc.reshape(1, C) @ fc_w.T + fc_b.reshape(1, NC)) * bn_scale
              + bn_b.reshape(1, NC))

    # ---- constant matrices baked into the slabs ----
    qv = jnp.arange(S)[:, None]
    fv = jnp.arange(E)[None, :]
    sel = jnp.concatenate(
        [(fv == VIT_GROUPS * qv + r).astype(jnp.float32) for r in range(VIT_GROUPS)],
        axis=0)                                                   # (VIT_GROUPS*S, E)
    blk = jnp.arange(ST) // S
    mask_bias = jnp.where(blk[:, None] == blk[None, :], 0.0, NEG_INF
                          ).astype(jnp.float32)                   # (ST, ST)
    place = jnp.eye(C, dtype=jnp.float32)                         # head lane-placement
    tok_b = jnp.arange(BATCH * S) // S
    avg = jnp.where(tok_b[None, :] == jnp.arange(BATCH)[:, None], 1.0 / S, 0.0
                    ).astype(jnp.float32)                         # (B, B*S)

    w32 = _pack_slab(W32_LAYOUT, {
        "patch_w": patch_w.T, "wv": wv.T, "wo": wo.T, "w2": w2.T, "pos": pos[1:],
        "sel": sel, "cnn_w": cnn_w, "avg": avg,
        "patch_b": patch_b.reshape(1, E), "bv": (N_DIL * bv).reshape(1, E),
        "bo": bo.reshape(1, E),
        "n1g": jnp.ones((1, E), jnp.float32), "n1b": jnp.zeros((1, E), jnp.float32),
        "b2": b2.reshape(1, E),
        "n2g": jnp.ones((1, E), jnp.float32), "n2b": jnp.zeros((1, E), jnp.float32),
        "cnn_b": cnn_b,
    })
    w64 = _pack_slab(W64_LAYOUT, {
        "w1": w1.T, "mask": mask_bias, "place": place,
        "b1": b1.reshape(1, FFN_DIM),
        "ln_g": jnp.ones((1, C), jnp.float32), "ln_b": jnp.zeros((1, C), jnp.float32),
    })
    w192 = _pack_slab(W192_LAYOUT, {"qkv_w": qkv_w, "qkv_b": qkv_b})
    head = _pack_slab(HEAD_LAYOUT, {"w_comb": w_comb, "b_comb": b_comb})
    return {"w32": w32, "w64": w64, "w192": w192, "head": head}


# ============================ model forward ==================================

def model_forward(params, x):
    assert x.shape == (BATCH, IN_CH, IMG, IMG)
    b = x.shape[0]

    # ---- patch extraction (torch unfold ordering: (py, px, c), c fastest) ----
    xp = x.reshape(b, IN_CH, HP, PATCH, HP, PATCH)
    xp = jnp.transpose(xp, (0, 2, 4, 3, 5, 1))
    patches = xp.reshape(b * NUM_PATCHES, PATCH_DIM)

    # ---- CNN backbone stand-in input ----
    # TODO(synk): the senet154 backbone (global_layers[0..3]) is not defined in
    # the provided source; replaced by a deterministic avg-pool to the ViT token
    # grid plus one (folded) learnable linear projection applied in-kernel.
    xpool = x.reshape(b, IN_CH, HP, PATCH, HP, PATCH).mean(axis=(3, 5))
    x_cnn_tok = jnp.transpose(xpool, (0, 2, 3, 1)).reshape(b * NUM_PATCHES, IN_CH)

    # ---- single fused grid-less kernel (ViT + shuffle + CrossAttn + head) ----
    return pl.pallas_call(
        _model_kernel,
        out_shape=jax.ShapeDtypeStruct((BATCH, NUM_CLASSES), jnp.float32),
    )(patches, x_cnn_tok, params["w32"], params["w64"], params["w192"],
      params["head"])


# ============================ main ===========================================

if __name__ == "__main__":
    key = jax.random.PRNGKey(0)
    pkey, xkey = jax.random.split(key)
    params = init_params(pkey)
    x = jax.random.normal(xkey, (BATCH, IN_CH, IMG, IMG), jnp.float32)

    fwd = jax.jit(model_forward)
    out = jax.block_until_ready(fwd(params, x))
    assert out.shape == (BATCH, NUM_CLASSES)
    assert bool(jnp.all(jnp.isfinite(out)))
    print("KERNEL_OK")
</pallas_src>

<mosaic_0001>
module attributes {stable_mosaic.version = 11 : i64} {
  func.func @_model_kernel(%arg0: memref<32x48xf32, #tpu.memory_space<vmem>>, %arg1: memref<32x3xf32, #tpu.memory_space<vmem>>, %arg2: memref<238x32xf32, #tpu.memory_space<vmem>>, %arg3: memref<163x64xf32, #tpu.memory_space<vmem>>, %arg4: memref<33x192xf32, #tpu.memory_space<vmem>>, %arg5: memref<65x10xf32, #tpu.memory_space<vmem>>, %arg6: memref<2x10xf32, #tpu.memory_space<vmem>>) attributes {dimension_semantics = [], scalar_prefetch = 0 : i64, scratch_operands = 0 : i64, tpu.core_type = #tpu.core_type<tc>} {
    %c0 = arith.constant 0 : index
    %c0_0 = arith.constant 0 : index
    %0 = vector.load %arg0[%c0, %c0_0] : memref<32x48xf32, #tpu.memory_space<vmem>>, vector<32x48xf32>
    %c0_1 = arith.constant 0 : index
    %c0_2 = arith.constant 0 : index
    %1 = vector.load %arg2[%c0_1, %c0_2] : memref<238x32xf32, #tpu.memory_space<vmem>>, vector<48x32xf32>
    %cst = arith.constant dense<0.000000e+00> : vector<32x32xf32>
    %2 = tpu.matmul %0, %1, %cst {dimension_numbers = #tpu.dot_dimension_numbers<[1], [0], [0], [1], [0, 0, 1, 1], [], []>} : vector<32x48xf32>, vector<48x32xf32>, vector<32x32xf32> -> vector<32x32xf32>
    %c229 = arith.constant 229 : index
    %c0_3 = arith.constant 0 : index
    %3 = vector.load %arg2[%c229, %c0_3] : memref<238x32xf32, #tpu.memory_space<vmem>>, vector<1x32xf32>
    %4 = vector.broadcast %3 : vector<1x32xf32> to vector<32x32xf32>
    %5 = arith.addf %2, %4 : vector<32x32xf32>
    %6 = vector.extract_strided_slice %5 {offsets = [0, 0], sizes = [16, 32], strides = [1, 1]} : vector<32x32xf32> to vector<16x32xf32>
    %c176 = arith.constant 176 : index
    %c0_4 = arith.constant 0 : index
    %7 = vector.load %arg2[%c176, %c0_4] : memref<238x32xf32, #tpu.memory_space<vmem>>, vector<16x32xf32>
    %cst_5 = arith.constant 1.000000e+00 : f32
    %8 = vector.broadcast %cst_5 : f32 to vector<16x32xf32>
    %9 = arith.mulf %8, %7 : vector<16x32xf32>
    %10 = arith.addf %6, %9 : vector<16x32xf32>
    %c48 = arith.constant 48 : index
    %c0_6 = arith.constant 0 : index
    %11 = vector.load %arg2[%c48, %c0_6] : memref<238x32xf32, #tpu.memory_space<vmem>>, vector<32x32xf32>
    %cst_7 = arith.constant dense<0.000000e+00> : vector<16x32xf32>
    %12 = tpu.matmul %10, %11, %cst_7 {dimension_numbers = #tpu.dot_dimension_numbers<[1], [0], [0], [1], [0, 0, 1, 1], [], []>} : vector<16x32xf32>, vector<32x32xf32>, vector<16x32xf32> -> vector<16x32xf32>
    %c230 = arith.constant 230 : index
    %c0_8 = arith.constant 0 : index
    %13 = vector.load %arg2[%c230, %c0_8] : memref<238x32xf32, #tpu.memory_space<vmem>>, vector<1x32xf32>
    %14 = vector.broadcast %13 : vector<1x32xf32> to vector<16x32xf32>
    %15 = arith.addf %12, %14 : vector<16x32xf32>
    %c80 = arith.constant 80 : index
    %c0_9 = arith.constant 0 : index
    %16 = vector.load %arg2[%c80, %c0_9] : memref<238x32xf32, #tpu.memory_space<vmem>>, vector<32x32xf32>
    %cst_10 = arith.constant dense<0.000000e+00> : vector<16x32xf32>
    %17 = tpu.matmul %15, %16, %cst_10 {dimension_numbers = #tpu.dot_dimension_numbers<[1], [0], [0], [1], [0, 0, 1, 1], [], []>} : vector<16x32xf32>, vector<32x32xf32>, vector<16x32xf32> -> vector<16x32xf32>
    %c231 = arith.constant 231 : index
    %c0_11 = arith.constant 0 : index
    %18 = vector.load %arg2[%c231, %c0_11] : memref<238x32xf32, #tpu.memory_space<vmem>>, vector<1x32xf32>
    %19 = vector.broadcast %18 : vector<1x32xf32> to vector<16x32xf32>
    %20 = arith.addf %17, %19 : vector<16x32xf32>
    %c232 = arith.constant 232 : index
    %c0_12 = arith.constant 0 : index
    %21 = vector.load %arg2[%c232, %c0_12] : memref<238x32xf32, #tpu.memory_space<vmem>>, vector<1x32xf32>
    %c233 = arith.constant 233 : index
    %c0_13 = arith.constant 0 : index
    %22 = vector.load %arg2[%c233, %c0_13] : memref<238x32xf32, #tpu.memory_space<vmem>>, vector<1x32xf32>
    %cst_14 = arith.constant dense<0.000000e+00> : vector<16xf32>
    %23 = vector.multi_reduction <add>, %20, %cst_14 [1] : vector<16x32xf32> to vector<16xf32>
    %24 = vector.shape_cast %23 : vector<16xf32> to vector<16x1xf32>
    %cst_15 = arith.constant 3.200000e+01 : f32
    %25 = vector.broadcast %cst_15 : f32 to vector<16x1xf32>
    %26 = arith.divf %24, %25 : vector<16x1xf32>
    %27 = vector.broadcast %26 : vector<16x1xf32> to vector<16x32xf32>
    %28 = arith.subf %20, %27 : vector<16x32xf32>
    %29 = arith.mulf %28, %28 : vector<16x32xf32>
    %cst_16 = arith.constant dense<0.000000e+00> : vector<16xf32>
    %30 = vector.multi_reduction <add>, %29, %cst_16 [1] : vector<16x32xf32> to vector<16xf32>
    %31 = vector.shape_cast %30 : vector<16xf32> to vector<16x1xf32>
    %cst_17 = arith.constant 3.200000e+01 : f32
    %32 = vector.broadcast %cst_17 : f32 to vector<16x1xf32>
    %33 = arith.divf %31, %32 : vector<16x1xf32>
    %34 = vector.broadcast %26 : vector<16x1xf32> to vector<16x32xf32>
    %35 = arith.subf %20, %34 : vector<16x32xf32>
    %cst_18 = arith.constant 9.99999974E-6 : f32
    %36 = vector.broadcast %cst_18 : f32 to vector<16x1xf32>
    %37 = arith.addf %33, %36 : vector<16x1xf32>
    %38 = math.rsqrt %37 : vector<16x1xf32>
    %39 = vector.broadcast %38 : vector<16x1xf32> to vector<16x32xf32>
    %40 = arith.mulf %35, %39 : vector<16x32xf32>
    %41 = vector.broadcast %21 : vector<1x32xf32> to vector<16x32xf32>
    %42 = arith.mulf %40, %41 : vector<16x32xf32>
    %43 = vector.broadcast %22 : vector<1x32xf32> to vector<16x32xf32>
    %44 = arith.addf %42, %43 : vector<16x32xf32>
    %c0_19 = arith.constant 0 : index
    %c0_20 = arith.constant 0 : index
    %45 = vector.load %arg3[%c0_19, %c0_20] : memref<163x64xf32, #tpu.memory_space<vmem>>, vector<32x64xf32>
    %cst_21 = arith.constant dense<0.000000e+00> : vector<16x64xf32>
    %46 = tpu.matmul %44, %45, %cst_21 {dimension_numbers = #tpu.dot_dimension_numbers<[1], [0], [0], [1], [0, 0, 1, 1], [], []>} : vector<16x32xf32>, vector<32x64xf32>, vector<16x64xf32> -> vector<16x64xf32>
    %c160 = arith.constant 160 : index
    %c0_22 = arith.constant 0 : index
    %47 = vector.load %arg3[%c160, %c0_22] : memref<163x64xf32, #tpu.memory_space<vmem>>, vector<1x64xf32>
    %48 = vector.broadcast %47 : vector<1x64xf32> to vector<16x64xf32>
    %49 = arith.addf %46, %48 : vector<16x64xf32>
    %cst_23 = arith.constant 0.707106769 : f32
    %50 = vector.broadcast %cst_23 : f32 to vector<16x64xf32>
    %51 = arith.mulf %49, %50 : vector<16x64xf32>
    %52 = math.absf %51 : vector<16x64xf32>
    %cst_24 = arith.constant 0.327591091 : f32
    %53 = vector.broadcast %cst_24 : f32 to vector<16x64xf32>
    %54 = arith.mulf %53, %52 : vector<16x64xf32>
    %cst_25 = arith.constant 1.000000e+00 : f32
    %55 = vector.broadcast %cst_25 : f32 to vector<16x64xf32>
    %56 = arith.addf %55, %54 : vector<16x64xf32>
    %cst_26 = arith.constant 1.000000e+00 : f32
    %57 = vector.broadcast %cst_26 : f32 to vector<16x64xf32>
    %58 = arith.divf %57, %56 : vector<16x64xf32>
    %cst_27 = arith.constant 1.06140542 : f32
    %59 = vector.broadcast %cst_27 : f32 to vector<16x64xf32>
    %60 = arith.mulf %58, %59 : vector<16x64xf32>
    %cst_28 = arith.constant -1.45315206 : f32
    %61 = vector.broadcast %cst_28 : f32 to vector<16x64xf32>
    %62 = arith.addf %61, %60 : vector<16x64xf32>
    %63 = arith.mulf %58, %62 : vector<16x64xf32>
    %cst_29 = arith.constant 1.42141378 : f32
    %64 = vector.broadcast %cst_29 : f32 to vector<16x64xf32>
    %65 = arith.addf %64, %63 : vector<16x64xf32>
    %66 = arith.mulf %58, %65 : vector<16x64xf32>
    %cst_30 = arith.constant -0.284496725 : f32
    %67 = vector.broadcast %cst_30 : f32 to vector<16x64xf32>
    %68 = arith.addf %67, %66 : vector<16x64xf32>
    %69 = arith.mulf %58, %68 : vector<16x64xf32>
    %cst_31 = arith.constant 0.254829586 : f32
    %70 = vector.broadcast %cst_31 : f32 to vector<16x64xf32>
    %71 = arith.addf %70, %69 : vector<16x64xf32>
    %72 = arith.mulf %58, %71 : vector<16x64xf32>
    %cst_32 = arith.constant 0.000000e+00 : f32
    %73 = vector.broadcast %cst_32 : f32 to vector<16x64xf32>
    %74 = arith.subf %73, %52 : vector<16x64xf32>
    %75 = arith.mulf %74, %52 : vector<16x64xf32>
    %76 = math.exp %75 : vector<16x64xf32>
    %77 = arith.mulf %72, %76 : vector<16x64xf32>
    %cst_33 = arith.constant 1.000000e+00 : f32
    %78 = vector.broadcast %cst_33 : f32 to vector<16x64xf32>
    %79 = arith.subf %78, %77 : vector<16x64xf32>
    %cst_34 = arith.constant 0.000000e+00 : f32
    %80 = vector.broadcast %cst_34 : f32 to vector<16x64xf32>
    %81 = arith.cmpf oge, %51, %80 : vector<16x64xf32>
    %cst_35 = arith.constant 0.000000e+00 : f32
    %82 = vector.broadcast %cst_35 : f32 to vector<16x64xf32>
    %83 = arith.subf %82, %79 : vector<16x64xf32>
    %84 = arith.select %81, %79, %83 : vector<16x64xi1>, vector<16x64xf32>
    %cst_36 = arith.constant 5.000000e-01 : f32
    %85 = vector.broadcast %cst_36 : f32 to vector<16x64xf32>
    %86 = arith.mulf %85, %49 : vector<16x64xf32>
    %cst_37 = arith.constant 1.000000e+00 : f32
    %87 = vector.broadcast %cst_37 : f32 to vector<16x64xf32>
    %88 = arith.addf %87, %84 : vector<16x64xf32>
    %89 = arith.mulf %86, %88 : vector<16x64xf32>
    %c112 = arith.constant 112 : index
    %c0_38 = arith.constant 0 : index
    %90 = vector.load %arg2[%c112, %c0_38] : memref<238x32xf32, #tpu.memory_space<vmem>>, vector<64x32xf32>
    %cst_39 = arith.constant dense<0.000000e+00> : vector<16x32xf32>
    %91 = tpu.matmul %89, %90, %cst_39 {dimension_numbers = #tpu.dot_dimension_numbers<[1], [0], [0], [1], [0, 0, 1, 1], [], []>} : vector<16x64xf32>, vector<64x32xf32>, vector<16x32xf32> -> vector<16x32xf32>
    %92 = arith.addf %44, %91 : vector<16x32xf32>
    %c234 = arith.constant 234 : index
    %c0_40 = arith.constant 0 : index
    %93 = vector.load %arg2[%c234, %c0_40] : memref<238x32xf32, #tpu.memory_space<vmem>>, vector<1x32xf32>
    %94 = vector.broadcast %93 : vector<1x32xf32> to vector<16x32xf32>
    %95 = arith.addf %92, %94 : vector<16x32xf32>
    %c235 = arith.constant 235 : index
    %c0_41 = arith.constant 0 : index
    %96 = vector.load %arg2[%c235, %c0_41] : memref<238x32xf32, #tpu.memory_space<vmem>>, vector<1x32xf32>
    %c236 = arith.constant 236 : index
    %c0_42 = arith.constant 0 : index
    %97 = vector.load %arg2[%c236, %c0_42] : memref<238x32xf32, #tpu.memory_space<vmem>>, vector<1x32xf32>
    %cst_43 = arith.constant dense<0.000000e+00> : vector<16xf32>
    %98 = vector.multi_reduction <add>, %95, %cst_43 [1] : vector<16x32xf32> to vector<16xf32>
    %99 = vector.shape_cast %98 : vector<16xf32> to vector<16x1xf32>
    %cst_44 = arith.constant 3.200000e+01 : f32
    %100 = vector.broadcast %cst_44 : f32 to vector<16x1xf32>
    %101 = arith.divf %99, %100 : vector<16x1xf32>
    %102 = vector.broadcast %101 : vector<16x1xf32> to vector<16x32xf32>
    %103 = arith.subf %95, %102 : vector<16x32xf32>
    %104 = arith.mulf %103, %103 : vector<16x32xf32>
    %cst_45 = arith.constant dense<0.000000e+00> : vector<16xf32>
    %105 = vector.multi_reduction <add>, %104, %cst_45 [1] : vector<16x32xf32> to vector<16xf32>
    %106 = vector.shape_cast %105 : vector<16xf32> to vector<16x1xf32>
    %cst_46 = arith.constant 3.200000e+01 : f32
    %107 = vector.broadcast %cst_46 : f32 to vector<16x1xf32>
    %108 = arith.divf %106, %107 : vector<16x1xf32>
    %109 = vector.broadcast %101 : vector<16x1xf32> to vector<16x32xf32>
    %110 = arith.subf %95, %109 : vector<16x32xf32>
    %cst_47 = arith.constant 9.99999974E-6 : f32
    %111 = vector.broadcast %cst_47 : f32 to vector<16x1xf32>
    %112 = arith.addf %108, %111 : vector<16x1xf32>
    %113 = math.rsqrt %112 : vector<16x1xf32>
    %114 = vector.broadcast %113 : vector<16x1xf32> to vector<16x32xf32>
    %115 = arith.mulf %110, %114 : vector<16x32xf32>
    %116 = vector.broadcast %96 : vector<1x32xf32> to vector<16x32xf32>
    %117 = arith.mulf %115, %116 : vector<16x32xf32>
    %118 = vector.broadcast %97 : vector<1x32xf32> to vector<16x32xf32>
    %119 = arith.addf %117, %118 : vector<16x32xf32>
    %c32 = arith.constant 32 : index
    %c0_48 = arith.constant 0 : index
    %120 = vector.load %arg4[%c32, %c0_48] : memref<33x192xf32, #tpu.memory_space<vmem>>, vector<1x192xf32>
    %c192 = arith.constant 192 : index
    %c0_49 = arith.constant 0 : index
    %121 = vector.load %arg2[%c192, %c0_49] : memref<238x32xf32, #tpu.memory_space<vmem>>, vector<16x32xf32>
    %cst_50 = arith.constant dense<0.000000e+00> : vector<16x16xf32>
    %122 = tpu.matmul %121, %119, %cst_50 {dimension_numbers = #tpu.dot_dimension_numbers<[1], [1], [0], [0], [0, 0, 1, 0], [], []>} : vector<16x32xf32>, vector<16x32xf32>, vector<16x16xf32> -> vector<16x16xf32>
    %c0_51 = arith.constant 0 : index
    %c0_52 = arith.constant 0 : index
    %123 = vector.load %arg4[%c0_51, %c0_52] : memref<33x192xf32, #tpu.memory_space<vmem>>, vector<16x192xf32>
    %cst_53 = arith.constant dense<0.000000e+00> : vector<16x192xf32>
    %124 = tpu.matmul %122, %123, %cst_53 {dimension_numbers = #tpu.dot_dimension_numbers<[1], [0], [0], [1], [0, 0, 1, 1], [], []>} : vector<16x16xf32>, vector<16x192xf32>, vector<16x192xf32> -> vector<16x192xf32>
    %125 = vector.broadcast %120 : vector<1x192xf32> to vector<16x192xf32>
    %126 = arith.addf %125, %124 : vector<16x192xf32>
    %c208 = arith.constant 208 : index
    %c0_54 = arith.constant 0 : index
    %127 = vector.load %arg2[%c208, %c0_54] : memref<238x32xf32, #tpu.memory_space<vmem>>, vector<16x32xf32>
    %cst_55 = arith.constant dense<0.000000e+00> : vector<16x16xf32>
    %128 = tpu.matmul %127, %119, %cst_55 {dimension_numbers = #tpu.dot_dimension_numbers<[1], [1], [0], [0], [0, 0, 1, 0], [], []>} : vector<16x32xf32>, vector<16x32xf32>, vector<16x16xf32> -> vector<16x16xf32>
    %c16 = arith.constant 16 : index
    %c0_56 = arith.constant 0 : index
    %129 = vector.load %arg4[%c16, %c0_56] : memref<33x192xf32, #tpu.memory_space<vmem>>, vector<16x192xf32>
    %cst_57 = arith.constant dense<0.000000e+00> : vector<16x192xf32>
    %130 = tpu.matmul %128, %129, %cst_57 {dimension_numbers = #tpu.dot_dimension_numbers<[1], [0], [0], [1], [0, 0, 1, 1], [], []>} : vector<16x16xf32>, vector<16x192xf32>, vector<16x192xf32> -> vector<16x192xf32>
    %131 = arith.addf %126, %130 : vector<16x192xf32>
    %c0_58 = arith.constant 0 : index
    %c0_59 = arith.constant 0 : index
    %132 = vector.load %arg1[%c0_58, %c0_59] : memref<32x3xf32, #tpu.memory_space<vmem>>, vector<32x3xf32>
    %c224 = arith.constant 224 : index
    %c0_60 = arith.constant 0 : index
    %133 = vector.load %arg2[%c224, %c0_60] : memref<238x32xf32, #tpu.memory_space<vmem>>, vector<3x32xf32>
    %cst_61 = arith.constant dense<0.000000e+00> : vector<32x32xf32>
    %134 = tpu.matmul %132, %133, %cst_61 {dimension_numbers = #tpu.dot_dimension_numbers<[1], [0], [0], [1], [0, 0, 1, 1], [], []>} : vector<32x3xf32>, vector<3x32xf32>, vector<32x32xf32> -> vector<32x32xf32>
    %c237 = arith.constant 237 : index
    %c0_62 = arith.constant 0 : index
    %135 = vector.load %arg2[%c237, %c0_62] : memref<238x32xf32, #tpu.memory_space<vmem>>, vector<1x32xf32>
    %136 = vector.broadcast %135 : vector<1x32xf32> to vector<32x32xf32>
    %137 = arith.addf %134, %136 : vector<32x32xf32>
    %c0_63 = arith.constant 0 : index
    %c0_64 = arith.constant 0 : index
    %138 = vector.load %arg4[%c0_63, %c0_64] : memref<33x192xf32, #tpu.memory_space<vmem>>, vector<32x192xf32>
    %cst_65 = arith.constant dense<0.000000e+00> : vector<32x192xf32>
    %139 = tpu.matmul %137, %138, %cst_65 {dimension_numbers = #tpu.dot_dimension_numbers<[1], [0], [0], [1], [0, 0, 1, 1], [], []>} : vector<32x32xf32>, vector<32x192xf32>, vector<32x192xf32> -> vector<32x192xf32>
    %c32_66 = arith.constant 32 : index
    %c0_67 = arith.constant 0 : index
    %140 = vector.load %arg4[%c32_66, %c0_67] : memref<33x192xf32, #tpu.memory_space<vmem>>, vector<1x192xf32>
    %141 = vector.broadcast %140 : vector<1x192xf32> to vector<32x192xf32>
    %142 = arith.addf %139, %141 : vector<32x192xf32>
    %143 = vector.extract_strided_slice %131 {offsets = [0, 0], sizes = [16, 64], strides = [1, 1]} : vector<16x192xf32> to vector<16x64xf32>
    %144 = vector.extract_strided_slice %143 {offsets = [0, 0], sizes = [16, 16], strides = [1, 1]} : vector<16x64xf32> to vector<16x16xf32>
    %145 = vector.extract_strided_slice %143 {offsets = [0, 16], sizes = [16, 16], strides = [1, 1]} : vector<16x64xf32> to vector<16x16xf32>
    %146 = vector.extract_strided_slice %143 {offsets = [0, 32], sizes = [16, 16], strides = [1, 1]} : vector<16x64xf32> to vector<16x16xf32>
    %147 = vector.extract_strided_slice %143 {offsets = [0, 48], sizes = [16, 16], strides = [1, 1]} : vector<16x64xf32> to vector<16x16xf32>
    %148 = tpu.concatenate %144, %145, %146, %147 in 0 : vector<16x16xf32>, vector<16x16xf32>, vector<16x16xf32>, vector<16x16xf32> -> vector<64x16xf32>
    %149 = vector.extract_strided_slice %131 {offsets = [0, 64], sizes = [16, 64], strides = [1, 1]} : vector<16x192xf32> to vector<16x64xf32>
    %150 = vector.extract_strided_slice %149 {offsets = [0, 0], sizes = [16, 16], strides = [1, 1]} : vector<16x64xf32> to vector<16x16xf32>
    %151 = vector.extract_strided_slice %149 {offsets = [0, 16], sizes = [16, 16], strides = [1, 1]} : vector<16x64xf32> to vector<16x16xf32>
    %152 = vector.extract_strided_slice %149 {offsets = [0, 32], sizes = [16, 16], strides = [1, 1]} : vector<16x64xf32> to vector<16x16xf32>
    %153 = vector.extract_strided_slice %149 {offsets = [0, 48], sizes = [16, 16], strides = [1, 1]} : vector<16x64xf32> to vector<16x16xf32>
    %154 = tpu.concatenate %150, %151, %152, %153 in 0 : vector<16x16xf32>, vector<16x16xf32>, vector<16x16xf32>, vector<16x16xf32> -> vector<64x16xf32>
    %155 = vector.extract_strided_slice %131 {offsets = [0, 128], sizes = [16, 64], strides = [1, 1]} : vector<16x192xf32> to vector<16x64xf32>
    %156 = vector.extract_strided_slice %155 {offsets = [0, 0], sizes = [16, 16], strides = [1, 1]} : vector<16x64xf32> to vector<16x16xf32>
    %157 = vector.extract_strided_slice %155 {offsets = [0, 16], sizes = [16, 16], strides = [1, 1]} : vector<16x64xf32> to vector<16x16xf32>
    %158 = vector.extract_strided_slice %155 {offsets = [0, 32], sizes = [16, 16], strides = [1, 1]} : vector<16x64xf32> to vector<16x16xf32>
    %159 = vector.extract_strided_slice %155 {offsets = [0, 48], sizes = [16, 16], strides = [1, 1]} : vector<16x64xf32> to vector<16x16xf32>
    %160 = tpu.concatenate %156, %157, %158, %159 in 0 : vector<16x16xf32>, vector<16x16xf32>, vector<16x16xf32>, vector<16x16xf32> -> vector<64x16xf32>
    %c32_68 = arith.constant 32 : index
    %c0_69 = arith.constant 0 : index
    %161 = vector.load %arg3[%c32_68, %c0_69] : memref<163x64xf32, #tpu.memory_space<vmem>>, vector<64x64xf32>
    %162 = vector.extract_strided_slice %142 {offsets = [0, 0], sizes = [16, 192], strides = [1, 1]} : vector<32x192xf32> to vector<16x192xf32>
    %163 = vector.extract_strided_slice %162 {offsets = [0, 0], sizes = [16, 64], strides = [1, 1]} : vector<16x192xf32> to vector<16x64xf32>
    %164 = vector.extract_strided_slice %163 {offsets = [0, 0], sizes = [16, 16], strides = [1, 1]} : vector<16x64xf32> to vector<16x16xf32>
    %165 = vector.extract_strided_slice %163 {offsets = [0, 16], sizes = [16, 16], strides = [1, 1]} : vector<16x64xf32> to vector<16x16xf32>
    %166 = vector.extract_strided_slice %163 {offsets = [0, 32], sizes = [16, 16], strides = [1, 1]} : vector<16x64xf32> to vector<16x16xf32>
    %167 = vector.extract_strided_slice %163 {offsets = [0, 48], sizes = [16, 16], strides = [1, 1]} : vector<16x64xf32> to vector<16x16xf32>
    %168 = tpu.concatenate %164, %165, %166, %167 in 0 : vector<16x16xf32>, vector<16x16xf32>, vector<16x16xf32>, vector<16x16xf32> -> vector<64x16xf32>
    %169 = vector.extract_strided_slice %162 {offsets = [0, 64], sizes = [16, 64], strides = [1, 1]} : vector<16x192xf32> to vector<16x64xf32>
    %170 = vector.extract_strided_slice %169 {offsets = [0, 0], sizes = [16, 16], strides = [1, 1]} : vector<16x64xf32> to vector<16x16xf32>
    %171 = vector.extract_strided_slice %169 {offsets = [0, 16], sizes = [16, 16], strides = [1, 1]} : vector<16x64xf32> to vector<16x16xf32>
    %172 = vector.extract_strided_slice %169 {offsets = [0, 32], sizes = [16, 16], strides = [1, 1]} : vector<16x64xf32> to vector<16x16xf32>
    %173 = vector.extract_strided_slice %169 {offsets = [0, 48], sizes = [16, 16], strides = [1, 1]} : vector<16x64xf32> to vector<16x16xf32>
    %174 = tpu.concatenate %170, %171, %172, %173 in 0 : vector<16x16xf32>, vector<16x16xf32>, vector<16x16xf32>, vector<16x16xf32> -> vector<64x16xf32>
    %175 = vector.extract_strided_slice %162 {offsets = [0, 128], sizes = [16, 64], strides = [1, 1]} : vector<16x192xf32> to vector<16x64xf32>
    %176 = vector.extract_strided_slice %175 {offsets = [0, 0], sizes = [16, 16], strides = [1, 1]} : vector<16x64xf32> to vector<16x16xf32>
    %177 = vector.extract_strided_slice %175 {offsets = [0, 16], sizes = [16, 16], strides = [1, 1]} : vector<16x64xf32> to vector<16x16xf32>
    %178 = vector.extract_strided_slice %175 {offsets = [0, 32], sizes = [16, 16], strides = [1, 1]} : vector<16x64xf32> to vector<16x16xf32>
    %179 = vector.extract_strided_slice %175 {offsets = [0, 48], sizes = [16, 16], strides = [1, 1]} : vector<16x64xf32> to vector<16x16xf32>
    %180 = tpu.concatenate %176, %177, %178, %179 in 0 : vector<16x16xf32>, vector<16x16xf32>, vector<16x16xf32>, vector<16x16xf32> -> vector<64x16xf32>
    %cst_70 = arith.constant dense<0.000000e+00> : vector<64x64xf32>
    %181 = tpu.matmul %168, %154, %cst_70 {dimension_numbers = #tpu.dot_dimension_numbers<[1], [1], [0], [0], [0, 0, 1, 0], [], []>} : vector<64x16xf32>, vector<64x16xf32>, vector<64x64xf32> -> vector<64x64xf32>
    %182 = arith.addf %181, %161 : vector<64x64xf32>
    %cst_71 = arith.constant dense<0xFF800000> : vector<64xf32>
    %183 = vector.multi_reduction <maximumf>, %182, %cst_71 [1] : vector<64x64xf32> to vector<64xf32>
    %184 = vector.shape_cast %183 : vector<64xf32> to vector<64x1xf32>
    %185 = vector.broadcast %184 : vector<64x1xf32> to vector<64x64xf32>
    %186 = arith.subf %182, %185 : vector<64x64xf32>
    %187 = math.exp %186 : vector<64x64xf32>
    %cst_72 = arith.constant dense<0.000000e+00> : vector<64xf32>
    %188 = vector.multi_reduction <add>, %187, %cst_72 [1] : vector<64x64xf32> to vector<64xf32>
    %189 = vector.shape_cast %188 : vector<64xf32> to vector<64x1xf32>
    %cst_73 = arith.constant dense<0.000000e+00> : vector<64x16xf32>
    %190 = tpu.matmul %187, %160, %cst_73 {dimension_numbers = #tpu.dot_dimension_numbers<[1], [0], [0], [1], [0, 0, 1, 1], [], []>} : vector<64x64xf32>, vector<64x16xf32>, vector<64x16xf32> -> vector<64x16xf32>
    %191 = tpu.reciprocal %189 {approx = true} : vector<64x1xf32> -> vector<64x1xf32>
    %192 = vector.broadcast %191 : vector<64x1xf32> to vector<64x16xf32>
    %193 = arith.mulf %190, %192 : vector<64x16xf32>
    %cst_74 = arith.constant dense<0.000000e+00> : vector<64x64xf32>
    %194 = tpu.matmul %148, %174, %cst_74 {dimension_numbers = #tpu.dot_dimension_numbers<[1], [1], [0], [0], [0, 0, 1, 0], [], []>} : vector<64x16xf32>, vector<64x16xf32>, vector<64x64xf32> -> vector<64x64xf32>
    %195 = arith.addf %194, %161 : vector<64x64xf32>
    %cst_75 = arith.constant dense<0xFF800000> : vector<64xf32>
    %196 = vector.multi_reduction <maximumf>, %195, %cst_75 [1] : vector<64x64xf32> to vector<64xf32>
    %197 = vector.shape_cast %196 : vector<64xf32> to vector<64x1xf32>
    %198 = vector.broadcast %197 : vector<64x1xf32> to vector<64x64xf32>
    %199 = arith.subf %195, %198 : vector<64x64xf32>
    %200 = math.exp %199 : vector<64x64xf32>
    %cst_76 = arith.constant dense<0.000000e+00> : vector<64xf32>
    %201 = vector.multi_reduction <add>, %200, %cst_76 [1] : vector<64x64xf32> to vector<64xf32>
    %202 = vector.shape_cast %201 : vector<64xf32> to vector<64x1xf32>
    %cst_77 = arith.constant dense<0.000000e+00> : vector<64x16xf32>
    %203 = tpu.matmul %200, %180, %cst_77 {dimension_numbers = #tpu.dot_dimension_numbers<[1], [0], [0], [1], [0, 0, 1, 1], [], []>} : vector<64x64xf32>, vector<64x16xf32>, vector<64x16xf32> -> vector<64x16xf32>
    %204 = tpu.reciprocal %202 {approx = true} : vector<64x1xf32> -> vector<64x1xf32>
    %205 = vector.broadcast %204 : vector<64x1xf32> to vector<64x16xf32>
    %206 = arith.mulf %203, %205 : vector<64x16xf32>
    %cst_78 = arith.constant 5.000000e-01 : f32
    %207 = vector.broadcast %cst_78 : f32 to vector<64x16xf32>
    %208 = arith.mulf %207, %206 : vector<64x16xf32>
    %cst_79 = arith.constant 5.000000e-01 : f32
    %209 = vector.broadcast %cst_79 : f32 to vector<64x16xf32>
    %210 = arith.mulf %209, %193 : vector<64x16xf32>
    %211 = arith.addf %208, %210 : vector<64x16xf32>
    %212 = vector.extract_strided_slice %211 {offsets = [0, 0], sizes = [16, 16], strides = [1, 1]} : vector<64x16xf32> to vector<16x16xf32>
    %c96 = arith.constant 96 : index
    %c0_80 = arith.constant 0 : index
    %213 = vector.load %arg3[%c96, %c0_80] : memref<163x64xf32, #tpu.memory_space<vmem>>, vector<16x64xf32>
    %cst_81 = arith.constant dense<0.000000e+00> : vector<16x64xf32>
    %214 = tpu.matmul %212, %213, %cst_81 {dimension_numbers = #tpu.dot_dimension_numbers<[1], [0], [0], [1], [0, 0, 1, 1], [], []>} : vector<16x16xf32>, vector<16x64xf32>, vector<16x64xf32> -> vector<16x64xf32>
    %215 = vector.extract_strided_slice %211 {offsets = [16, 0], sizes = [16, 16], strides = [1, 1]} : vector<64x16xf32> to vector<16x16xf32>
    %c112_82 = arith.constant 112 : index
    %c0_83 = arith.constant 0 : index
    %216 = vector.load %arg3[%c112_82, %c0_83] : memref<163x64xf32, #tpu.memory_space<vmem>>, vector<16x64xf32>
    %cst_84 = arith.constant dense<0.000000e+00> : vector<16x64xf32>
    %217 = tpu.matmul %215, %216, %cst_84 {dimension_numbers = #tpu.dot_dimension_numbers<[1], [0], [0], [1], [0, 0, 1, 1], [], []>} : vector<16x16xf32>, vector<16x64xf32>, vector<16x64xf32> -> vector<16x64xf32>
    %218 = arith.addf %214, %217 : vector<16x64xf32>
    %219 = vector.extract_strided_slice %211 {offsets = [32, 0], sizes = [16, 16], strides = [1, 1]} : vector<64x16xf32> to vector<16x16xf32>
    %c128 = arith.constant 128 : index
    %c0_85 = arith.constant 0 : index
    %220 = vector.load %arg3[%c128, %c0_85] : memref<163x64xf32, #tpu.memory_space<vmem>>, vector<16x64xf32>
    %cst_86 = arith.constant dense<0.000000e+00> : vector<16x64xf32>
    %221 = tpu.matmul %219, %220, %cst_86 {dimension_numbers = #tpu.dot_dimension_numbers<[1], [0], [0], [1], [0, 0, 1, 1], [], []>} : vector<16x16xf32>, vector<16x64xf32>, vector<16x64xf32> -> vector<16x64xf32>
    %222 = arith.addf %218, %221 : vector<16x64xf32>
    %223 = vector.extract_strided_slice %211 {offsets = [48, 0], sizes = [16, 16], strides = [1, 1]} : vector<64x16xf32> to vector<16x16xf32>
    %c144 = arith.constant 144 : index
    %c0_87 = arith.constant 0 : index
    %224 = vector.load %arg3[%c144, %c0_87] : memref<163x64xf32, #tpu.memory_space<vmem>>, vector<16x64xf32>
    %cst_88 = arith.constant dense<0.000000e+00> : vector<16x64xf32>
    %225 = tpu.matmul %223, %224, %cst_88 {dimension_numbers = #tpu.dot_dimension_numbers<[1], [0], [0], [1], [0, 0, 1, 1], [], []>} : vector<16x16xf32>, vector<16x64xf32>, vector<16x64xf32> -> vector<16x64xf32>
    %226 = arith.addf %222, %225 : vector<16x64xf32>
    %c161 = arith.constant 161 : index
    %c0_89 = arith.constant 0 : index
    %227 = vector.load %arg3[%c161, %c0_89] : memref<163x64xf32, #tpu.memory_space<vmem>>, vector<1x64xf32>
    %c162 = arith.constant 162 : index
    %c0_90 = arith.constant 0 : index
    %228 = vector.load %arg3[%c162, %c0_90] : memref<163x64xf32, #tpu.memory_space<vmem>>, vector<1x64xf32>
    %cst_91 = arith.constant dense<0.000000e+00> : vector<16xf32>
    %229 = vector.multi_reduction <add>, %226, %cst_91 [1] : vector<16x64xf32> to vector<16xf32>
    %230 = vector.shape_cast %229 : vector<16xf32> to vector<16x1xf32>
    %cst_92 = arith.constant 6.400000e+01 : f32
    %231 = vector.broadcast %cst_92 : f32 to vector<16x1xf32>
    %232 = arith.divf %230, %231 : vector<16x1xf32>
    %233 = vector.broadcast %232 : vector<16x1xf32> to vector<16x64xf32>
    %234 = arith.subf %226, %233 : vector<16x64xf32>
    %235 = arith.mulf %234, %234 : vector<16x64xf32>
    %cst_93 = arith.constant dense<0.000000e+00> : vector<16xf32>
    %236 = vector.multi_reduction <add>, %235, %cst_93 [1] : vector<16x64xf32> to vector<16xf32>
    %237 = vector.shape_cast %236 : vector<16xf32> to vector<16x1xf32>
    %cst_94 = arith.constant 6.400000e+01 : f32
    %238 = vector.broadcast %cst_94 : f32 to vector<16x1xf32>
    %239 = arith.divf %237, %238 : vector<16x1xf32>
    %240 = vector.broadcast %232 : vector<16x1xf32> to vector<16x64xf32>
    %241 = arith.subf %226, %240 : vector<16x64xf32>
    %cst_95 = arith.constant 9.99999974E-6 : f32
    %242 = vector.broadcast %cst_95 : f32 to vector<16x1xf32>
    %243 = arith.addf %239, %242 : vector<16x1xf32>
    %244 = math.rsqrt %243 : vector<16x1xf32>
    %245 = vector.broadcast %244 : vector<16x1xf32> to vector<16x64xf32>
    %246 = arith.mulf %241, %245 : vector<16x64xf32>
    %247 = vector.broadcast %227 : vector<1x64xf32> to vector<16x64xf32>
    %248 = arith.mulf %246, %247 : vector<16x64xf32>
    %249 = vector.broadcast %228 : vector<1x64xf32> to vector<16x64xf32>
    %250 = arith.addf %248, %249 : vector<16x64xf32>
    %251 = vector.extract_strided_slice %142 {offsets = [16, 0], sizes = [16, 192], strides = [1, 1]} : vector<32x192xf32> to vector<16x192xf32>
    %252 = vector.extract_strided_slice %251 {offsets = [0, 0], sizes = [16, 64], strides = [1, 1]} : vector<16x192xf32> to vector<16x64xf32>
    %253 = vector.extract_strided_slice %252 {offsets = [0, 0], sizes = [16, 16], strides = [1, 1]} : vector<16x64xf32> to vector<16x16xf32>
    %254 = vector.extract_strided_slice %252 {offsets = [0, 16], sizes = [16, 16], strides = [1, 1]} : vector<16x64xf32> to vector<16x16xf32>
    %255 = vector.extract_strided_slice %252 {offsets = [0, 32], sizes = [16, 16], strides = [1, 1]} : vector<16x64xf32> to vector<16x16xf32>
    %256 = vector.extract_strided_slice %252 {offsets = [0, 48], sizes = [16, 16], strides = [1, 1]} : vector<16x64xf32> to vector<16x16xf32>
    %257 = tpu.concatenate %253, %254, %255, %256 in 0 : vector<16x16xf32>, vector<16x16xf32>, vector<16x16xf32>, vector<16x16xf32> -> vector<64x16xf32>
    %258 = vector.extract_strided_slice %251 {offsets = [0, 64], sizes = [16, 64], strides = [1, 1]} : vector<16x192xf32> to vector<16x64xf32>
    %259 = vector.extract_strided_slice %258 {offsets = [0, 0], sizes = [16, 16], strides = [1, 1]} : vector<16x64xf32> to vector<16x16xf32>
    %260 = vector.extract_strided_slice %258 {offsets = [0, 16], sizes = [16, 16], strides = [1, 1]} : vector<16x64xf32> to vector<16x16xf32>
    %261 = vector.extract_strided_slice %258 {offsets = [0, 32], sizes = [16, 16], strides = [1, 1]} : vector<16x64xf32> to vector<16x16xf32>
    %262 = vector.extract_strided_slice %258 {offsets = [0, 48], sizes = [16, 16], strides = [1, 1]} : vector<16x64xf32> to vector<16x16xf32>
    %263 = tpu.concatenate %259, %260, %261, %262 in 0 : vector<16x16xf32>, vector<16x16xf32>, vector<16x16xf32>, vector<16x16xf32> -> vector<64x16xf32>
    %264 = vector.extract_strided_slice %251 {offsets = [0, 128], sizes = [16, 64], strides = [1, 1]} : vector<16x192xf32> to vector<16x64xf32>
    %265 = vector.extract_strided_slice %264 {offsets = [0, 0], sizes = [16, 16], strides = [1, 1]} : vector<16x64xf32> to vector<16x16xf32>
    %266 = vector.extract_strided_slice %264 {offsets = [0, 16], sizes = [16, 16], strides = [1, 1]} : vector<16x64xf32> to vector<16x16xf32>
    %267 = vector.extract_strided_slice %264 {offsets = [0, 32], sizes = [16, 16], strides = [1, 1]} : vector<16x64xf32> to vector<16x16xf32>
    %268 = vector.extract_strided_slice %264 {offsets = [0, 48], sizes = [16, 16], strides = [1, 1]} : vector<16x64xf32> to vector<16x16xf32>
    %269 = tpu.concatenate %265, %266, %267, %268 in 0 : vector<16x16xf32>, vector<16x16xf32>, vector<16x16xf32>, vector<16x16xf32> -> vector<64x16xf32>
    %cst_96 = arith.constant dense<0.000000e+00> : vector<64x64xf32>
    %270 = tpu.matmul %257, %154, %cst_96 {dimension_numbers = #tpu.dot_dimension_numbers<[1], [1], [0], [0], [0, 0, 1, 0], [], []>} : vector<64x16xf32>, vector<64x16xf32>, vector<64x64xf32> -> vector<64x64xf32>
    %271 = arith.addf %270, %161 : vector<64x64xf32>
    %cst_97 = arith.constant dense<0xFF800000> : vector<64xf32>
    %272 = vector.multi_reduction <maximumf>, %271, %cst_97 [1] : vector<64x64xf32> to vector<64xf32>
    %273 = vector.shape_cast %272 : vector<64xf32> to vector<64x1xf32>
    %274 = vector.broadcast %273 : vector<64x1xf32> to vector<64x64xf32>
    %275 = arith.subf %271, %274 : vector<64x64xf32>
    %276 = math.exp %275 : vector<64x64xf32>
    %cst_98 = arith.constant dense<0.000000e+00> : vector<64xf32>
    %277 = vector.multi_reduction <add>, %276, %cst_98 [1] : vector<64x64xf32> to vector<64xf32>
    %278 = vector.shape_cast %277 : vector<64xf32> to vector<64x1xf32>
    %cst_99 = arith.constant dense<0.000000e+00> : vector<64x16xf32>
    %279 = tpu.matmul %276, %160, %cst_99 {dimension_numbers = #tpu.dot_dimension_numbers<[1], [0], [0], [1], [0, 0, 1, 1], [], []>} : vector<64x64xf32>, vector<64x16xf32>, vector<64x16xf32> -> vector<64x16xf32>
    %280 = tpu.reciprocal %278 {approx = true} : vector<64x1xf32> -> vector<64x1xf32>
    %281 = vector.broadcast %280 : vector<64x1xf32> to vector<64x16xf32>
    %282 = arith.mulf %279, %281 : vector<64x16xf32>
    %cst_100 = arith.constant dense<0.000000e+00> : vector<64x64xf32>
    %283 = tpu.matmul %148, %263, %cst_100 {dimension_numbers = #tpu.dot_dimension_numbers<[1], [1], [0], [0], [0, 0, 1, 0], [], []>} : vector<64x16xf32>, vector<64x16xf32>, vector<64x64xf32> -> vector<64x64xf32>
    %284 = arith.addf %283, %161 : vector<64x64xf32>
    %cst_101 = arith.constant dense<0xFF800000> : vector<64xf32>
    %285 = vector.multi_reduction <maximumf>, %284, %cst_101 [1] : vector<64x64xf32> to vector<64xf32>
    %286 = vector.shape_cast %285 : vector<64xf32> to vector<64x1xf32>
    %287 = vector.broadcast %286 : vector<64x1xf32> to vector<64x64xf32>
    %288 = arith.subf %284, %287 : vector<64x64xf32>
    %289 = math.exp %288 : vector<64x64xf32>
    %cst_102 = arith.constant dense<0.000000e+00> : vector<64xf32>
    %290 = vector.multi_reduction <add>, %289, %cst_102 [1] : vector<64x64xf32> to vector<64xf32>
    %291 = vector.shape_cast %290 : vector<64xf32> to vector<64x1xf32>
    %cst_103 = arith.constant dense<0.000000e+00> : vector<64x16xf32>
    %292 = tpu.matmul %289, %269, %cst_103 {dimension_numbers = #tpu.dot_dimension_numbers<[1], [0], [0], [1], [0, 0, 1, 1], [], []>} : vector<64x64xf32>, vector<64x16xf32>, vector<64x16xf32> -> vector<64x16xf32>
    %293 = tpu.reciprocal %291 {approx = true} : vector<64x1xf32> -> vector<64x1xf32>
    %294 = vector.broadcast %293 : vector<64x1xf32> to vector<64x16xf32>
    %295 = arith.mulf %292, %294 : vector<64x16xf32>
    %cst_104 = arith.constant 5.000000e-01 : f32
    %296 = vector.broadcast %cst_104 : f32 to vector<64x16xf32>
    %297 = arith.mulf %296, %295 : vector<64x16xf32>
    %cst_105 = arith.constant 5.000000e-01 : f32
    %298 = vector.broadcast %cst_105 : f32 to vector<64x16xf32>
    %299 = arith.mulf %298, %282 : vector<64x16xf32>
    %300 = arith.addf %297, %299 : vector<64x16xf32>
    %301 = vector.extract_strided_slice %300 {offsets = [0, 0], sizes = [16, 16], strides = [1, 1]} : vector<64x16xf32> to vector<16x16xf32>
    %c96_106 = arith.constant 96 : index
    %c0_107 = arith.constant 0 : index
    %302 = vector.load %arg3[%c96_106, %c0_107] : memref<163x64xf32, #tpu.memory_space<vmem>>, vector<16x64xf32>
    %cst_108 = arith.constant dense<0.000000e+00> : vector<16x64xf32>
    %303 = tpu.matmul %301, %302, %cst_108 {dimension_numbers = #tpu.dot_dimension_numbers<[1], [0], [0], [1], [0, 0, 1, 1], [], []>} : vector<16x16xf32>, vector<16x64xf32>, vector<16x64xf32> -> vector<16x64xf32>
    %304 = vector.extract_strided_slice %300 {offsets = [16, 0], sizes = [16, 16], strides = [1, 1]} : vector<64x16xf32> to vector<16x16xf32>
    %c112_109 = arith.constant 112 : index
    %c0_110 = arith.constant 0 : index
    %305 = vector.load %arg3[%c112_109, %c0_110] : memref<163x64xf32, #tpu.memory_space<vmem>>, vector<16x64xf32>
    %cst_111 = arith.constant dense<0.000000e+00> : vector<16x64xf32>
    %306 = tpu.matmul %304, %305, %cst_111 {dimension_numbers = #tpu.dot_dimension_numbers<[1], [0], [0], [1], [0, 0, 1, 1], [], []>} : vector<16x16xf32>, vector<16x64xf32>, vector<16x64xf32> -> vector<16x64xf32>
    %307 = arith.addf %303, %306 : vector<16x64xf32>
    %308 = vector.extract_strided_slice %300 {offsets = [32, 0], sizes = [16, 16], strides = [1, 1]} : vector<64x16xf32> to vector<16x16xf32>
    %c128_112 = arith.constant 128 : index
    %c0_113 = arith.constant 0 : index
    %309 = vector.load %arg3[%c128_112, %c0_113] : memref<163x64xf32, #tpu.memory_space<vmem>>, vector<16x64xf32>
    %cst_114 = arith.constant dense<0.000000e+00> : vector<16x64xf32>
    %310 = tpu.matmul %308, %309, %cst_114 {dimension_numbers = #tpu.dot_dimension_numbers<[1], [0], [0], [1], [0, 0, 1, 1], [], []>} : vector<16x16xf32>, vector<16x64xf32>, vector<16x64xf32> -> vector<16x64xf32>
    %311 = arith.addf %307, %310 : vector<16x64xf32>
    %312 = vector.extract_strided_slice %300 {offsets = [48, 0], sizes = [16, 16], strides = [1, 1]} : vector<64x16xf32> to vector<16x16xf32>
    %c144_115 = arith.constant 144 : index
    %c0_116 = arith.constant 0 : index
    %313 = vector.load %arg3[%c144_115, %c0_116] : memref<163x64xf32, #tpu.memory_space<vmem>>, vector<16x64xf32>
    %cst_117 = arith.constant dense<0.000000e+00> : vector<16x64xf32>
    %314 = tpu.matmul %312, %313, %cst_117 {dimension_numbers = #tpu.dot_dimension_numbers<[1], [0], [0], [1], [0, 0, 1, 1], [], []>} : vector<16x16xf32>, vector<16x64xf32>, vector<16x64xf32> -> vector<16x64xf32>
    %315 = arith.addf %311, %314 : vector<16x64xf32>
    %c161_118 = arith.constant 161 : index
    %c0_119 = arith.constant 0 : index
    %316 = vector.load %arg3[%c161_118, %c0_119] : memref<163x64xf32, #tpu.memory_space<vmem>>, vector<1x64xf32>
    %c162_120 = arith.constant 162 : index
    %c0_121 = arith.constant 0 : index
    %317 = vector.load %arg3[%c162_120, %c0_121] : memref<163x64xf32, #tpu.memory_space<vmem>>, vector<1x64xf32>
    %cst_122 = arith.constant dense<0.000000e+00> : vector<16xf32>
    %318 = vector.multi_reduction <add>, %315, %cst_122 [1] : vector<16x64xf32> to vector<16xf32>
    %319 = vector.shape_cast %318 : vector<16xf32> to vector<16x1xf32>
    %cst_123 = arith.constant 6.400000e+01 : f32
    %320 = vector.broadcast %cst_123 : f32 to vector<16x1xf32>
    %321 = arith.divf %319, %320 : vector<16x1xf32>
    %322 = vector.broadcast %321 : vector<16x1xf32> to vector<16x64xf32>
    %323 = arith.subf %315, %322 : vector<16x64xf32>
    %324 = arith.mulf %323, %323 : vector<16x64xf32>
    %cst_124 = arith.constant dense<0.000000e+00> : vector<16xf32>
    %325 = vector.multi_reduction <add>, %324, %cst_124 [1] : vector<16x64xf32> to vector<16xf32>
    %326 = vector.shape_cast %325 : vector<16xf32> to vector<16x1xf32>
    %cst_125 = arith.constant 6.400000e+01 : f32
    %327 = vector.broadcast %cst_125 : f32 to vector<16x1xf32>
    %328 = arith.divf %326, %327 : vector<16x1xf32>
    %329 = vector.broadcast %321 : vector<16x1xf32> to vector<16x64xf32>
    %330 = arith.subf %315, %329 : vector<16x64xf32>
    %cst_126 = arith.constant 9.99999974E-6 : f32
    %331 = vector.broadcast %cst_126 : f32 to vector<16x1xf32>
    %332 = arith.addf %328, %331 : vector<16x1xf32>
    %333 = math.rsqrt %332 : vector<16x1xf32>
    %334 = vector.broadcast %333 : vector<16x1xf32> to vector<16x64xf32>
    %335 = arith.mulf %330, %334 : vector<16x64xf32>
    %336 = vector.broadcast %316 : vector<1x64xf32> to vector<16x64xf32>
    %337 = arith.mulf %335, %336 : vector<16x64xf32>
    %338 = vector.broadcast %317 : vector<1x64xf32> to vector<16x64xf32>
    %339 = arith.addf %337, %338 : vector<16x64xf32>
    %340 = tpu.concatenate %250, %339 in 0 : vector<16x64xf32>, vector<16x64xf32> -> vector<32x64xf32>
    %c227 = arith.constant 227 : index
    %c0_127 = arith.constant 0 : index
    %341 = vector.load %arg2[%c227, %c0_127] : memref<238x32xf32, #tpu.memory_space<vmem>>, vector<2x32xf32>
    %cst_128 = arith.constant dense<0.000000e+00> : vector<2x64xf32>
    %342 = tpu.matmul %341, %340, %cst_128 {dimension_numbers = #tpu.dot_dimension_numbers<[1], [0], [0], [1], [0, 0, 1, 1], [], []>} : vector<2x32xf32>, vector<32x64xf32>, vector<2x64xf32> -> vector<2x64xf32>
    %c0_129 = arith.constant 0 : index
    %c0_130 = arith.constant 0 : index
    %343 = vector.load %arg5[%c0_129, %c0_130] : memref<65x10xf32, #tpu.memory_space<vmem>>, vector<64x10xf32>
    %cst_131 = arith.constant dense<0.000000e+00> : vector<2x10xf32>
    %344 = tpu.matmul %342, %343, %cst_131 {dimension_numbers = #tpu.dot_dimension_numbers<[1], [0], [0], [1], [0, 0, 1, 1], [], []>} : vector<2x64xf32>, vector<64x10xf32>, vector<2x10xf32> -> vector<2x10xf32>
    %c64 = arith.constant 64 : index
    %c0_132 = arith.constant 0 : index
    %345 = vector.load %arg5[%c64, %c0_132] : memref<65x10xf32, #tpu.memory_space<vmem>>, vector<1x10xf32>
    %346 = vector.broadcast %345 : vector<1x10xf32> to vector<2x10xf32>
    %347 = arith.addf %344, %346 : vector<2x10xf32>
    %c0_133 = arith.constant 0 : index
    %c0_134 = arith.constant 0 : index
    %348 = vector.load %arg6[%c0_133, %c0_134] : memref<2x10xf32, #tpu.memory_space<vmem>>, vector<2x10xf32>
    tpu.vector_store %arg6[%c0_133, %c0_134], %347 {strides = array<i32>} : memref<2x10xf32, #tpu.memory_space<vmem>>, vector<2x10xf32>,
    return
  }
}

</mosaic_0001>

<bundles_post_ra>
// kernel: model_forward.1
= control target key start
LH: loop header
LB: loop body
LE: loop exit
PB: predicated region body
PF: predicated region fallthrough
CT: control target
= control target key end

     0   :  { %s3806_s0 = inlined_call_operand.vmem [shape: f32[32,48], index: 0, kind: input, shape index: {}]   ;;  %s3807_s1 = inlined_call_operand.vmem [shape: f32[32,3], index: 1, kind: input, shape index: {}]   ;;  %s3808_s2 = inlined_call_operand.vmem [shape: f32[238,32], index: 2, kind: input, shape index: {}]   ;;  %s3809_s3 = inlined_call_operand.vmem [shape: f32[163,64], index: 3, kind: input, shape index: {}]   ;;  %s3810_s4 = inlined_call_operand.vmem [shape: f32[33,192], index: 4, kind: input, shape index: {}]   ;;  %s3811_s5 = inlined_call_operand.vmem [shape: f32[65,10], index: 5, kind: input, shape index: {}]   ;;  %s3812_s6 = inlined_call_operand.hbm [shape: f32[2,10], index: 6, kind: output, shape index: {}]  }
   0x1   :  { %v33_v0 = vld [vmem:[%s3808_s2 + $0x28] sm:$0xff]  ;;  %v32_v1 = vld [vmem:[%s3808_s2 + $0x20] sm:$0xff]  ;;  %v31_v2 = vld [vmem:[%s3808_s2 + $0x18] sm:$0xff] }
   0x2   :  { %59 = vmatpush.msra.mxu0 %v33_v0  ;;  %v83_v3 = vld [vmem:[%s3808_s2 + $0x48] sm:$0xff]  ;;  %v30_v4 = vld [vmem:[%s3808_s2 + $0x10] sm:$0xff] }
   0x3   :  { %105 = vmatpush.msra.mxu1 %v83_v3  ;;  %v29_v5 = vld [vmem:[%s3808_s2 + $0x8] sm:$0xff] }
   0x4   :  { %60 = vmatpush.msra.mxu0 %v32_v1 }
   0x6   :  { %61 = vmatpush.msra.mxu0 %v31_v2 }
   0x8   :  { %62 = vmatpush.msra.mxu0 %v30_v4 }
   0x9   :  { %11 = vsyncpa [#allocation3], 0  ;;  %v28_v6 = vld [vmem:[%s3808_s2] sm:$0xff]  ;;  %vm36_vm0 = vcmask 392192   ;;  %v25_v8 = vld [vmem:[%s3806_s0 + $0x8] sm:$0xff]  ;;  %vm86_vm1 = vcmask 261120  }
   0xa   :  { %63 = vmatpush.msra.mxu0 %v29_v5  ;;  %v24_v7 = vld [vmem:[%s3806_s0] sm:$0xff]  ;;  %v81_v10 = vld [vmem:[%s3808_s2 + $0x38] sm:$0xff]  ;;  %v80_v11 = vld [vmem:[%s3808_s2 + $0x30] sm:$0xff]  ;;  %v2663_v37 = vmov 32.0   ;;  %s2664_s15 = smov 80   ;;  %s2665_s16 = smov 96  }
   0xb   :  { %v82_v9 = vld [vmem:[%s3808_s2 + $0x40] sm:$0xff]  ;;  %v119_v12 = vld [vmem:[%s3808_s2 + $0x68] sm:$0xff]  ;;  %v76_v16 = vld [vmem:[%s3808_s2 + $0xb0] sm:$0xff]  ;;  %2481 = vrcp.f32 %v2663_v37 }
   0xc   :  { %64 = vmatpush.msra.mxu0 %v28_v6  ;;  %106 = vmatpush.msra.mxu1 %v82_v9  ;;  %v118_v13 = vld [vmem:[%s3808_s2 + $0x60] sm:$0xff]  ;;  %v77_v20 = vld [vmem:[%s3808_s2 + $0xb8] sm:$0xff]  ;;  %v116_v24 = vld [vmem:[%s3808_s2 + $0x50] sm:$0xff] }
   0xd   :  { %2252 = vmatmul.msk.f32.vlgmr.msra.gmra.mxu0 %vm36_vm0, %v24_v7  ;;  %140 = vmatpush.msra.mxu2 %v119_v12  ;;  %v2468_v14 = vld [vmem:[%s3808_s2 + $0xe5] ss:$0 sm:$0xff]  ;;  %v117_v23 = vld [vmem:[%s3808_s2 + $0x58] sm:$0xff]  ;;  %v2469_v25 = vld [vmem:[%s3808_s2 + $0xe6] ss:$0 sm:$0xff] }
   0xe   :  { %107 = vmatpush.msra.mxu1 %v81_v10  ;;  %v2470_v30 = vld [vmem:[%s3808_s2 + $0xe7] ss:$0 sm:$0xff]  ;;  %v213_v54 = vld [vmem:[%s3809_s3 + $0x18] sm:$0xff]  ;;  %v212_v55 = vld [vmem:[%s3809_s3 + $0x10] sm:$0xff] }
   0xf   :  { %141 = vmatpush.msra.mxu2 %v118_v13  ;;  %234 = vmatpush.msra.mxu3 %v213_v54  ;;  %v211_v56 = vld [vmem:[%s3809_s3 + $0x8] sm:$0xff]  ;;  %v210_v57 = vld [vmem:[%s3809_s3] sm:$0xff] }
  0x10   :  { %108 = vmatpush.msra.mxu1 %v80_v11  ;;  %v2472_v12 = vld [vmem:[%s3808_s2 + $0xe9] ss:$0 sm:$0xff] }
  0x11   :  { %142 = vmatpush.msra.mxu2 %v117_v23  ;;  %v2482_v38 = vpop.eup %2481  ;;  %235 = vmatpush.msra.mxu3 %v212_v55 }
  0x12   :  { %v160_v39 = vmul.f32 32.0, %v2482_v38  ;;  %vm164_vm2 = vweird.f32 %v2482_v38 }
  0x13   :  { %143 = vmatpush.msra.mxu2 %v116_v24  ;;  %236 = vmatpush.msra.mxu3 %v211_v56 }
  0x14   :  { %v161_v40 = vsub.f32 1.0, %v160_v39  ;;  %v329_v39 = vld [vmem:[%s3808_s2 + $0x90] sm:$0xff] }
  0x15   :  { %2253 = vmatmul.msk.f32.gmra.mxu0 %vm36_vm0, %v25_v8  ;;  %237 = vmatpush.msra.mxu3 %v210_v57  ;;  %v2471_v8 = vld [vmem:[%s3808_s2 + $0xe8] ss:$0 sm:$0xff] }
  0x16   :  { %v162_v41 = vmul.f32 %v2482_v38, %v161_v40 }
  0x18   :  { %v163_v42 = vadd.f32 %v2482_v38, %v162_v41 }
  0x1a   :  { %v2776_v43 = vsel %vm164_vm2, %v2482_v38, %v163_v42  ;;  %v27_v42 = vld [vmem:[%s3806_s0 + $0x18] sm:$0xff] }
  0x8a   :  { %v66_v15 = vpop.f32.mrf.mxu0 }
  0x8b   :  { %v67_v17 = vadd.f32 %v2468_v14, %v66_v15 }
  0x8d   :  { %v78_v18 = vadd.f32 %v76_v16, %v67_v17 }
  0x8f   :  { %2256 = vmatmul.msk.f32.vlgmr.msra.gmra.mxu1 %vm86_vm1, %v78_v18 }
  0x92   :  { %v69_v19 = vpop.f32.mrf.mxu0 }
  0x93   :  { %v70_v21 = vadd.f32 %v2468_v14, %v69_v19 }
  0x95   :  { %v79_v22 = vadd.f32 %v77_v20, %v70_v21 }
  0x97   :  { %2257 = vmatmul.msk.f32.gmra.mxu1 %vm86_vm1, %v79_v22  ;;  %v2473_v22 = vld [vmem:[%s3809_s3 + $0xa0] ss:$0 sm:$0xff] }
 0x10c   :  { %v110_v26 = vpop.f32.mrf.mxu1 }
 0x10d   :  { %v111_v27 = vadd.f32 %v2469_v25, %v110_v26 }
 0x10f   :  { %2258 = vmatmul.msk.f32.vlgmr.msra.gmra.mxu2 %vm86_vm1, %v111_v27 }
 0x114   :  { %v113_v28 = vpop.f32.mrf.mxu1 }
 0x115   :  { %v114_v29 = vadd.f32 %v2469_v25, %v113_v28 }
 0x117   :  { %2259 = vmatmul.msk.f32.gmra.mxu2 %vm86_vm1, %v114_v29 }
 0x192   :  { %v145_v31 = vpop.f32.mrf.mxu2 }
 0x193   :  { %v146_v32 = vadd.f32 %v2470_v30, %v145_v31  ;;  %v26_v31 = vld [vmem:[%s3806_s0 + $0x10] sm:$0xff]  ;;  %s2667_s0 = smov 64  }
 0x194   :  { %2254 = vmatmul.msk.f32.gmra.mxu0 %vm36_vm0, %v26_v31 }
 0x195   :  { %v153_v33 = vsel %vm86_vm1, %v146_v32, 0.0 }
 0x196   :  { %154 = vadd.xlane.f32.xlu0 %v153_v33 }
 0x19a   :  { %v148_v34 = vpop.f32.mrf.mxu2 }
 0x19b   :  { %v149_v35 = vadd.f32 %v2470_v30, %v148_v34  ;;  %v331_v34 = vld [vmem:[%s3808_s2 + $0xa0] sm:$0xff] }
 0x19c   :  { %2255 = vmatmul.msk.f32.gmra.mxu0 %vm36_vm0, %v27_v42 }
 0x19d   :  { %v156_v36 = vsel %vm86_vm1, %v149_v35, 0.0 }
 0x19e   :  { %157 = vadd.xlane.f32.xlu0 %v156_v36  ;;  %v330_v36 = vld [vmem:[%s3808_s2 + $0x98] sm:$0xff] }
 0x209   :  { %v155_v44 = vpop.xlane.xlu0 %154 }
 0x20a   :  { %v166_v45 = vmul.f32 %v2776_v43, %v155_v44  ;;  %v328_v44 = vld [vmem:[%s3808_s2 + $0x88] sm:$0xff] }
 0x20c   :  { %v168_v46 = vsub.f32 %v146_v32, %v166_v45  ;;  %v332_v32 = vld [vmem:[%s3808_s2 + $0xa8] sm:$0xff] }
 0x20d   :  { %348 = vmatpush.msrb.mxu0 %v332_v32  ;;  %2408 = vmatpush.msrb.mxu1 %v332_v32 }
 0x20e   :  { %v170_v47 = vmul.f32 %v168_v46, %v168_v46 }
 0x20f   :  { %349 = vmatpush.msrb.mxu0 %v331_v34  ;;  %2409 = vmatpush.msrb.mxu1 %v331_v34 }
 0x210   :  { %v172_v48 = vsel %vm86_vm1, %v170_v47, 0.0  ;;  %v327_v47 = vld [vmem:[%s3808_s2 + $0x80] sm:$0xff] }
 0x211   :  { %173 = vadd.xlane.f32.xlu1 %v172_v48  ;;  %v158_v49 = vpop.xlane.xlu0 %157  ;;  %350 = vmatpush.msrb.mxu0 %v330_v36 }
 0x212   :  { %v167_v50 = vmul.f32 %v2776_v43, %v158_v49  ;;  %2410 = vmatpush.msrb.mxu1 %v330_v36 }
 0x213   :  { %351 = vmatpush.msrb.mxu0 %v329_v39 }
 0x214   :  { %v169_v51 = vsub.f32 %v149_v35, %v167_v50  ;;  %2411 = vmatpush.msrb.mxu1 %v329_v39  ;;  %v326_v50 = vld [vmem:[%s3808_s2 + $0x78] sm:$0xff] }
 0x215   :  { %352 = vmatpush.msrb.mxu0 %v328_v44 }
 0x216   :  { %v171_v52 = vmul.f32 %v169_v51, %v169_v51  ;;  %2412 = vmatpush.msrb.mxu1 %v328_v44 }
 0x217   :  { %353 = vmatpush.msrb.mxu0 %v327_v47 }
 0x218   :  { %v175_v53 = vsel %vm86_vm1, %v171_v52, 0.0  ;;  %2413 = vmatpush.msrb.mxu1 %v327_v47 }
 0x219   :  { %176 = vadd.xlane.f32.xlu1 %v175_v53  ;;  %354 = vmatpush.msrb.mxu0 %v326_v50  ;;  %v325_v53 = vld [vmem:[%s3808_s2 + $0x70] sm:$0xff] }
 0x21a   :  { %2414 = vmatpush.msrb.mxu1 %v326_v50 }
 0x21b   :  { %355 = vmatpush.msrb.mxu0 %v325_v53 }
 0x21c   :  { %2415 = vmatpush.msrb.mxu1 %v325_v53 }
 0x284   :  { %v174_v58 = vpop.xlane.xlu1 %173 }
 0x285   :  { %v178_v59 = vmul.f32 %v174_v58, %v2776_v43 }
 0x287   :  { %v180_v60 = vadd.f32 1e-05, %v178_v59 }
 0x289   :  { %2483 = vrsqrt.f32 %v180_v60  ;;  %vm188_vm4 = vweird.f32 %v180_v60 }
 0x28c   :  { %v177_v61 = vpop.xlane.xlu1 %176 }
 0x28d   :  { %v179_v62 = vmul.f32 %v177_v61, %v2776_v43 }
 0x28f   :  { %v2484_v63 = vpop.eup %2483  ;;  %v181_v0 = vadd.f32 1e-05, %v179_v62 }
 0x290   :  { %v183_v1 = vmul.f32 %v2484_v63, %v180_v60  ;;  %vm189_vm3 = vweird.f32 %v2484_v63 }
 0x291   :  { %2485 = vrsqrt.f32 %v181_v0  ;;  %vm190_vm5 = vmor %vm188_vm4, %vm189_vm3  ;;  %vm198_vm7 = vweird.f32 %v181_v0  ;;  %vm333_vm3 = vcmask 523264  }
 0x292   :  { %v184_v2 = vmul.f32 %v2484_v63, %v183_v1 }
 0x294   :  { %v185_v3 = vmul.f32 0.5, %v184_v2 }
 0x296   :  { %v186_v4 = vsub.f32 1.5, %v185_v3 }
 0x297   :  { %v2486_v5 = vpop.eup %2485 }
 0x298   :  { %v187_v6 = vmul.f32 %v2484_v63, %v186_v4  ;;  %v193_v7 = vmul.f32 %v2486_v5, %v181_v0  ;;  %vm199_vm6 = vweird.f32 %v2486_v5 }
 0x299   :  { %vm200_vm8 = vmor %vm198_vm7, %vm199_vm6 }
 0x29a   :  { %v191_v9 = vsel %vm190_vm5, %v2484_v63, %v187_v6  ;;  %v194_v10 = vmul.f32 %v2486_v5, %v193_v7 }
 0x29b   :  { %v202_v11 = vmul.f32 %v191_v9, %v168_v46 }
 0x29c   :  { %v195_v13 = vmul.f32 0.5, %v194_v10 }
 0x29d   :  { %v205_v14 = vmul.f32 %v2471_v8, %v202_v11 }
 0x29e   :  { %v196_v15 = vsub.f32 1.5, %v195_v13 }
 0x29f   :  { %v2802_v16 = vadd.f32 %v2472_v12, %v205_v14 }
 0x2a0   :  { %v197_v17 = vmul.f32 %v2486_v5, %v196_v15 }
 0x2a1   :  { %2260 = vmatmul.msk.f32.vlgmr.msra.gmra.mxu3 %vm86_vm1, %v2802_v16 }
 0x2a2   :  { %v201_v18 = vsel %vm200_vm8, %v2486_v5, %v197_v17 }
 0x2a3   :  { %v203_v19 = vmul.f32 %v201_v18, %v169_v51 }
 0x2a5   :  { %v206_v20 = vmul.f32 %v2471_v8, %v203_v19 }
 0x2a7   :  { %v2806_v21 = vadd.f32 %v2472_v12, %v206_v20 }
 0x2a9   :  { %2261 = vmatmul.msk.f32.gmra.mxu3 %vm86_vm1, %v2806_v21 }
 0x324   :  { %v239_v23 = vpop.f32.mrf.mxu3 }
 0x325   :  { %v2813_v24 = vadd.f32 %v2473_v22, %v239_v23 }
 0x327   :  { %v2816_v25 = vmul.f32 0.70710677, %v2813_v24 }
 0x329   :  { %v247_v26 = vand.u32 2147483647, %v2816_v25  ;;  %vm313_vm2 = vcmp.ge.f32.partialorder %v2816_v25, 0.0 }
 0x32b   :  { %v249_v27 = vmul.f32 0.3275911, %v247_v26  ;;  %v301_v57 = vsub.f32 0.0, %v247_v26 }
 0x32c   :  { %v242_v28 = vpop.f32.mrf.mxu3 }
 0x32d   :  { %v251_v29 = vadd.f32 1.0, %v249_v27  ;;  %v2819_v30 = vadd.f32 %v2473_v22, %v242_v28  ;;  %v303_v63 = vmul.f32 %v301_v57, %v247_v26 }
 0x32f   :  { %2487 = vrcp.f32 %v251_v29  ;;  %v2829_v33 = vmul.f32 0.70710677, %v2819_v30  ;;  %v264_v46 = vand.u32 2147483648, %v251_v29  ;;  %v262_v49 = vand.u32 2147483647, %v251_v29 }
 0x330   :  { %vm258_vm10 = vweird.f32 %v251_v29  ;;  %v305_v6 = vmul.f32 1.442695, %v303_v63 }
 0x331   :  { %v2835_v35 = vand.u32 2147483647, %v2829_v33  ;;  %v265_v52 = vor.u32 1.1754944e-38, %v264_v46  ;;  %vm263_vm12 = vcmp.eq.f32.partialorder %v262_v49, 8.507059e+37  ;;  %vm314_vm4 = vcmp.ge.f32.partialorder %v2829_v33, 0.0 }
 0x332   :  { %v320_v46 = vmul.f32 0.5, %v2819_v30 }
 0x333   :  { %v250_v37 = vmul.f32 0.3275911, %v2835_v35  ;;  %v302_v10 = vsub.f32 0.0, %v2835_v35 }
 0x335   :  { %v2488_v38 = vpop.eup %2487  ;;  %v252_v41 = vadd.f32 1.0, %v250_v37  ;;  %v304_v15 = vmul.f32 %v302_v10, %v2835_v35  ;;  %v319_v37 = vmul.f32 0.5, %v2813_v24  ;;  %v72_v24 = vpop.f32.mrf.mxu0 }
 0x336   :  { %v254_v40 = vmul.f32 %v2488_v38, %v251_v29  ;;  %vm259_vm9 = vweird.f32 %v2488_v38  ;;  %v617_v24 = vld [vmem:[%s3807_s1] sm:$0xff] }
 0x337   :  { %2489 = vrcp.f32 %v252_v41  ;;  %vm260_vm11 = vmor %vm258_vm10, %vm259_vm9  ;;  %v279_v62 = vand.u32 2147483648, %v252_v41  ;;  %v277_v1 = vand.u32 2147483647, %v252_v41  ;;  %vm273_vm14 = vweird.f32 %v252_v41 }
 0x338   :  { %v255_v45 = vsub.f32 1.0, %v254_v40  ;;  %2491 = vpow2.f32 %v305_v6  ;;  %v307_v22 = vmul.f32 1.442695, %v304_v15 }
 0x339   :  { %v280_v5 = vor.u32 1.1754944e-38, %v279_v62  ;;  %vm278_vm0 = vcmp.eq.f32.partialorder %v277_v1, 8.507059e+37 }
 0x33a   :  { %v256_v48 = vmul.f32 %v2488_v38, %v255_v45  ;;  %2493 = vpow2.f32 %v307_v22 }
 0x33c   :  { %v257_v51 = vadd.f32 %v2488_v38, %v256_v48 }
 0x33d   :  { %v2490_v54 = vpop.eup %2489  ;;  %v74_v48 = vpop.f32.mrf.mxu0 }
 0x33e   :  { %v261_v55 = vsel %vm260_vm11, %v2488_v38, %v257_v51  ;;  %v269_v58 = vmul.f32 %v2490_v54, %v252_v41  ;;  %vm274_vm13 = vweird.f32 %v2490_v54  ;;  %v2492_v23 = vpop.eup %2491  ;;  %v2474_v51 = vld [vmem:[%s3808_s2 + $0xea] ss:$0 sm:$0xff]  ;;  %vm637_vm11 = vcmask 1042432  }
 0x33f   :  { %v266_v56 = vsel %vm263_vm12, %v265_v52, %v261_v55  ;;  %vm275_vm15 = vmor %vm273_vm14, %vm274_vm13  ;;  %vm464_vm12 = vcmask 130048   ;;  %vm624_vm13 = vcmask 23552  }
 0x340   :  { %v283_v59 = vmul.f32 1.0614054, %v266_v56  ;;  %v270_v60 = vsub.f32 1.0, %v269_v58  ;;  %v2494_v39 = vpop.eup %2493 }
 0x342   :  { %v285_v61 = vadd.f32 -1.4531521, %v283_v59  ;;  %v271_v0 = vmul.f32 %v2490_v54, %v270_v60 }
 0x344   :  { %v287_v2 = vmul.f32 %v285_v61, %v266_v56  ;;  %v272_v3 = vadd.f32 %v2490_v54, %v271_v0 }
 0x346   :  { %v289_v4 = vadd.f32 1.4214138, %v287_v2  ;;  %v276_v7 = vsel %vm275_vm15, %v2490_v54, %v272_v3 }
 0x347   :  { %v281_v9 = vsel %vm278_vm0, %v280_v5, %v276_v7 }
 0x348   :  { %v291_v8 = vmul.f32 %v289_v4, %v266_v56  ;;  %v284_v11 = vmul.f32 1.0614054, %v281_v9 }
 0x34a   :  { %v293_v12 = vadd.f32 -0.28449672, %v291_v8  ;;  %v286_v13 = vadd.f32 -1.4531521, %v284_v11 }
 0x34c   :  { %v295_v14 = vmul.f32 %v293_v12, %v266_v56  ;;  %v288_v17 = vmul.f32 %v286_v13, %v281_v9 }
 0x34e   :  { %v297_v18 = vadd.f32 0.2548296, %v295_v14  ;;  %v290_v19 = vadd.f32 1.4214138, %v288_v17  ;;  %v2475_v14 = vld [vmem:[%s3808_s2 + $0xeb] ss:$0 sm:$0xff] }
 0x350   :  { %v299_v20 = vmul.f32 %v297_v18, %v266_v56  ;;  %v292_v26 = vmul.f32 %v290_v19, %v281_v9  ;;  %v2476_v18 = vld [vmem:[%s3808_s2 + $0xec] ss:$0 sm:$0xff] }
 0x352   :  { %v309_v27 = vmul.f32 %v2492_v23, %v299_v20  ;;  %v294_v28 = vadd.f32 -0.28449672, %v292_v26 }
 0x354   :  { %v311_v29 = vsub.f32 1.0, %v309_v27  ;;  %v296_v31 = vmul.f32 %v294_v28, %v281_v9 }
 0x356   :  { %v315_v32 = vsub.f32 0.0, %v311_v29  ;;  %v298_v34 = vadd.f32 0.2548296, %v296_v31  ;;  %v463_v31 = vld [vmem:[%s3810_s4 + $0x18] sm:$0xff] }
 0x357   :  { %508 = vmatpush.msra.mxu1 %v463_v31 }
 0x358   :  { %v317_v36 = vsel %vm313_vm2, %v311_v29, %v315_v32  ;;  %v300_v38 = vmul.f32 %v298_v34, %v281_v9  ;;  %v462_v29 = vld [vmem:[%s3810_s4 + $0x10] sm:$0xff] }
 0x359   :  { %v321_v35 = vadd.f32 1.0, %v317_v36  ;;  %485 = vmatpush.msrb.mxu3 %v462_v29  ;;  %v423_v36 = vld [vmem:[%s3808_s2 + $0xc0] sm:$0xff] }
 0x35a   :  { %v310_v41 = vmul.f32 %v2494_v39, %v300_v38  ;;  %v527_v38 = vld [vmem:[%s3808_s2 + $0xd8] sm:$0xff]  ;;  %v460_v39 = vld [vmem:[%s3810_s4] sm:$0xff] }
 0x35b   :  { %v323_v40 = vmul.f32 %v321_v35, %v319_v37  ;;  %v424_v37 = vld [vmem:[%s3808_s2 + $0xc8] sm:$0xff]  ;;  %v526_v35 = vld [vmem:[%s3808_s2 + $0xd0] sm:$0xff]  ;;  %486 = vmatpush.msrb.mxu3 %v460_v39 }
 0x35c   :  { %v312_v42 = vsub.f32 1.0, %v310_v41  ;;  %v559_v41 = vld [vmem:[%s3810_s4 + $0x30] sm:$0xff] }
 0x35d   :  { %2262 = vmatmul.msk.f32.vlgmr.msrb.gmra.mxu0 %vm333_vm3, %v323_v40  ;;  %v461_v40 = vld [vmem:[%s3810_s4 + $0x8] sm:$0xff]  ;;  %581 = vmatpush.msra.mxu3 %v559_v41 }
 0x35e   :  { %v316_v44 = vsub.f32 0.0, %v312_v42  ;;  %509 = vmatpush.msra.mxu1 %v461_v40 }
 0x360   :  { %v318_v45 = vsel %vm314_vm4, %v312_v42, %v316_v44  ;;  %v560_v42 = vld [vmem:[%s3810_s4 + $0x38] sm:$0xff]  ;;  %v557_v44 = vld [vmem:[%s3810_s4 + $0x20] sm:$0xff] }
 0x361   :  { %v322_v25 = vadd.f32 1.0, %v318_v45  ;;  %604 = vmatpush.msra.mxu0 %v560_v42  ;;  %v558_v45 = vld [vmem:[%s3810_s4 + $0x28] sm:$0xff]  ;;  %582 = vmatpush.msra.mxu3 %v557_v44 }
 0x363   :  { %v324_v47 = vmul.f32 %v322_v25, %v320_v46  ;;  %v621_v46 = vld [vmem:[%s3808_s2 + $0xe0] sm:$0x7]  ;;  %605 = vmatpush.msra.mxu0 %v558_v45 }
 0x365   :  { %2263 = vmatmul.msk.f32.vlgmr.msrb.gmra.mxu1 %vm333_vm3, %v324_v47 }
 0x366   :  { %2281 = vmatpush.msk.msrb.mxu1 %vm637_vm11, %v621_v46 }
 0x3da   :  { %v357_v52 = vpop.f32.mrf.mxu0 }
 0x3db   :  { %v363_v33 = vadd.f32 %v357_v52, %v2802_v16 }
 0x3dd   :  { %v367_v30 = vadd.f32 %v2474_v51, %v363_v33 }
 0x3df   :  { %v371_v55 = vsel %vm86_vm1, %v367_v30, 0.0 }
 0x3e2   :  { %v360_v49 = vpop.f32.mrf.mxu1 }
 0x3e3   :  { %v364_v50 = vadd.f32 %v360_v49, %v2806_v21  ;;  %v618_v49 = vld [vmem:[%s3807_s1 + $0x8] sm:$0xff] }
 0x3e5   :  { %v368_v53 = vadd.f32 %v2474_v51, %v364_v50 }
 0x3e7   :  { %v374_v54 = vsel %vm86_vm1, %v368_v53, 0.0 }
 0x3e8   :  { %375 = vadd.xlane.f32.xlu2 %v374_v54 }
 0x3f0   :  { %372 = vadd.xlane.f32.xlu2 %v371_v55 }
 0x45b   :  { %v376_v56 = vpop.xlane.xlu2 %375 }
 0x45c   :  { %v378_v57 = vmul.f32 %v376_v56, %v2776_v43 }
 0x45e   :  { %v380_v58 = vsub.f32 %v368_v53, %v378_v57  ;;  %v2957_v53 = vld [vmem:[%s3808_s2 + $0xed] ss:$0 sm:$0xff] }
 0x460   :  { %v382_v21 = vmul.f32 %v380_v58, %v380_v58 }
 0x462   :  { %v386_v59 = vsel %vm86_vm1, %v382_v21, 0.0 }
 0x463   :  { %387 = vadd.xlane.f32.xlu0 %v386_v59  ;;  %v373_v60 = vpop.xlane.xlu2 %372 }
 0x464   :  { %v377_v61 = vmul.f32 %v373_v60, %v2776_v43 }
 0x466   :  { %v379_v62 = vsub.f32 %v367_v30, %v377_v61 }
 0x468   :  { %v381_v16 = vmul.f32 %v379_v62, %v379_v62 }
 0x46a   :  { %v383_v63 = vsel %vm86_vm1, %v381_v16, 0.0 }
 0x46b   :  { %384 = vadd.xlane.f32.xlu1 %v383_v63 }
 0x4d6   :  { %v388_v0 = vpop.xlane.xlu0 %387 }
 0x4d7   :  { %v390_v1 = vmul.f32 %v388_v0, %v2776_v43 }
 0x4d9   :  { %v392_v2 = vadd.f32 1e-05, %v390_v1 }
 0x4db   :  { %2495 = vrsqrt.f32 %v392_v2  ;;  %vm409_vm6 = vweird.f32 %v392_v2 }
 0x4de   :  { %v385_v3 = vpop.xlane.xlu1 %384 }
 0x4df   :  { %v389_v4 = vmul.f32 %v385_v3, %v2776_v43 }
 0x4e1   :  { %v2496_v5 = vpop.eup %2495  ;;  %v391_v6 = vadd.f32 1e-05, %v389_v4  ;;  %v619_v4 = vld [vmem:[%s3807_s1 + $0x10] sm:$0xff] }
 0x4e2   :  { %v404_v7 = vmul.f32 %v2496_v5, %v392_v2  ;;  %vm410_vm5 = vweird.f32 %v2496_v5 }
 0x4e3   :  { %2497 = vrsqrt.f32 %v391_v6  ;;  %vm411_vm7 = vmor %vm409_vm6, %vm410_vm5  ;;  %vm399_vm9 = vweird.f32 %v391_v6 }
 0x4e4   :  { %v405_v8 = vmul.f32 %v2496_v5, %v404_v7 }
 0x4e6   :  { %v406_v9 = vmul.f32 0.5, %v405_v8 }
 0x4e8   :  { %v407_v10 = vsub.f32 1.5, %v406_v9 }
 0x4e9   :  { %v2498_v11 = vpop.eup %2497 }
 0x4ea   :  { %v408_v12 = vmul.f32 %v2496_v5, %v407_v10  ;;  %v394_v13 = vmul.f32 %v2498_v11, %v391_v6  ;;  %vm400_vm8 = vweird.f32 %v2498_v11 }
 0x4eb   :  { %vm401_vm10 = vmor %vm399_vm9, %vm400_vm8 }
 0x4ec   :  { %v412_v15 = vsel %vm411_vm7, %v2496_v5, %v408_v12  ;;  %v395_v17 = vmul.f32 %v2498_v11, %v394_v13  ;;  %v620_v5 = vld [vmem:[%s3807_s1 + $0x18] sm:$0xff] }
 0x4ed   :  { %v414_v43 = vmul.f32 %v412_v15, %v380_v58  ;;  %v2264_v58 = vld [vmem:[%s3810_s4 + $0x40] ss:$8 sm:$0x3]  ;;  %s2666_s4 = smov 112  }
 0x4ee   :  { %v396_v19 = vmul.f32 0.5, %v395_v17  ;;  %v2968_v21 = vperm.slane %v2264_v58, 0 }
 0x4ef   :  { %v417_v20 = vmul.f32 %v2475_v14, %v414_v43 }
 0x4f0   :  { %v397_v22 = vsub.f32 1.5, %v396_v19 }
 0x4f1   :  { %v420_v23 = vadd.f32 %v2476_v18, %v417_v20 }
 0x4f2   :  { %v398_v26 = vmul.f32 %v2498_v11, %v397_v22  ;;  %v3064_v22 = vperm.slane %v2264_v58, 1 }
 0x4f3   :  { %2265 = vmatpush.xpose.msk.msrb.mxu2 %vm86_vm1, %v420_v23 }
 0x4f4   :  { %v402_v27 = vsel %vm401_vm10, %v2498_v11, %v398_v26 }
 0x4f5   :  { %v413_v28 = vmul.f32 %v402_v27, %v379_v62 }
 0x4f7   :  { %v416_v32 = vmul.f32 %v2475_v14, %v413_v28 }
 0x4f9   :  { %v419_v34 = vadd.f32 %v2476_v18, %v416_v32 }
 0x4fb   :  { %2266 = vmatpush.xpose.msk.msrb.mxu2 %vm86_vm1, %v419_v34 }
 0x4fe   :  { %2267 = vmatmul.msk.f32.vlgmr.msrb.gmra.mxu2 %vm86_vm1, %v423_v36 }
 0x4ff   :  { %2273 = vmatpush.xpose.msk.msra.mxu2 %vm86_vm1, %v420_v23 }
 0x503   :  { %2274 = vmatpush.xpose.msk.msra.mxu2 %vm86_vm1, %v419_v34 }
 0x506   :  { %2268 = vmatmul.msk.f32.gmra.mxu2 %vm86_vm1, %v424_v37 }
 0x507   :  { %698 = vmatpush.msrb.mxu2 %v559_v41 }
 0x509   :  { %699 = vmatpush.msrb.mxu2 %v557_v44 }
 0x50b   :  { %700 = vmatpush.msrb.mxu2 %v462_v29 }
 0x50d   :  { %701 = vmatpush.msrb.mxu2 %v460_v39 }
 0x50e   :  { %2275 = vmatmul.msk.f32.vlgmr.msra.gmra.mxu2 %vm86_vm1, %v526_v35 }
 0x516   :  { %2276 = vmatmul.msk.f32.gmra.mxu2 %vm86_vm1, %v527_v38 }
 0x581   :  { %v454_v25 = vpop.f32.mrf.mxu2 }
 0x582   :  { %2269 = vmatmul.msk.f32.vlgmr.msrb.gmra.mxu3 %vm464_vm12, %v454_v25  ;;  %2271 = vmatmul.msk.f32.vlgmr.msra.gmra.mxu1 %vm464_vm12, %v454_v25 }
 0x583   :  { %727 = vmatpush.msrb.mxu3 %v560_v42 }
 0x585   :  { %728 = vmatpush.msrb.mxu3 %v558_v45 }
 0x587   :  { %729 = vmatpush.msrb.mxu3 %v463_v31 }
 0x589   :  { %v457_v47 = vpop.f32.mrf.mxu2  ;;  %730 = vmatpush.msrb.mxu3 %v461_v40 }
 0x58a   :  { %2270 = vmatmul.msk.f32.gmra.mxu3 %vm464_vm12, %v457_v47  ;;  %2272 = vmatmul.msk.f32.gmra.mxu1 %vm464_vm12, %v457_v47 }
 0x591   :  { %v551_v48 = vpop.f32.mrf.mxu2 }
 0x592   :  { %2277 = vmatmul.msk.f32.vlgmr.msra.gmra.mxu3 %vm464_vm12, %v551_v48  ;;  %2279 = vmatmul.msk.f32.vlgmr.msra.gmra.mxu0 %vm464_vm12, %v551_v48 }
 0x593   :  { %2282 = vmatmul.msk.f32.vlgmr.msrb.gmra.mxu1 %vm624_vm13, %v617_v24 }
 0x599   :  { %v554_v50 = vpop.f32.mrf.mxu2 }
 0x59a   :  { %2278 = vmatmul.msk.f32.gmra.mxu3 %vm464_vm12, %v554_v50  ;;  %2280 = vmatmul.msk.f32.gmra.mxu0 %vm464_vm12, %v554_v50 }
 0x59b   :  { %2283 = vmatmul.msk.f32.gmra.mxu1 %vm624_vm13, %v618_v49 }
 0x5a3   :  { %2284 = vmatmul.msk.f32.gmra.mxu1 %vm624_vm13, %v619_v4 }
 0x5ab   :  { %2285 = vmatmul.msk.f32.gmra.mxu1 %vm624_vm13, %v620_v5  ;;  %vm2234_vm13 = vcmask 74752  }
 0x5ff   :  { %v2950_v51 = vpop.f32.mrf.mxu1 }
 0x600   :  { %v523_v31 = vadd.f32 %v3064_v22, %v2950_v51 }
 0x605   :  { %v488_v56 = vpop.f32.mrf.mxu3 }
 0x606   :  { %v522_v2 = vadd.f32 %v2968_v21, %v488_v56  ;;  %v3132_v56 = vld [vmem:[%s3809_s3 + $0x70] sm:$0xff] }
 0x607   :  { %v2952_v52 = vpop.f32.mrf.mxu1 }
 0x608   :  { %v525_v29 = vadd.f32 %v3064_v22, %v2952_v52 }
 0x60d   :  { %v491_v57 = vpop.f32.mrf.mxu3 }
 0x60e   :  { %v524_v0 = vadd.f32 %v2968_v21, %v491_v57 }
 0x60f   :  { %v607_v43 = vpop.f32.mrf.mxu0 }
 0x610   :  { %v658_v33 = vpop.f32.mrf.mxu1  ;;  %v3087_v34 = vadd.f32 %v607_v43, %v523_v31 }
 0x611   :  { %v659_v54 = vadd.f32 %v2957_v53, %v658_v33 }
 0x613   :  { %2286 = vmatmul.msk.f32.vlgmr.msrb.gmra.mxu2 %vm86_vm1, %v659_v54  ;;  %2290 = vmatmul.msk.f32.vlgmr.msrb.gmra.mxu3 %vm86_vm1, %v659_v54  ;;  %v3125_v54 = vld [vmem:[%s3809_s3 + $0x78] sm:$0xff] }
 0x615   :  { %v584_v61 = vpop.f32.mrf.mxu3 }
 0x616   :  { %v2994_v3 = vadd.f32 %v584_v61, %v522_v2 }
 0x617   :  { %v610_v28 = vpop.f32.mrf.mxu0 }
 0x618   :  { %v661_v30 = vpop.f32.mrf.mxu1  ;;  %v3085_v32 = vadd.f32 %v610_v28, %v525_v29 }
 0x619   :  { %v662_v55 = vadd.f32 %v2957_v53, %v661_v30 }
 0x61a   :  { %v3091_v36 = vpack.i.bf16 %v3087_v34, %v3085_v32 }
 0x61b   :  { %2287 = vmatmul.msk.f32.gmra.mxu2 %vm86_vm1, %v662_v55  ;;  %2291 = vmatmul.msk.f32.gmra.mxu3 %vm86_vm1, %v662_v55 }
 0x61d   :  { %v587_v63 = vpop.f32.mrf.mxu3 }
 0x61e   :  { %v2985_v1 = vadd.f32 %v587_v63, %v524_v0 }
 0x620   :  { %v664_v37 = vpop.f32.mrf.mxu1 }
 0x621   :  { %v665_v35 = vadd.f32 %v2957_v53, %v664_v37 }
 0x623   :  { %2292 = vmatmul.msk.f32.gmra.mxu3 %vm86_vm1, %v665_v35  ;;  %2288 = vmatmul.msk.f32.gmra.mxu2 %vm86_vm1, %v665_v35 }
 0x628   :  { %v667_v39 = vpop.f32.mrf.mxu1 }
 0x629   :  { %v668_v41 = vadd.f32 %v2957_v53, %v667_v39 }
 0x62b   :  { %2293 = vmatmul.msk.f32.gmra.mxu3 %vm86_vm1, %v668_v41  ;;  %2289 = vmatmul.msk.f32.gmra.mxu2 %vm86_vm1, %v668_v41 }
 0x696   :  { %v703_v59 = vpop.f32.mrf.mxu2  ;;  %v732_v14 = vpop.f32.mrf.mxu3 }
 0x697   :  { %v2971_v60 = vadd.f32 %v703_v59, %v2968_v21  ;;  %v3072_v26 = vadd.f32 %v732_v14, %v3064_v22 }
 0x699   :  { %796 = vrot.lane.b32.xlu0 %v2971_v60, %s2664_s15 }
 0x69e   :  { %v706_v62 = vpop.f32.mrf.mxu2  ;;  %v735_v19 = vpop.f32.mrf.mxu3 }
 0x69f   :  { %v2976_v16 = vadd.f32 %v706_v62, %v2968_v21  ;;  %v3069_v23 = vadd.f32 %v735_v19, %v3064_v22 }
 0x6a1   :  { %794 = vrot.lane.b32.xlu1 %v2976_v16, %s2665_s16  ;;  %798 = vrot.lane.b32.xlu2 %v2976_v16, %s2664_s15  ;;  %v2423_v27 = vpack.i.bf16 %v3072_v26, %v3069_v23 }
 0x6a2   :  { %792 = vrot.lane.b32.xlu0 %v2971_v60, %s2665_s16 }
 0x6a9   :  { %790 = vrot.lane.b32.xlu1 %v2976_v16, %s2666_s4  ;;  %756 = vrot.lane.b32.xlu2 %v2985_v1, %s2664_s15 }
 0x6aa   :  { %752 = vrot.lane.b32.xlu0 %v2985_v1, %s2665_s16 }
 0x6b1   :  { %750 = vrot.lane.b32.xlu1 %v2994_v3, %s2665_s16  ;;  %754 = vrot.lane.b32.xlu2 %v2994_v3, %s2664_s15 }
 0x6b2   :  { %748 = vrot.lane.b32.xlu0 %v2985_v1, %s2666_s4 }
 0x6b9   :  { %788 = vrot.lane.b32.xlu2 %v2971_v60, %s2666_s4 }
 0x6c1   :  { %746 = vrot.lane.b32.xlu2 %v2994_v3, %s2666_s4 }
 0x6fb   :  { %v3014_v6 = vpop.permute.xlu2 %798 }
 0x6fc   :  { %1076 = vrot.lane.b32.xlu1 %v3014_v6, %s2667_s0 }
 0x703   :  { %v3018_v7 = vpop.permute.xlu2 %756 }
 0x704   :  { %834 = vrot.lane.b32.xlu1 %v3018_v7, %s2667_s0 }
 0x70b   :  { %v3022_v8 = vpop.permute.xlu0 %796  ;;  %v3034_v11 = vpop.permute.xlu2 %754 }
 0x70c   :  { %1074 = vrot.lane.b32.xlu0 %v3022_v8, %s2667_s0 }
 0x713   :  { %v3026_v9 = vpop.permute.xlu1 %794  ;;  %v3046_v15 = vpop.permute.xlu2 %788 }
 0x714   :  { %v3028_v10 = vpop.permute.xlu0 %792  ;;  %1072 = vrot.lane.b32.xlu2 %v3026_v9, %s2667_s0 }
 0x715   :  { %1070 = vrot.lane.b32.xlu0 %v3028_v10, %s2667_s0 }
 0x71b   :  { %v3036_v12 = vpop.permute.xlu1 %790  ;;  %v3058_v20 = vpop.permute.xlu2 %746 }
 0x71c   :  { %v3038_v13 = vpop.permute.xlu0 %752  ;;  %1068 = vrot.lane.b32.xlu1 %v3036_v12, %s2667_s0  ;;  %832 = vrot.lane.b32.xlu2 %v3034_v11, %s2667_s0 }
 0x71d   :  { %830 = vrot.lane.b32.xlu0 %v3038_v13, %s2667_s0 }
 0x723   :  { %v3048_v17 = vpop.permute.xlu1 %750 }
 0x724   :  { %828 = vrot.lane.b32.xlu1 %v3048_v17, %s2667_s0  ;;  %1066 = vrot.lane.b32.xlu2 %v3046_v15, %s2667_s0  ;;  %v3056_v18 = vpop.permute.xlu0 %748 }
 0x725   :  { %1064 = vrot.lane.b32.xlu0 %v2976_v16, %s2667_s0 }
 0x72c   :  { %1062 = vrot.lane.b32.xlu1 %v2971_v60, %s2667_s0  ;;  %826 = vrot.lane.b32.xlu2 %v3056_v18, %s2667_s0 }
 0x72d   :  { %824 = vrot.lane.b32.xlu0 %v3058_v20, %s2667_s0 }
 0x734   :  { %820 = vrot.lane.b32.xlu1 %v2994_v3, %s2667_s0  ;;  %822 = vrot.lane.b32.xlu2 %v2985_v1, %s2667_s0 }
 0x735   :  { %2424 = vrot.lane.b32.xlu0 %v2423_v27, %s2664_s15 }
 0x73c   :  { %2429 = vrot.lane.b32.xlu1 %v2423_v27, %s2665_s16 }
 0x73d   :  { %2434 = vrot.lane.b32.xlu0 %v3091_v36, %s2664_s15 }
 0x744   :  { %2439 = vrot.lane.b32.xlu1 %v2423_v27, %s2666_s4 }
 0x74c   :  { %2444 = vrot.lane.b32.xlu1 %v3091_v36, %s2665_s16 }
 0x76e   :  { %v1077_v38 = vpop.permute.xlu1 %1076  ;;  %v1073_v40 = vpop.permute.xlu2 %1072 }
 0x76f   :  { %2318 = vmatpush.xpose.msk.msra.mxu2 %vm464_vm12, %v1077_v38  ;;  %v3224_v38 = vld [vmem:[%s3809_s3 + $0x30] sm:$0xff] }
 0x776   :  { %v835_v42 = vpop.permute.xlu1 %834  ;;  %v833_v44 = vpop.permute.xlu2 %832 }
 0x777   :  { %2294 = vmatpush.xpose.msk.msrb.mxu0 %vm464_vm12, %v835_v42 }
 0x77b   :  { %2295 = vmatpush.xpose.msk.msrb.mxu0 %vm464_vm12, %v833_v44 }
 0x77e   :  { %v1075_v45 = vpop.permute.xlu0 %1074  ;;  %v1067_v47 = vpop.permute.xlu2 %1066 }
 0x77f   :  { %2319 = vmatpush.xpose.msk.msra.mxu2 %vm464_vm12, %v1075_v45 }
 0x783   :  { %2320 = vmatpush.xpose.msk.msra.mxu2 %vm464_vm12, %v1073_v40 }
 0x786   :  { %v827_v50 = vpop.permute.xlu2 %826 }
 0x787   :  { %v1071_v46 = vpop.permute.xlu0 %1070 }
 0x788   :  { %2321 = vmatpush.xpose.msk.msra.mxu2 %vm464_vm12, %v1071_v46 }
 0x78e   :  { %v1069_v25 = vpop.permute.xlu1 %1068  ;;  %v823_v53 = vpop.permute.xlu2 %822 }
 0x78f   :  { %v831_v24 = vpop.permute.xlu0 %830  ;;  %2322 = vmatpush.xpose.msk.msra.mxu2 %vm464_vm12, %v1069_v25 }
 0x790   :  { %2296 = vmatpush.xpose.msk.msrb.mxu0 %vm464_vm12, %v831_v24 }
 0x793   :  { %2323 = vmatpush.xpose.msk.msra.mxu2 %vm464_vm12, %v1067_v47 }
 0x796   :  { %v829_v48 = vpop.permute.xlu1 %828 }
 0x797   :  { %v1065_v49 = vpop.permute.xlu0 %1064  ;;  %2297 = vmatpush.xpose.msk.msrb.mxu0 %vm464_vm12, %v829_v48 }
 0x798   :  { %2324 = vmatpush.xpose.msk.msra.mxu2 %vm464_vm12, %v1065_v49  ;;  %v3251_v49 = vld [vmem:[%s3809_s3 + $0x40] sm:$0xff] }
 0x79b   :  { %2298 = vmatpush.xpose.msk.msrb.mxu0 %vm464_vm12, %v827_v50 }
 0x79e   :  { %v1063_v51 = vpop.permute.xlu1 %1062 }
 0x79f   :  { %v825_v52 = vpop.permute.xlu0 %824  ;;  %2325 = vmatpush.xpose.msk.msra.mxu2 %vm464_vm12, %v1063_v51 }
 0x7a0   :  { %2299 = vmatpush.xpose.msk.msrb.mxu0 %vm464_vm12, %v825_v52 }
 0x7a2   :  { %2326 = vmatmul.msk.f32.vlgmr.msra.gmra.mxu2 %vm464_vm12, %v2994_v3 }
 0x7a4   :  { %2300 = vmatpush.xpose.msk.msrb.mxu0 %vm464_vm12, %v823_v53 }
 0x7a6   :  { %v821_v33 = vpop.permute.xlu1 %820 }
 0x7a7   :  { %v2425_v30 = vpop.permute.xlu0 %2424 }
 0x7a8   :  { %v2426_v55 = vunpack.i.l.bf16 %v2425_v30  ;;  %2301 = vmatpush.xpose.msk.msrb.mxu0 %vm464_vm12, %v821_v33  ;;  %v2427_v57 = vunpack.i.h.bf16 %v2425_v30  ;;  %v3266_v30 = vld [vmem:[%s3809_s3 + $0x48] sm:$0xff] }
 0x7aa   :  { %1255 = vmatpush.msra.mxu3 %v2426_v55  ;;  %2327 = vmatmul.msk.f32.gmra.mxu2 %vm464_vm12, %v2985_v1 }
 0x7ab   :  { %2302 = vmatmul.msk.f32.vlgmr.msrb.gmra.mxu0 %vm464_vm12, %v2971_v60 }
 0x7ac   :  { %1352 = vmatpush.msra.mxu0 %v3125_v54  ;;  %1256 = vmatpush.msra.mxu3 %v2427_v57 }
 0x7ae   :  { %1353 = vmatpush.msra.mxu0 %v3132_v56  ;;  %v2430_v58 = vpop.permute.xlu1 %2429 }
 0x7af   :  { %v2431_v59 = vunpack.i.l.bf16 %v2430_v58  ;;  %v3140_v61 = vpop.permute.xlu0 %2434  ;;  %v2432_v63 = vunpack.i.h.bf16 %v2430_v58 }
 0x7b0   :  { %2350 = vmatpush.xpose.msk.msrb.mxu0 %vm464_vm12, %v835_v42  ;;  %v2436_v62 = vunpack.i.l.bf16 %v3140_v61  ;;  %v2437_v0 = vunpack.i.h.bf16 %v3140_v61 }
 0x7b1   :  { %1257 = vmatpush.msra.mxu3 %v2431_v59 }
 0x7b2   :  { %1013 = vmatpush.msra.mxu1 %v2436_v62  ;;  %2328 = vmatmul.msk.f32.gmra.mxu2 %vm464_vm12, %v3058_v20 }
 0x7b3   :  { %2303 = vmatmul.msk.f32.gmra.mxu0 %vm464_vm12, %v2976_v16  ;;  %1258 = vmatpush.msra.mxu3 %v2432_v63 }
 0x7b4   :  { %2351 = vmatpush.xpose.msk.msrb.mxu0 %vm464_vm12, %v833_v44  ;;  %1014 = vmatpush.msra.mxu1 %v2437_v0  ;;  %v3234_v44 = vld [vmem:[%s3809_s3 + $0x38] sm:$0xff] }
 0x7b6   :  { %v2440_v60 = vpop.permute.xlu1 %2439 }
 0x7b7   :  { %v2441_v2 = vunpack.i.l.bf16 %v2440_v60  ;;  %v2442_v4 = vunpack.i.h.bf16 %v2440_v60 }
 0x7b8   :  { %2352 = vmatpush.xpose.msk.msrb.mxu0 %vm464_vm12, %v831_v24 }
 0x7b9   :  { %1259 = vmatpush.msra.mxu3 %v2441_v2 }
 0x7ba   :  { %2329 = vmatmul.msk.f32.gmra.mxu2 %vm464_vm12, %v3056_v18 }
 0x7bb   :  { %2304 = vmatmul.msk.f32.gmra.mxu0 %vm464_vm12, %v3046_v15  ;;  %1260 = vmatpush.msra.mxu3 %v2442_v4 }
 0x7bc   :  { %2353 = vmatpush.xpose.msk.msrb.mxu0 %vm464_vm12, %v829_v48 }
 0x7bd   :  { %1261 = vmatpush.msra.mxu3 %v3069_v23 }
 0x7be   :  { %v3161_v16 = vpop.permute.xlu1 %2444 }
 0x7bf   :  { %v2446_v5 = vunpack.i.l.bf16 %v3161_v16  ;;  %1262 = vmatpush.msra.mxu3 %v3072_v26  ;;  %v2447_v14 = vunpack.i.h.bf16 %v3161_v16  ;;  %v3209_v26 = vld [vmem:[%s3809_s3 + $0x28] sm:$0xff] }
 0x7c0   :  { %2354 = vmatpush.xpose.msk.msrb.mxu0 %vm464_vm12, %v827_v50 }
 0x7c1   :  { %1015 = vmatpush.msra.mxu1 %v2446_v5 }
 0x7c2   :  { %2330 = vmatmul.msk.f32.gmra.mxu2 %vm464_vm12, %v3048_v17 }
 0x7c3   :  { %2305 = vmatmul.msk.f32.gmra.mxu0 %vm464_vm12, %v3036_v12  ;;  %1016 = vmatpush.msra.mxu1 %v2447_v14  ;;  %v709_v12 = vpop.f32.mrf.mxu2 }
 0x7c4   :  { %2355 = vmatpush.xpose.msk.msrb.mxu0 %vm464_vm12, %v825_v52  ;;  %v3282_v4 = vadd.f32 %v709_v12, %v2968_v21 }
 0x7c8   :  { %2356 = vmatpush.xpose.msk.msrb.mxu0 %vm464_vm12, %v823_v53 }
 0x7ca   :  { %2331 = vmatmul.msk.f32.gmra.mxu2 %vm464_vm12, %v3038_v13 }
 0x7cb   :  { %2306 = vmatmul.msk.f32.gmra.mxu0 %vm464_vm12, %v3028_v10  ;;  %v712_v15 = vpop.f32.mrf.mxu2  ;;  %v3194_v10 = vld [vmem:[%s3809_s3 + $0x20] sm:$0xff] }
 0x7cc   :  { %2357 = vmatpush.xpose.msk.msrb.mxu0 %vm464_vm12, %v821_v33 }
 0x7d2   :  { %2332 = vmatmul.msk.f32.gmra.mxu2 %vm464_vm12, %v3034_v11 }
 0x7d3   :  { %2307 = vmatmul.msk.f32.gmra.mxu0 %vm464_vm12, %v3026_v9 }
 0x7da   :  { %2333 = vmatmul.msk.f32.gmra.mxu2 %vm464_vm12, %v3018_v7 }
 0x7db   :  { %2308 = vmatmul.msk.f32.gmra.mxu0 %vm464_vm12, %v3022_v8 }
 0x7e3   :  { %2309 = vmatmul.msk.f32.gmra.mxu0 %vm464_vm12, %v3014_v6 }
 0x825   :  { %v1127_v43 = vpop.f32.mrf.mxu2 }
 0x826   :  { %v3197_v19 = vadd.f32 %v1127_v43, %v3194_v10  ;;  %v3285_v43 = vadd.f32 %v712_v15, %v2968_v21 }
 0x828   :  { %v885_v9 = vpop.f32.mrf.mxu0  ;;  %v1151_v23 = vsel %vm333_vm3, %v3197_v19, -inf }
 0x829   :  { %v3202_v8 = vadd.f32 %v885_v9, %v3194_v10  ;;  %1152 = vmax.xlane.f32.xlu2 %v1151_v23 }
 0x82b   :  { %v909_v6 = vsel %vm333_vm3, %v3202_v8, -inf }
 0x82c   :  { %910 = vmax.xlane.f32.xlu0 %v909_v6 }
 0x82d   :  { %v1130_v27 = vpop.f32.mrf.mxu2 }
 0x82e   :  { %v3212_v28 = vadd.f32 %v1130_v27, %v3209_v26 }
 0x830   :  { %v888_v29 = vpop.f32.mrf.mxu0  ;;  %v1154_v31 = vsel %vm333_vm3, %v3212_v28, -inf }
 0x831   :  { %v3217_v37 = vadd.f32 %v888_v29, %v3209_v26  ;;  %1155 = vmax.xlane.f32.xlu1 %v1154_v31 }
 0x833   :  { %v912_v35 = vsel %vm333_vm3, %v3217_v37, -inf }
 0x834   :  { %913 = vmax.xlane.f32.xlu0 %v912_v35 }
 0x835   :  { %v1133_v39 = vpop.f32.mrf.mxu2 }
 0x836   :  { %v3227_v40 = vadd.f32 %v1133_v39, %v3224_v38 }
 0x838   :  { %v891_v41 = vpop.f32.mrf.mxu0  ;;  %v1157_v42 = vsel %vm333_vm3, %v3227_v40, -inf }
 0x839   :  { %v3279_v2 = vadd.f32 %v891_v41, %v3224_v38 }
 0x83b   :  { %v915_v9 = vsel %vm333_vm3, %v3279_v2, -inf }
 0x83c   :  { %1158 = vmax.xlane.f32.xlu0 %v1157_v42 }
 0x83d   :  { %v1136_v45 = vpop.f32.mrf.mxu2 }
 0x83e   :  { %v3237_v46 = vadd.f32 %v1136_v45, %v3234_v44 }
 0x840   :  { %v894_v25 = vpop.f32.mrf.mxu0  ;;  %v1160_v47 = vsel %vm333_vm3, %v3237_v46, -inf }
 0x841   :  { %v3242_v24 = vadd.f32 %v894_v25, %v3234_v44  ;;  %1161 = vmax.xlane.f32.xlu1 %v1160_v47  ;;  %2449 = vrot.lane.b32.xlu2 %v3091_v36, %s2666_s4 }
 0x843   :  { %v918_v48 = vsel %vm333_vm3, %v3242_v24, -inf }
 0x844   :  { %919 = vmax.xlane.f32.xlu0 %v918_v48 }
 0x845   :  { %v1139_v50 = vpop.f32.mrf.mxu2 }
 0x846   :  { %v3254_v51 = vadd.f32 %v1139_v50, %v3251_v49 }
 0x848   :  { %v897_v52 = vpop.f32.mrf.mxu0  ;;  %v1163_v53 = vsel %vm333_vm3, %v3254_v51, -inf }
 0x849   :  { %v3259_v33 = vadd.f32 %v897_v52, %v3251_v49  ;;  %1164 = vmax.xlane.f32.xlu1 %v1163_v53 }
 0x84b   :  { %v921_v36 = vsel %vm333_vm3, %v3259_v33, -inf }
 0x84c   :  { %922 = vmax.xlane.f32.xlu0 %v921_v36 }
 0x84d   :  { %v1142_v55 = vpop.f32.mrf.mxu2 }
 0x84e   :  { %v3269_v57 = vadd.f32 %v1142_v55, %v3266_v30 }
 0x850   :  { %v900_v58 = vpop.f32.mrf.mxu0  ;;  %v1166_v59 = vsel %vm333_vm3, %v3269_v57, -inf }
 0x851   :  { %v3274_v63 = vadd.f32 %v900_v58, %v3266_v30  ;;  %1167 = vmax.xlane.f32.xlu1 %v1166_v59 }
 0x853   :  { %v924_v60 = vsel %vm333_vm3, %v3274_v63, -inf }
 0x854   :  { %925 = vmax.xlane.f32.xlu0 %v924_v60 }
 0x868   :  { %1525 = vrot.lane.b32.xlu0 %v3282_v4, %s2664_s15 }
 0x86a   :  { %1527 = vrot.lane.b32.xlu1 %v3285_v43, %s2664_s15  ;;  %916 = vmax.xlane.f32.xlu2 %v915_v9 }
 0x870   :  { %1521 = vrot.lane.b32.xlu0 %v3282_v4, %s2665_s16 }
 0x872   :  { %1519 = vrot.lane.b32.xlu1 %v3285_v43, %s2666_s4 }
 0x878   :  { %1517 = vrot.lane.b32.xlu0 %v3282_v4, %s2666_s4 }
 0x882   :  { %1523 = vrot.lane.b32.xlu2 %v3285_v43, %s2665_s16 }
 0x89c   :  { %v1153_v21 = vpop.xlane.xlu2 %1152 }
 0x89d   :  { %v1175_v12 = vsub.f32 %v3197_v19, %v1153_v21 }
 0x89f   :  { %v1183_v15 = vmul.f32 1.442695, %v1175_v12  ;;  %v911_v23 = vpop.xlane.xlu0 %910 }
 0x8a0   :  { %v933_v6 = vsub.f32 %v3202_v8, %v911_v23 }
 0x8a1   :  { %2499 = vpow2.f32 %v1183_v15 }
 0x8a2   :  { %v941_v27 = vmul.f32 1.442695, %v933_v6 }
 0x8a4   :  { %v1156_v29 = vpop.xlane.xlu1 %1155  ;;  %v2450_v31 = vpop.permute.xlu2 %2449  ;;  %2501 = vpow2.f32 %v941_v27 }
 0x8a5   :  { %v1176_v35 = vsub.f32 %v3212_v28, %v1156_v29  ;;  %v2451_v39 = vunpack.i.l.bf16 %v2450_v31  ;;  %v2452_v45 = vunpack.i.h.bf16 %v2450_v31  ;;  %v3313_v28 = vld [vmem:[%s3809_s3 + $0x68] sm:$0xff] }
 0x8a7   :  { %v3304_v41 = vpop.eup %2499  ;;  %v1185_v42 = vmul.f32 1.442695, %v1176_v35  ;;  %v914_v25 = vpop.xlane.xlu0 %913  ;;  %1017 = vmatpush.msra.mxu1 %v2451_v39 }
 0x8a8   :  { %v934_v19 = vsub.f32 %v3217_v37, %v914_v25  ;;  %2334 = vmatmul.msk.f32.vlgmr.msra.gmra.mxu3 %vm333_vm3, %v3304_v41  ;;  %v3323_v37 = vld [vmem:[%s3809_s3 + $0x60] sm:$0xff] }
 0x8a9   :  { %2503 = vpow2.f32 %v1185_v42  ;;  %1018 = vmatpush.msra.mxu1 %v2452_v45 }
 0x8aa   :  { %v943_v8 = vmul.f32 1.442695, %v934_v19  ;;  %v3315_v47 = vpop.eup %2501 }
 0x8ab   :  { %1019 = vmatpush.msra.mxu1 %v3085_v32 }
 0x8ac   :  { %2505 = vpow2.f32 %v943_v8 }
 0x8ad   :  { %1020 = vmatpush.msra.mxu1 %v3087_v34 }
 0x8ae   :  { %2310 = vmatmul.msk.f32.vlgmr.msra.gmra.mxu1 %vm333_vm3, %v3315_v47 }
 0x8af   :  { %v3325_v48 = vpop.eup %2503  ;;  %v1159_v50 = vpop.xlane.xlu0 %1158  ;;  %1381 = vmatpush.msrb.mxu1 %v3313_v28 }
 0x8b0   :  { %v1177_v52 = vsub.f32 %v3227_v40, %v1159_v50  ;;  %2335 = vmatmul.msk.f32.gmra.mxu3 %vm333_vm3, %v3325_v48 }
 0x8b1   :  { %1382 = vmatpush.msrb.mxu1 %v3323_v37 }
 0x8b2   :  { %v1187_v53 = vmul.f32 1.442695, %v1177_v52  ;;  %v3337_v58 = vpop.eup %2505 }
 0x8b3   :  { %1710 = vmatpush.msra.mxu1 %v2436_v62 }
 0x8b4   :  { %2507 = vpow2.f32 %v1187_v53  ;;  %v1162_v36 = vpop.xlane.xlu1 %1161 }
 0x8b5   :  { %1711 = vmatpush.msra.mxu1 %v2437_v0  ;;  %v1178_v55 = vsub.f32 %v3237_v46, %v1162_v36 }
 0x8b6   :  { %2311 = vmatmul.msk.f32.gmra.mxu1 %vm333_vm3, %v3337_v58 }
 0x8b7   :  { %1712 = vmatpush.msra.mxu1 %v2446_v5  ;;  %v920_v40 = vpop.xlane.xlu0 %919  ;;  %v1189_v59 = vmul.f32 1.442695, %v1178_v55 }
 0x8b8   :  { %v936_v29 = vsub.f32 %v3242_v24, %v920_v40  ;;  %v1145_v40 = vpop.f32.mrf.mxu2 }
 0x8b9   :  { %1713 = vmatpush.msra.mxu1 %v2447_v14  ;;  %2509 = vpow2.f32 %v1189_v59  ;;  %v903_v59 = vpop.f32.mrf.mxu0 }
 0x8ba   :  { %v2508_v62 = vpop.eup %2507 }
 0x8bb   :  { %1714 = vmatpush.msra.mxu1 %v2451_v39  ;;  %2336 = vmatmul.msk.f32.gmra.mxu3 %vm333_vm3, %v2508_v62  ;;  %v947_v39 = vmul.f32 1.442695, %v936_v29  ;;  %v1205_v52 = vsel %vm333_vm3, %v2508_v62, 0.0 }
 0x8bc   :  { %v1165_v61 = vpop.xlane.xlu1 %1164 }
 0x8bd   :  { %1715 = vmatpush.msra.mxu1 %v2452_v45  ;;  %v1179_v0 = vsub.f32 %v3254_v51, %v1165_v61  ;;  %v3391_v61 = vld [vmem:[%s3809_s3 + $0x58] sm:$0xff] }
 0x8bf   :  { %1716 = vmatpush.msra.mxu1 %v3085_v32  ;;  %v1191_v5 = vmul.f32 1.442695, %v1179_v0  ;;  %v923_v46 = vpop.xlane.xlu0 %922  ;;  %v2510_v9 = vpop.eup %2509 }
 0x8c0   :  { %v937_v60 = vsub.f32 %v3259_v33, %v923_v46  ;;  %v1148_v62 = vpop.f32.mrf.mxu2 }
 0x8c1   :  { %1717 = vmatpush.msra.mxu1 %v3087_v34  ;;  %2511 = vpow2.f32 %v1191_v5  ;;  %v3395_v5 = vadd.f32 %v1148_v62, %v3391_v61 }
 0x8c2   :  { %v949_v16 = vmul.f32 1.442695, %v937_v60  ;;  %v906_v60 = vpop.f32.mrf.mxu0 }
 0x8c3   :  { %2337 = vmatmul.msk.f32.gmra.mxu3 %vm333_vm3, %v2510_v9  ;;  %v1172_v46 = vsel %vm333_vm3, %v3395_v5, -inf }
 0x8c4   :  { %2513 = vpow2.f32 %v949_v16  ;;  %v1168_v14 = vpop.xlane.xlu1 %1167 }
 0x8c5   :  { %v1180_v21 = vsub.f32 %v3269_v57, %v1168_v14  ;;  %v1391_v14 = vld [vmem:[%s3809_s3 + $0x88] sm:$0xff] }
 0x8c6   :  { %1412 = vmatpush.msrb.mxu2 %v1391_v14 }
 0x8c7   :  { %v1193_v12 = vmul.f32 1.442695, %v1180_v21  ;;  %v2512_v15 = vpop.eup %2511  ;;  %v926_v34 = vpop.xlane.xlu0 %925  ;;  %v1390_v21 = vld [vmem:[%s3809_s3 + $0x80] sm:$0xff] }
 0x8c8   :  { %v938_v8 = vsub.f32 %v3274_v63, %v926_v34  ;;  %v1211_v36 = vsel %vm333_vm3, %v2512_v15, 0.0  ;;  %v1208_v63 = vsel %vm333_vm3, %v2510_v9, 0.0  ;;  %v3400_v9 = vadd.f32 %v906_v60, %v3391_v61  ;;  %1413 = vmatpush.msrb.mxu2 %v1390_v21 }
 0x8c9   :  { %2515 = vpow2.f32 %v1193_v12 }
 0x8ca   :  { %v2514_v51 = vpop.eup %2513  ;;  %v951_v50 = vmul.f32 1.442695, %v938_v8  ;;  %v930_v16 = vsel %vm333_vm3, %v3400_v9, -inf }
 0x8cb   :  { %2338 = vmatmul.msk.f32.gmra.mxu3 %vm333_vm3, %v2512_v15  ;;  %v969_v32 = vsel %vm333_vm3, %v2514_v51, 0.0  ;;  %v3418_v15 = vpop.f32.mrf.mxu3 }
 0x8cc   :  { %970 = vadd.xlane.f32.xlu0 %v969_v32 }
 0x8cf   :  { %v2516_v33 = vpop.eup %2515 }
 0x8d0   :  { %v1214_v55 = vsel %vm333_vm3, %v2516_v33, 0.0 }
 0x8d3   :  { %2339 = vmatmul.msk.f32.gmra.mxu3 %vm333_vm3, %v2516_v33  ;;  %v3430_v34 = vpop.f32.mrf.mxu3 }
 0x8da   :  { %v3355_v23 = vpop.permute.xlu0 %1525 }
 0x8dc   :  { %v3357_v6 = vpop.permute.xlu1 %1527 }
 0x8dd   :  { %1773 = vrot.lane.b32.xlu1 %v3357_v6, %s2667_s0  ;;  %v917_v57 = vpop.xlane.xlu2 %916 }
 0x8de   :  { %v935_v27 = vsub.f32 %v3279_v2, %v917_v57 }
 0x8e0   :  { %v945_v31 = vmul.f32 1.442695, %v935_v27  ;;  %v1199_v27 = vsel %vm333_vm3, %v3304_v41, 0.0 }
 0x8e2   :  { %2517 = vpow2.f32 %v945_v31  ;;  %v3363_v35 = vpop.permute.xlu0 %1521 }
 0x8e3   :  { %1767 = vrot.lane.b32.xlu0 %v3363_v35, %s2667_s0  ;;  %2519 = vpow2.f32 %v947_v39 }
 0x8e4   :  { %2521 = vpow2.f32 %v951_v50  ;;  %v3412_v12 = vpop.permute.xlu1 %1519 }
 0x8e5   :  { %1771 = vrot.lane.b32.xlu1 %v3355_v23, %s2667_s0  ;;  %v3375_v24 = vpop.permute.xlu2 %1523 }
 0x8e8   :  { %v2518_v42 = vpop.eup %2517 }
 0x8e9   :  { %2312 = vmatmul.msk.f32.gmra.mxu1 %vm333_vm3, %v2518_v42  ;;  %v963_v45 = vsel %vm333_vm3, %v2518_v42, 0.0  ;;  %v2520_v25 = vpop.eup %2519  ;;  %v960_v42 = vsel %vm333_vm3, %v3337_v58, 0.0 }
 0x8ea   :  { %v3371_v2 = vpop.permute.xlu0 %1517  ;;  %964 = vadd.xlane.f32.xlu2 %v963_v45  ;;  %v966_v19 = vsel %vm333_vm3, %v2520_v25, 0.0  ;;  %v2522_v53 = vpop.eup %2521 }
 0x8eb   :  { %1763 = vrot.lane.b32.xlu0 %v3371_v2, %s2667_s0  ;;  %v972_v0 = vsel %vm333_vm3, %v2522_v53, 0.0 }
 0x8ed   :  { %1769 = vrot.lane.b32.xlu1 %v3375_v24, %s2667_s0 }
 0x8f1   :  { %2313 = vmatmul.msk.f32.gmra.mxu1 %vm333_vm3, %v2520_v25 }
 0x8f2   :  { %967 = vadd.xlane.f32.xlu2 %v966_v19 }
 0x8f9   :  { %2314 = vmatmul.msk.f32.gmra.mxu1 %vm333_vm3, %v2514_v51  ;;  %v3423_v51 = vld [vmem:[%s3809_s3 + $0x50] sm:$0xff] }
 0x8fa   :  { %1206 = vadd.xlane.f32.xlu2 %v1205_v52  ;;  %v3426_v32 = vadd.f32 %v903_v59, %v3423_v51  ;;  %v3443_v25 = vadd.f32 %v1145_v40, %v3423_v51 }
 0x8fc   :  { %v927_v33 = vsel %vm333_vm3, %v3426_v32, -inf  ;;  %v1169_v52 = vsel %vm333_vm3, %v3443_v25, -inf }
 0x901   :  { %2315 = vmatmul.msk.f32.gmra.mxu1 %vm333_vm3, %v2522_v53 }
 0x902   :  { %1212 = vadd.xlane.f32.xlu2 %v1211_v36 }
 0x90a   :  { %1215 = vadd.xlane.f32.xlu2 %v1214_v55 }
 0x915   :  { %1209 = vadd.xlane.f32.xlu0 %v1208_v63 }
 0x917   :  { %973 = vadd.xlane.f32.xlu1 %v972_v0 }
 0x91d   :  { %1173 = vmax.xlane.f32.xlu0 %v1172_v46 }
 0x922   :  { %1761 = vrot.lane.b32.xlu2 %v3285_v43, %s2667_s0 }
 0x925   :  { %931 = vmax.xlane.f32.xlu0 %v930_v16 }
 0x92b   :  { %v3435_v29 = vpop.f32.mrf.mxu1  ;;  %v3437_v31 = vpop.f32.mrf.mxu3 }
 0x930   :  { %1765 = vrot.lane.b32.xlu1 %v3412_v12, %s2667_s0 }
 0x933   :  { %v3445_v8 = vpop.f32.mrf.mxu1  ;;  %v3447_v50 = vpop.f32.mrf.mxu3 }
 0x938   :  { %1759 = vrot.lane.b32.xlu1 %v3282_v4, %s2667_s0 }
 0x93e   :  { %v1270_v55 = vpop.f32.mrf.mxu3 }
 0x93f   :  { %v971_v45 = vpop.xlane.xlu0 %970 }
 0x946   :  { %v1273_v62 = vpop.f32.mrf.mxu3 }
 0x94b   :  { %928 = vmax.xlane.f32.xlu2 %v927_v33 }
 0x94f   :  { %v1774_v57 = vpop.permute.xlu1 %1773 }
 0x950   :  { %2374 = vmatpush.xpose.msk.msra.mxu2 %vm464_vm12, %v1774_v57 }
 0x953   :  { %1200 = vadd.xlane.f32.xlu2 %v1199_v27 }
 0x955   :  { %v1768_v53 = vpop.permute.xlu0 %1767 }
 0x957   :  { %v1772_v39 = vpop.permute.xlu1 %1771 }
 0x958   :  { %2375 = vmatpush.xpose.msk.msra.mxu2 %vm464_vm12, %v1772_v39 }
 0x95b   :  { %961 = vadd.xlane.f32.xlu2 %v960_v42 }
 0x95d   :  { %v965_v19 = vpop.xlane.xlu2 %964 }
 0x95e   :  { %2523 = vrcp.f32 %v965_v19 }
 0x95f   :  { %v1770_v41 = vpop.permute.xlu1 %1769 }
 0x960   :  { %2376 = vmatpush.xpose.msk.msra.mxu2 %vm464_vm12, %v1770_v41 }
 0x962   :  { %1170 = vmax.xlane.f32.xlu1 %v1169_v52  ;;  %v1276_v52 = vpop.f32.mrf.mxu3 }
 0x964   :  { %2377 = vmatpush.xpose.msk.msra.mxu2 %vm464_vm12, %v1768_v53  ;;  %v2524_v63 = vpop.eup %2523 }
 0x965   :  { %v968_v58 = vpop.xlane.xlu2 %967 }
 0x966   :  { %v1028_v36 = vpop.f32.mrf.mxu1 }
 0x967   :  { %v1056_v0 = vmul.f32 %v2524_v63, %v1028_v36  ;;  %v1764_v63 = vpop.permute.xlu0 %1763 }
 0x969   :  { %v1314_v33 = vmul.f32 0.5, %v1056_v0 }
 0x96d   :  { %v1207_v40 = vpop.xlane.xlu2 %1206 }
 0x96e   :  { %2525 = vrcp.f32 %v1207_v40  ;;  %v1031_v59 = vpop.f32.mrf.mxu1 }
 0x96f   :  { %2527 = vrcp.f32 %v971_v45 }
 0x974   :  { %v2526_v46 = vpop.eup %2525 }
 0x975   :  { %v1298_v60 = vmul.f32 %v2526_v46, %v1270_v55  ;;  %v1213_v16 = vpop.xlane.xlu2 %1212  ;;  %v2528_v42 = vpop.eup %2527 }
 0x976   :  { %2529 = vrcp.f32 %v1213_v16  ;;  %v1034_v27 = vpop.f32.mrf.mxu1 }
 0x977   :  { %v1306_v57 = vmul.f32 0.5, %v1298_v60  ;;  %v1058_v41 = vmul.f32 %v2528_v42, %v1034_v27  ;;  %2531 = vrcp.f32 %v968_v58 }
 0x979   :  { %v1322_v39 = vadd.f32 %v1314_v33, %v1306_v57  ;;  %v1316_v36 = vmul.f32 0.5, %v1058_v41 }
 0x97b   :  { %2342 = vmatmul.msk.f32.vlgmr.msra.gmra.mxu0 %vm464_vm12, %v1322_v39 }
 0x97c   :  { %v2530_v19 = vpop.eup %2529  ;;  %2087 = vmatpush.msra.mxu0 %v1391_v14  ;;  %v1279_v14 = vpop.f32.mrf.mxu3 }
 0x97d   :  { %v1300_v53 = vmul.f32 %v2530_v19, %v1276_v52  ;;  %v1216_v55 = vpop.xlane.xlu2 %1215  ;;  %v2532_v60 = vpop.eup %2531 }
 0x97e   :  { %2088 = vmatpush.msra.mxu0 %v1390_v21  ;;  %2533 = vrcp.f32 %v1216_v55  ;;  %v1057_v33 = vmul.f32 %v2532_v60, %v1031_v59  ;;  %v1037_v41 = vpop.f32.mrf.mxu1 }
 0x97f   :  { %v1308_v40 = vmul.f32 0.5, %v1300_v53 }
 0x980   :  { %v1315_v19 = vmul.f32 0.5, %v1057_v33 }
 0x981   :  { %v1324_v45 = vadd.f32 %v1316_v36, %v1308_v40 }
 0x983   :  { %2346 = vmatmul.msk.f32.vlgmr.msrb.gmra.mxu2 %vm464_vm12, %v1324_v45 }
 0x984   :  { %v2534_v16 = vpop.eup %2533 }
 0x985   :  { %v1301_v39 = vmul.f32 %v2534_v16, %v1279_v14  ;;  %v1762_v16 = vpop.permute.xlu2 %1761 }
 0x987   :  { %v1309_v58 = vmul.f32 0.5, %v1301_v39 }
 0x988   :  { %v1210_v0 = vpop.xlane.xlu0 %1209 }
 0x989   :  { %2535 = vrcp.f32 %v1210_v0 }
 0x98a   :  { %v974_v46 = vpop.xlane.xlu1 %973 }
 0x98b   :  { %2537 = vrcp.f32 %v974_v46 }
 0x98f   :  { %v2536_v57 = vpop.eup %2535 }
 0x990   :  { %v1174_v27 = vpop.xlane.xlu0 %1173  ;;  %v1299_v21 = vmul.f32 %v2536_v57, %v1273_v62 }
 0x991   :  { %v2538_v42 = vpop.eup %2537 }
 0x992   :  { %v1307_v52 = vmul.f32 0.5, %v1299_v21  ;;  %v1059_v53 = vmul.f32 %v2538_v42, %v1037_v41 }
 0x994   :  { %v1323_v40 = vadd.f32 %v1315_v19, %v1307_v52  ;;  %v1317_v36 = vmul.f32 0.5, %v1059_v53 }
 0x996   :  { %2343 = vmatmul.msk.f32.gmra.mxu0 %vm464_vm12, %v1323_v40  ;;  %v1325_v45 = vadd.f32 %v1317_v36, %v1309_v58  ;;  %v3549_v40 = vld [vmem:[%s3809_s3 + $0x98] sm:$0xff]  ;;  %v3559_v36 = vld [vmem:[%s3809_s3 + $0x90] sm:$0xff] }
 0x997   :  { %1445 = vmatpush.msrb.mxu3 %v3549_v40 }
 0x998   :  { %v932_v55 = vpop.xlane.xlu0 %931  ;;  %2347 = vmatmul.msk.f32.gmra.mxu2 %vm464_vm12, %v1325_v45 }
 0x999   :  { %v940_v59 = vsub.f32 %v3400_v9, %v932_v55  ;;  %v1202_v9 = vsel %vm333_vm3, %v3325_v48, 0.0  ;;  %1446 = vmatpush.msrb.mxu3 %v3559_v36 }
 0x99b   :  { %v955_v0 = vmul.f32 1.442695, %v940_v59 }
 0x99d   :  { %2539 = vpow2.f32 %v955_v0 }
 0x99e   :  { %2358 = vmatmul.msk.f32.vlgmr.msrb.gmra.mxu0 %vm464_vm12, %v3282_v4 }
 0x9a2   :  { %v1766_v62 = vpop.permute.xlu1 %1765 }
 0x9a3   :  { %v2540_v46 = vpop.eup %2539  ;;  %2378 = vmatpush.xpose.msk.msra.mxu2 %vm464_vm12, %v1766_v62 }
 0x9a4   :  { %v978_v60 = vsel %vm333_vm3, %v2540_v46, 0.0 }
 0x9a5   :  { %979 = vadd.xlane.f32.xlu1 %v978_v60 }
 0x9a6   :  { %2359 = vmatmul.msk.f32.gmra.mxu0 %vm464_vm12, %v3285_v43 }
 0x9a7   :  { %2379 = vmatpush.xpose.msk.msra.mxu2 %vm464_vm12, %v1764_v63 }
 0x9aa   :  { %v1760_v4 = vpop.permute.xlu1 %1759 }
 0x9ab   :  { %2380 = vmatpush.xpose.msk.msra.mxu2 %vm464_vm12, %v1762_v16 }
 0x9ad   :  { %1203 = vadd.xlane.f32.xlu1 %v1202_v9 }
 0x9ae   :  { %2360 = vmatmul.msk.f32.gmra.mxu0 %vm464_vm12, %v3371_v2  ;;  %v1182_v2 = vsub.f32 %v3395_v5, %v1174_v27 }
 0x9af   :  { %2381 = vmatpush.xpose.msk.msra.mxu2 %vm464_vm12, %v1760_v4 }
 0x9b2   :  { %2382 = vmatmul.msk.f32.vlgmr.msra.gmra.mxu2 %vm464_vm12, %v2994_v3 }
 0x9b6   :  { %2361 = vmatmul.msk.f32.gmra.mxu0 %vm464_vm12, %v3412_v12 }
 0x9ba   :  { %2383 = vmatmul.msk.f32.gmra.mxu2 %vm464_vm12, %v2985_v1 }
 0x9be   :  { %2362 = vmatmul.msk.f32.gmra.mxu0 %vm464_vm12, %v3363_v35  ;;  %v929_v43 = vpop.xlane.xlu2 %928  ;;  %v1197_v35 = vmul.f32 1.442695, %v1182_v2 }
 0x9bf   :  { %v939_v48 = vsub.f32 %v3426_v32, %v929_v43  ;;  %v3512_v32 = vadd.f32 %v3430_v34, %v3064_v22 }
 0x9c1   :  { %v953_v63 = vmul.f32 1.442695, %v939_v48 }
 0x9c2   :  { %2384 = vmatmul.msk.f32.gmra.mxu2 %vm464_vm12, %v3058_v20  ;;  %v957_v20 = vsel %vm333_vm3, %v3315_v47, 0.0 }
 0x9c3   :  { %2541 = vpow2.f32 %v953_v63 }
 0x9c4   :  { %2543 = vpow2.f32 %v1197_v35 }
 0x9c6   :  { %2363 = vmatmul.msk.f32.gmra.mxu0 %vm464_vm12, %v3375_v24  ;;  %v1201_v19 = vpop.xlane.xlu2 %1200 }
 0x9c9   :  { %v2542_v3 = vpop.eup %2541 }
 0x9ca   :  { %2316 = vmatmul.msk.f32.gmra.mxu1 %vm333_vm3, %v2542_v3  ;;  %2385 = vmatmul.msk.f32.gmra.mxu2 %vm464_vm12, %v3056_v18  ;;  %v975_v1 = vsel %vm333_vm3, %v2542_v3, 0.0  ;;  %v2544_v5 = vpop.eup %2543 }
 0x9cb   :  { %976 = vadd.xlane.f32.xlu0 %v975_v1 }
 0x9ce   :  { %2364 = vmatmul.msk.f32.gmra.mxu0 %vm464_vm12, %v3355_v23  ;;  %v1220_v23 = vsel %vm333_vm3, %v2544_v5, 0.0  ;;  %v962_v62 = vpop.xlane.xlu2 %961 }
 0x9d2   :  { %2317 = vmatmul.msk.f32.gmra.mxu1 %vm333_vm3, %v2540_v46  ;;  %2386 = vmatmul.msk.f32.gmra.mxu2 %vm464_vm12, %v3048_v17 }
 0x9d3   :  { %958 = vadd.xlane.f32.xlu0 %v957_v20 }
 0x9d5   :  { %v1171_v24 = vpop.xlane.xlu1 %1170 }
 0x9d6   :  { %v1181_v18 = vsub.f32 %v3443_v25, %v1171_v24  ;;  %2365 = vmatmul.msk.f32.gmra.mxu0 %vm464_vm12, %v3357_v6  ;;  %v3508_v6 = vadd.f32 %v3418_v15, %v3064_v22 }
 0x9d8   :  { %v1195_v12 = vmul.f32 1.442695, %v1181_v18 }
 0x9da   :  { %2545 = vpow2.f32 %v1195_v12  ;;  %2387 = vmatmul.msk.f32.gmra.mxu2 %vm464_vm12, %v3038_v13  ;;  %v2453_v13 = vpack.i.bf16 %v3508_v6, %v3512_v32 }
 0x9db   :  { %1221 = vadd.xlane.f32.xlu0 %v1220_v23  ;;  %2547 = vrcp.f32 %v1201_v19 }
 0x9e0   :  { %v2546_v17 = vpop.eup %2545 }
 0x9e1   :  { %2340 = vmatmul.msk.f32.gmra.mxu3 %vm333_vm3, %v2546_v17  ;;  %v1217_v47 = vsel %vm333_vm3, %v2546_v17, 0.0  ;;  %v2548_v60 = vpop.eup %2547 }
 0x9e2   :  { %1218 = vadd.xlane.f32.xlu1 %v1217_v47  ;;  %2388 = vmatmul.msk.f32.gmra.mxu2 %vm464_vm12, %v3034_v11  ;;  %v1296_v9 = vmul.f32 %v2548_v60, %v3437_v31 }
 0x9e4   :  { %v1304_v1 = vmul.f32 0.5, %v1296_v9 }
 0x9e9   :  { %2341 = vmatmul.msk.f32.gmra.mxu3 %vm333_vm3, %v2544_v5 }
 0x9ea   :  { %2389 = vmatmul.msk.f32.gmra.mxu2 %vm464_vm12, %v3018_v7 }
 0x9ef   :  { %2454 = vrot.lane.b32.xlu0 %v2453_v13, %s2664_s15  ;;  %s2669_s15 = smov [#allocation2]  }
 0x9f8   :  { %v3521_v11 = vpop.f32.mrf.mxu0 }
 0x9fb   :  { %2459 = vrot.lane.b32.xlu1 %v2453_v13, %s2665_s16  ;;  %s2241_s16 = sshll.u32 %s2669_s15, 4  ;;  %s2242_s16 = int_to_ptr.vmem [resolvable:$true] %s2241_s16 }
 0xa06   :  { %v3530_v7 = vpop.f32.mrf.mxu2 }
 0xa13   :  { %v3523_v15 = vpop.f32.mrf.mxu0 }
 0xa18   :  { %v3541_v42 = vpop.xlane.xlu1 %979 }
 0xa1b   :  { %v1582_v25 = vpop.f32.mrf.mxu0  ;;  %v3532_v33 = vpop.f32.mrf.mxu2 }
 0xa1c   :  { %v3526_v22 = vadd.f32 %v1582_v25, %v3194_v10 }
 0xa1e   :  { %v1606_v34 = vsel %vm333_vm3, %v3526_v22, -inf }
 0xa1f   :  { %1607 = vmax.xlane.f32.xlu0 %v1606_v34 }
 0xa20   :  { %v1204_v55 = vpop.xlane.xlu1 %1203 }
 0xa23   :  { %v3534_v57 = vpop.f32.mrf.mxu0 }
 0xa2b   :  { %v1588_v21 = vpop.f32.mrf.mxu0 }
 0xa2c   :  { %v3569_v4 = vadd.f32 %v1588_v21, %v3224_v38 }
 0xa2e   :  { %v1612_v20 = vsel %vm333_vm3, %v3569_v4, -inf }
 0xa33   :  { %v3554_v58 = vpop.f32.mrf.mxu0 }
 0xa35   :  { %v1808_v14 = vpop.f32.mrf.mxu2 }
 0xa36   :  { %v3537_v27 = vadd.f32 %v1808_v14, %v3194_v10 }
 0xa38   :  { %v1832_v39 = vsel %vm333_vm3, %v3537_v27, -inf }
 0xa39   :  { %1833 = vmax.xlane.f32.xlu2 %v1832_v39 }
 0xa3b   :  { %v1594_v16 = vpop.f32.mrf.mxu0 }
 0xa3c   :  { %v3582_v18 = vadd.f32 %v1594_v16, %v3251_v49 }
 0xa3d   :  { %v1811_v41 = vpop.f32.mrf.mxu2 }
 0xa3e   :  { %v3544_v52 = vadd.f32 %v1811_v41, %v3209_v26  ;;  %v977_v53 = vpop.xlane.xlu0 %976 }
 0xa40   :  { %v1835_v10 = vsel %vm333_vm3, %v3544_v52, -inf }
 0xa41   :  { %1836 = vmax.xlane.f32.xlu1 %v1835_v10 }
 0xa43   :  { %v1597_v12 = vpop.f32.mrf.mxu0 }
 0xa45   :  { %v1814_v45 = vpop.f32.mrf.mxu2 }
 0xa46   :  { %v3563_v59 = vadd.f32 %v1814_v45, %v3224_v38  ;;  %v959_v0 = vpop.xlane.xlu0 %958 }
 0xa47   :  { %2549 = vrcp.f32 %v959_v0 }
 0xa48   :  { %v1838_v46 = vsel %vm333_vm3, %v3563_v59, -inf  ;;  %2551 = vrcp.f32 %v1204_v55 }
 0xa49   :  { %1839 = vmax.xlane.f32.xlu0 %v1838_v46  ;;  %2553 = vrcp.f32 %v962_v62 }
 0xa4a   :  { %2555 = vrcp.f32 %v977_v53 }
 0xa4b   :  { %v1600_v21 = vpop.f32.mrf.mxu0 }
 0xa4d   :  { %v2550_v43 = vpop.eup %2549  ;;  %v1817_v48 = vpop.f32.mrf.mxu2 }
 0xa4e   :  { %v1054_v63 = vmul.f32 %v2550_v43, %v3435_v29  ;;  %v3573_v3 = vadd.f32 %v1817_v48, %v3234_v44  ;;  %v2552_v2 = vpop.eup %2551  ;;  %v1222_v34 = vpop.xlane.xlu0 %1221 }
 0xa4f   :  { %v2554_v31 = vpop.eup %2553  ;;  %v1297_v29 = vmul.f32 %v2552_v2, %v3447_v50 }
 0xa50   :  { %v1312_v35 = vmul.f32 0.5, %v1054_v63  ;;  %v1841_v24 = vsel %vm333_vm3, %v3573_v3, -inf  ;;  %v1055_v5 = vmul.f32 %v2554_v31, %v3445_v8  ;;  %v2556_v19 = vpop.eup %2555 }
 0xa51   :  { %1613 = vmax.xlane.f32.xlu0 %v1612_v20  ;;  %1842 = vmax.xlane.f32.xlu1 %v1841_v24  ;;  %v1305_v47 = vmul.f32 0.5, %v1297_v29 }
 0xa52   :  { %v1320_v38 = vadd.f32 %v1312_v35, %v1304_v1  ;;  %2464 = vrot.lane.b32.xlu2 %v2453_v13, %s2666_s4  ;;  %v1618_v13 = vsel %vm333_vm3, %v3582_v18, -inf  ;;  %v1313_v25 = vmul.f32 0.5, %v1055_v5  ;;  %s2243_s4 = sshll.u32 %s3812_s6, 4  ;;  %s2244_s4 = int_to_ptr.hbm [resolvable:$true] %s2243_s4 }
 0xa53   :  { %v1603_v63 = vpop.f32.mrf.mxu0 }
 0xa54   :  { %2344 = vmatmul.msk.f32.vlgmr.msrb.gmra.mxu1 %vm464_vm12, %v1320_v38  ;;  %v1321_v8 = vadd.f32 %v1313_v25, %v1305_v47  ;;  %v3609_v20 = vadd.f32 %v1603_v63, %v3391_v61 }
 0xa55   :  { %v1820_v23 = vpop.f32.mrf.mxu2  ;;  %2029 = vmatpush.msrb.mxu1 %v3125_v54  ;;  %v1219_v14 = vpop.xlane.xlu1 %1218  ;;  %v3596_v54 = vadd.f32 %v1597_v12, %v3266_v30 }
 0xa56   :  { %v3588_v17 = vadd.f32 %v1820_v23, %v3251_v49  ;;  %2557 = vrcp.f32 %v1219_v14  ;;  %v1627_v25 = vsel %vm333_vm3, %v3609_v20, -inf  ;;  %v3627_v14 = vadd.f32 %v3554_v58, %v3234_v44 }
 0xa57   :  { %2030 = vmatpush.msrb.mxu1 %v3132_v56  ;;  %v1040_v56 = vpop.f32.mrf.mxu1  ;;  %v1621_v39 = vsel %vm333_vm3, %v3596_v54, -inf  ;;  %2559 = vrcp.f32 %v3541_v42 }
 0xa58   :  { %v1844_v50 = vsel %vm333_vm3, %v3588_v17, -inf  ;;  %v1060_v45 = vmul.f32 %v2556_v19, %v1040_v56  ;;  %2561 = vrcp.f32 %v1222_v34  ;;  %v1615_v56 = vsel %vm333_vm3, %v3627_v14, -inf }
 0xa59   :  { %1845 = vmax.xlane.f32.xlu0 %v1844_v50  ;;  %1619 = vmax.xlane.f32.xlu1 %v1618_v13 }
 0xa5a   :  { %v1318_v16 = vmul.f32 0.5, %v1060_v45 }
 0xa5c   :  { %2345 = vmatmul.msk.f32.gmra.mxu1 %vm464_vm12, %v1321_v8  ;;  %v2558_v55 = vpop.eup %2557 }
 0xa5d   :  { %v1823_v49 = vpop.f32.mrf.mxu2  ;;  %v2560_v42 = vpop.eup %2559 }
 0xa5e   :  { %v2562_v35 = vpop.eup %2561 }
 0xa5f   :  { %v1043_v43 = vpop.f32.mrf.mxu1 }
 0xa60   :  { %v1061_v1 = vmul.f32 %v2560_v42, %v1043_v43 }
 0xa61   :  { %v2455_v41 = vpop.permute.xlu0 %2454  ;;  %1622 = vmax.xlane.f32.xlu0 %v1621_v39  ;;  %v3632_v39 = vadd.f32 %v1823_v49, %v3266_v30 }
 0xa62   :  { %v2456_v10 = vunpack.i.l.bf16 %v2455_v41  ;;  %v2457_v53 = vunpack.i.h.bf16 %v2455_v41  ;;  %v1319_v23 = vmul.f32 0.5, %v1061_v1 }
 0xa63   :  { %v1847_v41 = vsel %vm333_vm3, %v3632_v39, -inf }
 0xa64   :  { %v1282_v0 = vpop.f32.mrf.mxu3  ;;  %1936 = vmatpush.msra.mxu3 %v2456_v10 }
 0xa65   :  { %v1302_v62 = vmul.f32 %v2558_v55, %v1282_v0  ;;  %v1826_v46 = vpop.f32.mrf.mxu2 }
 0xa66   :  { %v3603_v60 = vadd.f32 %v1826_v46, %v3423_v51  ;;  %1937 = vmatpush.msra.mxu3 %v2457_v53 }
 0xa67   :  { %v1310_v9 = vmul.f32 0.5, %v1302_v62 }
 0xa68   :  { %v1850_v48 = vsel %vm333_vm3, %v3603_v60, -inf }
 0xa69   :  { %v1326_v2 = vadd.f32 %v1318_v16, %v1310_v9  ;;  %1851 = vmax.xlane.f32.xlu1 %v1850_v48 }
 0xa6b   :  { %2348 = vmatmul.msk.f32.vlgmr.msrb.gmra.mxu3 %vm464_vm12, %v1326_v2 }
 0xa6c   :  { %v1285_v24 = vpop.f32.mrf.mxu3 }
 0xa6d   :  { %v1303_v31 = vmul.f32 %v2562_v35, %v1285_v24  ;;  %v2460_v38 = vpop.permute.xlu1 %2459  ;;  %v1829_v29 = vpop.f32.mrf.mxu2 }
 0xa6e   :  { %v2461_v5 = vunpack.i.l.bf16 %v2460_v38  ;;  %v3612_v12 = vadd.f32 %v1829_v29, %v3391_v61  ;;  %v2462_v50 = vunpack.i.h.bf16 %v2460_v38  ;;  %v3621_v61 = vadd.f32 %v3534_v57, %v3209_v26 }
 0xa6f   :  { %v1311_v47 = vmul.f32 0.5, %v1303_v31  ;;  %v3637_v26 = vadd.f32 %v1600_v21, %v3423_v51 }
 0xa70   :  { %1938 = vmatpush.msra.mxu3 %v2461_v5  ;;  %v1853_v13 = vsel %vm333_vm3, %v3612_v12, -inf  ;;  %v1609_v8 = vsel %vm333_vm3, %v3621_v61, -inf }
 0xa71   :  { %v1327_v34 = vadd.f32 %v1319_v23, %v1311_v47  ;;  %1854 = vmax.xlane.f32.xlu0 %v1853_v13  ;;  %1628 = vmax.xlane.f32.xlu1 %v1627_v25  ;;  %v1624_v19 = vsel %vm333_vm3, %v3637_v26, -inf }
 0xa72   :  { %1939 = vmatpush.msra.mxu3 %v2462_v50 }
 0xa73   :  { %2349 = vmatmul.msk.f32.gmra.mxu3 %vm464_vm12, %v1327_v34 }
 0xa7b   :  { %1610 = vmax.xlane.f32.xlu2 %v1609_v8 }
 0xa83   :  { %1616 = vmax.xlane.f32.xlu2 %v1615_v56 }
 0xa8b   :  { %1848 = vmax.xlane.f32.xlu2 %v1847_v41 }
 0xa92   :  { %v1608_v57 = vpop.xlane.xlu0 %1607 }
 0xa93   :  { %v1630_v44 = vsub.f32 %v3526_v22, %v1608_v57  ;;  %1625 = vmax.xlane.f32.xlu2 %v1624_v19 }
 0xa95   :  { %v1638_v58 = vmul.f32 1.442695, %v1630_v44 }
 0xa97   :  { %2563 = vpow2.f32 %v1638_v58 }
 0xa9d   :  { %v2564_v10 = vpop.eup %2563 }
 0xa9e   :  { %2366 = vmatmul.msk.f32.vlgmr.msra.gmra.mxu1 %vm333_vm3, %v2564_v10  ;;  %v1654_v30 = vsel %vm333_vm3, %v2564_v10, 0.0 }
 0xa9f   :  { %1655 = vadd.xlane.f32.xlu1 %v1654_v30  ;;  %2118 = vmatpush.msra.mxu1 %v3549_v40 }
 0xaa1   :  { %2119 = vmatpush.msra.mxu1 %v3559_v36 }
 0xaac   :  { %v1834_v51 = vpop.xlane.xlu2 %1833 }
 0xaad   :  { %v1856_v49 = vsub.f32 %v3537_v27, %v1834_v51 }
 0xaaf   :  { %v1864_v21 = vmul.f32 1.442695, %v1856_v49 }
 0xab1   :  { %2565 = vpow2.f32 %v1864_v21 }
 0xab4   :  { %v1837_v45 = vpop.xlane.xlu1 %1836  ;;  %v2465_v55 = vpop.permute.xlu2 %2464 }
 0xab5   :  { %v1857_v22 = vsub.f32 %v3544_v52, %v1837_v45  ;;  %v2466_v53 = vunpack.i.l.bf16 %v2465_v55  ;;  %v2467_v62 = vunpack.i.h.bf16 %v2465_v55 }
 0xab7   :  { %v1866_v0 = vmul.f32 1.442695, %v1857_v22  ;;  %1940 = vmatpush.msra.mxu3 %v2466_v53  ;;  %v3649_v46 = vpop.eup %2565 }
 0xab9   :  { %2567 = vpow2.f32 %v1866_v0  ;;  %1941 = vmatpush.msra.mxu3 %v2467_v62 }
 0xabb   :  { %1942 = vmatpush.msra.mxu3 %v3512_v32 }
 0xabc   :  { %v1840_v40 = vpop.xlane.xlu0 %1839 }
 0xabd   :  { %1943 = vmatpush.msra.mxu3 %v3508_v6  ;;  %v1858_v52 = vsub.f32 %v3563_v59, %v1840_v40 }
 0xabe   :  { %2390 = vmatmul.msk.f32.vlgmr.msra.gmra.mxu3 %vm333_vm3, %v3649_v46 }
 0xabf   :  { %v2568_v27 = vpop.eup %2567  ;;  %2058 = vmatpush.msrb.mxu3 %v3313_v28  ;;  %v1868_v16 = vmul.f32 1.442695, %v1858_v52 }
 0xac0   :  { %v1883_v36 = vsel %vm333_vm3, %v2568_v27, 0.0 }
 0xac1   :  { %1884 = vadd.xlane.f32.xlu1 %v1883_v36  ;;  %2059 = vmatpush.msrb.mxu3 %v3323_v37  ;;  %2569 = vpow2.f32 %v1868_v16 }
 0xac4   :  { %v1614_v32 = vpop.xlane.xlu0 %1613  ;;  %v1843_v9 = vpop.xlane.xlu1 %1842 }
 0xac5   :  { %v1859_v43 = vsub.f32 %v3573_v3, %v1843_v9 }
 0xac6   :  { %2391 = vmatmul.msk.f32.gmra.mxu3 %vm333_vm3, %v2568_v27 }
 0xac7   :  { %v1870_v6 = vmul.f32 1.442695, %v1859_v43  ;;  %v3660_v63 = vpop.eup %2569 }
 0xac8   :  { %v1886_v40 = vsel %vm333_vm3, %v3660_v63, 0.0 }
 0xac9   :  { %2571 = vpow2.f32 %v1870_v6 }
 0xacc   :  { %v1846_v48 = vpop.xlane.xlu0 %1845  ;;  %v1620_v42 = vpop.xlane.xlu1 %1619 }
 0xacd   :  { %v1860_v28 = vsub.f32 %v3588_v17, %v1846_v48  ;;  %v1634_v49 = vsub.f32 %v3582_v18, %v1620_v42  ;;  %v1880_v18 = vsel %vm333_vm3, %v3649_v46, 0.0 }
 0xace   :  { %2392 = vmatmul.msk.f32.gmra.mxu3 %vm333_vm3, %v3660_v63 }
 0xacf   :  { %v2572_v59 = vpop.eup %2571  ;;  %v1872_v2 = vmul.f32 1.442695, %v1860_v28  ;;  %v1646_v55 = vmul.f32 1.442695, %v1634_v49 }
 0xad0   :  { %v1889_v37 = vsel %vm333_vm3, %v2572_v59, 0.0 }
 0xad1   :  { %1890 = vadd.xlane.f32.xlu1 %v1889_v37  ;;  %2573 = vpow2.f32 %v1872_v2  ;;  %v1384_v38 = vpop.f32.mrf.mxu1 }
 0xad2   :  { %v1385_v47 = vadd.f32 %v1384_v38, %v3521_v11 }
 0xad4   :  { %v1421_v50 = vadd.f32 %v3530_v7, %v1385_v47  ;;  %v1623_v30 = vpop.xlane.xlu0 %1622 }
 0xad5   :  { %v1635_v53 = vsub.f32 %v3596_v54, %v1623_v30 }
 0xad6   :  { %2393 = vmatmul.msk.f32.gmra.mxu3 %vm333_vm3, %v2572_v59 }
 0xad7   :  { %v3667_v1 = vpop.eup %2573  ;;  %v1648_v54 = vmul.f32 1.442695, %v1635_v53 }
 0xad9   :  { %v1387_v48 = vpop.f32.mrf.mxu1 }
 0xada   :  { %v1388_v63 = vadd.f32 %v1387_v48, %v3523_v15 }
 0xadc   :  { %v1852_v3 = vpop.xlane.xlu1 %1851  ;;  %v1422_v2 = vadd.f32 %v3532_v33, %v1388_v63 }
 0xadd   :  { %v1862_v35 = vsub.f32 %v3603_v60, %v1852_v3 }
 0xade   :  { %2394 = vmatmul.msk.f32.gmra.mxu3 %vm333_vm3, %v3667_v1 }
 0xadf   :  { %v1876_v24 = vmul.f32 1.442695, %v1862_v35 }
 0xae1   :  { %2575 = vpow2.f32 %v1876_v24 }
 0xae4   :  { %v1629_v17 = vpop.xlane.xlu1 %1628  ;;  %v1855_v0 = vpop.xlane.xlu0 %1854 }
 0xae5   :  { %v1637_v31 = vsub.f32 %v3609_v20, %v1629_v17  ;;  %v1632_v20 = vsub.f32 %v3569_v4, %v1614_v32  ;;  %v1863_v27 = vsub.f32 %v3612_v12, %v1855_v0 }
 0xae7   :  { %v2576_v29 = vpop.eup %2575  ;;  %v1652_v5 = vmul.f32 1.442695, %v1637_v31  ;;  %v1642_v11 = vmul.f32 1.442695, %v1632_v20  ;;  %v1878_v16 = vmul.f32 1.442695, %v1863_v27 }
 0xae8   :  { %v1898_v23 = vsel %vm333_vm3, %v2576_v29, 0.0 }
 0xae9   :  { %1899 = vadd.xlane.f32.xlu1 %v1898_v23  ;;  %2577 = vpow2.f32 %v1652_v5 }
 0xaee   :  { %v1611_v60 = vpop.xlane.xlu2 %1610  ;;  %v1448_v13 = vpop.f32.mrf.mxu3 }
 0xaef   :  { %v1631_v25 = vsub.f32 %v3621_v61, %v1611_v60  ;;  %v3677_v34 = vadd.f32 %v1448_v13, %v1421_v50  ;;  %v3679_v8 = vpop.eup %2577 }
 0xaf0   :  { %v1675_v41 = vsel %vm333_vm3, %v3679_v8, 0.0 }
 0xaf1   :  { %v1640_v56 = vmul.f32 1.442695, %v1631_v25  ;;  %1676 = vadd.xlane.f32.xlu1 %v1675_v41 }
 0xaf3   :  { %2579 = vpow2.f32 %v1640_v56 }
 0xaf4   :  { %2581 = vpow2.f32 %v1642_v11 }
 0xaf6   :  { %v1617_v57 = vpop.xlane.xlu2 %1616  ;;  %v1451_v37 = vpop.f32.mrf.mxu3 }
 0xaf7   :  { %v1633_v7 = vsub.f32 %v3627_v14, %v1617_v57  ;;  %v3715_v42 = vadd.f32 %v1451_v37, %v1422_v2 }
 0xaf9   :  { %v2580_v19 = vpop.eup %2579  ;;  %v1644_v44 = vmul.f32 1.442695, %v1633_v7  ;;  %v1461_v3 = vsel %vm333_vm3, %v3715_v42, 0.0 }
 0xafa   :  { %2367 = vmatmul.msk.f32.gmra.mxu1 %vm333_vm3, %v2580_v19  ;;  %v1657_v61 = vsel %vm333_vm3, %v2580_v19, 0.0  ;;  %v2582_v58 = vpop.eup %2581 }
 0xafb   :  { %2583 = vpow2.f32 %v1644_v44  ;;  %1658 = vadd.xlane.f32.xlu2 %v1657_v61  ;;  %v1660_v14 = vsel %vm333_vm3, %v2582_v58, 0.0 }
 0xafe   :  { %v1849_v4 = vpop.xlane.xlu2 %1848 }
 0xaff   :  { %v1861_v10 = vsub.f32 %v3632_v39, %v1849_v4 }
 0xb01   :  { %v2584_v51 = vpop.eup %2583  ;;  %v1874_v21 = vmul.f32 1.442695, %v1861_v10 }
 0xb02   :  { %2368 = vmatmul.msk.f32.gmra.mxu1 %vm333_vm3, %v2582_v58  ;;  %v1663_v45 = vsel %vm333_vm3, %v2584_v51, 0.0 }
 0xb03   :  { %2585 = vpow2.f32 %v1874_v21  ;;  %1661 = vadd.xlane.f32.xlu2 %v1660_v14  ;;  %1664 = vadd.xlane.f32.xlu0 %v1663_v45 }
 0xb04   :  { %2587 = vpow2.f32 %v1646_v55 }
 0xb05   :  { %2589 = vpow2.f32 %v1648_v54 }
 0xb06   :  { %v1626_v22 = vpop.xlane.xlu2 %1625 }
 0xb07   :  { %v1636_v62 = vsub.f32 %v3637_v26, %v1626_v22  ;;  %v1892_v26 = vsel %vm333_vm3, %v3667_v1, 0.0 }
 0xb09   :  { %v2586_v39 = vpop.eup %2585  ;;  %v1650_v52 = vmul.f32 1.442695, %v1636_v62 }
 0xb0a   :  { %2369 = vmatmul.msk.f32.gmra.mxu1 %vm333_vm3, %v2584_v51  ;;  %2395 = vmatmul.msk.f32.gmra.mxu3 %vm333_vm3, %v2586_v39  ;;  %v2588_v36 = vpop.eup %2587  ;;  %v1895_v59 = vsel %vm333_vm3, %v2586_v39, 0.0 }
 0xb0b   :  { %1881 = vadd.xlane.f32.xlu2 %v1880_v18  ;;  %1887 = vadd.xlane.f32.xlu0 %v1886_v40  ;;  %2591 = vpow2.f32 %v1650_v52  ;;  %v1666_v46 = vsel %vm333_vm3, %v2588_v36, 0.0  ;;  %v2590_v12 = vpop.eup %2589 }
 0xb0c   :  { %2593 = vpow2.f32 %v1878_v16  ;;  %v1669_v43 = vsel %vm333_vm3, %v2590_v12, 0.0 }
 0xb11   :  { %v2592_v32 = vpop.eup %2591 }
 0xb12   :  { %2370 = vmatmul.msk.f32.gmra.mxu1 %vm333_vm3, %v2588_v36  ;;  %2396 = vmatmul.msk.f32.gmra.mxu3 %vm333_vm3, %v2576_v29  ;;  %v2594_v9 = vpop.eup %2593  ;;  %v1672_v6 = vsel %vm333_vm3, %v2592_v32, 0.0  ;;  %v1656_v17 = vpop.xlane.xlu1 %1655 }
 0xb13   :  { %1893 = vadd.xlane.f32.xlu2 %v1892_v26  ;;  %1667 = vadd.xlane.f32.xlu0 %v1666_v46  ;;  %v1901_v28 = vsel %vm333_vm3, %v2594_v9, 0.0 }
 0xb1a   :  { %2371 = vmatmul.msk.f32.gmra.mxu1 %vm333_vm3, %v2590_v12  ;;  %2397 = vmatmul.msk.f32.gmra.mxu3 %vm333_vm3, %v2594_v9 }
 0xb1b   :  { %1670 = vadd.xlane.f32.xlu2 %v1669_v43  ;;  %1673 = vadd.xlane.f32.xlu0 %v1672_v6  ;;  %v1719_v24 = vpop.f32.mrf.mxu1 }
 0xb22   :  { %2372 = vmatmul.msk.f32.gmra.mxu1 %vm333_vm3, %v2592_v32 }
 0xb23   :  { %1902 = vadd.xlane.f32.xlu2 %v1901_v28  ;;  %1896 = vadd.xlane.f32.xlu0 %v1895_v59 }
 0xb2a   :  { %2373 = vmatmul.msk.f32.gmra.mxu1 %vm333_vm3, %v3679_v8 }
 0xb2b   :  { %1462 = vadd.xlane.f32.xlu2 %v1461_v3 }
 0xb34   :  { %v1885_v23 = vpop.xlane.xlu1 %1884 }
 0xb41   :  { %v1945_v15 = vpop.f32.mrf.mxu3 }
 0xb44   :  { %v1891_v13 = vpop.xlane.xlu1 %1890 }
 0xb49   :  { %v1948_v1 = vpop.f32.mrf.mxu3 }
 0xb51   :  { %v1951_v31 = vpop.f32.mrf.mxu3 }
 0xb59   :  { %v1954_v33 = vpop.f32.mrf.mxu3 }
 0xb5c   :  { %v1900_v63 = vpop.xlane.xlu1 %1899 }
 0xb61   :  { %v1957_v44 = vpop.f32.mrf.mxu3 }
 0xb6e   :  { %v1659_v35 = vpop.xlane.xlu2 %1658 }
 0xb76   :  { %v1665_v38 = vpop.xlane.xlu0 %1664  ;;  %v1662_v29 = vpop.xlane.xlu2 %1661 }
 0xb77   :  { %v1722_v5 = vpop.f32.mrf.mxu1  ;;  %2595 = vrcp.f32 %v1662_v29 }
 0xb78   :  { %2597 = vrcp.f32 %v1656_v17 }
 0xb7d   :  { %v2596_v25 = vpop.eup %2595 }
 0xb7e   :  { %v1888_v47 = vpop.xlane.xlu0 %1887  ;;  %v1882_v50 = vpop.xlane.xlu2 %1881 }
 0xb7f   :  { %2599 = vrcp.f32 %v1888_v47  ;;  %v1725_v60 = vpop.f32.mrf.mxu1  ;;  %v2598_v8 = vpop.eup %2597 }
 0xb80   :  { %2601 = vrcp.f32 %v1882_v50  ;;  %v1753_v20 = vmul.f32 %v2596_v25, %v1725_v60  ;;  %v1751_v41 = vmul.f32 %v2598_v8, %v1719_v24 }
 0xb81   :  { %2603 = vrcp.f32 %v1665_v38 }
 0xb82   :  { %2605 = vrcp.f32 %v1659_v35  ;;  %v1995_v10 = vmul.f32 0.5, %v1753_v20  ;;  %v1993_v51 = vmul.f32 0.5, %v1751_v41 }
 0xb83   :  { %2607 = vrcp.f32 %v1891_v13 }
 0xb84   :  { %2609 = vrcp.f32 %v1885_v23 }
 0xb85   :  { %v2600_v56 = vpop.eup %2599 }
 0xb86   :  { %v2602_v11 = vpop.eup %2601  ;;  %v1979_v57 = vmul.f32 %v2600_v56, %v1951_v31  ;;  %v1668_v7 = vpop.xlane.xlu0 %1667 }
 0xb87   :  { %v1894_v19 = vpop.xlane.xlu2 %1893  ;;  %v1977_v61 = vmul.f32 %v2602_v11, %v1945_v15  ;;  %v1728_v4 = vpop.f32.mrf.mxu1 }
 0xb88   :  { %v1987_v58 = vmul.f32 0.5, %v1979_v57  ;;  %2611 = vrcp.f32 %v1894_v19  ;;  %v2604_v30 = vpop.eup %2603  ;;  %v1677_v31 = vpop.xlane.xlu1 %1676 }
 0xb89   :  { %v1985_v49 = vmul.f32 0.5, %v1977_v61  ;;  %2613 = vrcp.f32 %v1668_v7  ;;  %v2606_v21 = vpop.eup %2605  ;;  %v1754_v45 = vmul.f32 %v2604_v30, %v1728_v4 }
 0xb8a   :  { %v2003_v14 = vadd.f32 %v1995_v10, %v1987_v58  ;;  %v2608_v55 = vpop.eup %2607  ;;  %v1752_v22 = vmul.f32 %v2606_v21, %v1722_v5  ;;  %v2668_v58 = vmov 64.0  }
 0xb8b   :  { %v2001_v53 = vadd.f32 %v1993_v51, %v1985_v49  ;;  %v2610_v0 = vpop.eup %2609  ;;  %v1980_v39 = vmul.f32 %v2608_v55, %v1954_v33  ;;  %v1996_v40 = vmul.f32 0.5, %v1754_v45 }
 0xb8c   :  { %2398 = vmatmul.msk.f32.vlgmr.msrb.gmra.mxu1 %vm464_vm12, %v2003_v14  ;;  %v1978_v62 = vmul.f32 %v2610_v0, %v1948_v1  ;;  %v1994_v52 = vmul.f32 0.5, %v1752_v22 }
 0xb8d   :  { %2400 = vmatmul.msk.f32.vlgmr.msrb.gmra.mxu3 %vm464_vm12, %v2001_v53  ;;  %v1960_v36 = vpop.f32.mrf.mxu3  ;;  %v1988_v46 = vmul.f32 0.5, %v1980_v39 }
 0xb8e   :  { %v2612_v18 = vpop.eup %2611  ;;  %v1674_v27 = vpop.xlane.xlu0 %1673  ;;  %v1986_v9 = vmul.f32 0.5, %v1978_v62 }
 0xb8f   :  { %v2614_v54 = vpop.eup %2613  ;;  %v1731_v16 = vpop.f32.mrf.mxu1  ;;  %v1981_v26 = vmul.f32 %v2612_v18, %v1957_v44  ;;  %v2004_v43 = vadd.f32 %v1996_v40, %v1988_v46 }
 0xb90   :  { %v1671_v12 = vpop.xlane.xlu2 %1670  ;;  %v1755_v32 = vmul.f32 %v2614_v54, %v1731_v16  ;;  %v2002_v28 = vadd.f32 %v1994_v52, %v1986_v9  ;;  %v1458_v9 = vsel %vm333_vm3, %v3677_v34, 0.0 }
 0xb91   :  { %v1989_v6 = vmul.f32 0.5, %v1981_v26  ;;  %2615 = vrcp.f32 %v1671_v12 }
 0xb92   :  { %v1997_v48 = vmul.f32 0.5, %v1755_v32  ;;  %2617 = vrcp.f32 %v1900_v63 }
 0xb94   :  { %v2005_v59 = vadd.f32 %v1997_v48, %v1989_v6  ;;  %2399 = vmatmul.msk.f32.gmra.mxu1 %vm464_vm12, %v2004_v43 }
 0xb95   :  { %2401 = vmatmul.msk.f32.gmra.mxu3 %vm464_vm12, %v2002_v28  ;;  %v1963_v3 = vpop.f32.mrf.mxu3 }
 0xb96   :  { %v1897_v37 = vpop.xlane.xlu0 %1896  ;;  %2402 = vmatmul.msk.f32.vlgmr.msra.gmra.mxu0 %vm464_vm12, %v2005_v59 }
 0xb97   :  { %2619 = vrcp.f32 %v1897_v37  ;;  %v1734_v2 = vpop.f32.mrf.mxu1  ;;  %v2616_v1 = vpop.eup %2615 }
 0xb98   :  { %2621 = vrcp.f32 %v1674_v27  ;;  %v1903_v15 = vpop.xlane.xlu2 %1902  ;;  %v2618_v35 = vpop.eup %2617  ;;  %v1756_v24 = vmul.f32 %v2616_v1, %v1734_v2 }
 0xb99   :  { %2623 = vrcp.f32 %v1903_v15  ;;  %v1983_v38 = vmul.f32 %v2618_v35, %v1963_v3 }
 0xb9a   :  { %v1998_v47 = vmul.f32 0.5, %v1756_v24  ;;  %2625 = vrcp.f32 %v1677_v31 }
 0xb9b   :  { %v1991_v60 = vmul.f32 0.5, %v1983_v38  ;;  %2627 = vrcp.f32 %v2668_v58 }
 0xb9d   :  { %v2620_v17 = vpop.eup %2619  ;;  %v1966_v20 = vpop.f32.mrf.mxu3 }
 0xb9e   :  { %v1982_v29 = vmul.f32 %v2620_v17, %v1960_v36  ;;  %v2622_v5 = vpop.eup %2621 }
 0xb9f   :  { %v1737_v23 = vpop.f32.mrf.mxu1  ;;  %v2624_v8 = vpop.eup %2623 }
 0xba0   :  { %v1990_v33 = vmul.f32 0.5, %v1982_v29  ;;  %v1757_v50 = vmul.f32 %v2622_v5, %v1737_v23  ;;  %v1984_v41 = vmul.f32 %v2624_v8, %v1966_v20  ;;  %v2626_v11 = vpop.eup %2625  ;;  %v1463_v46 = vpop.xlane.xlu2 %1462 }
 0xba1   :  { %v2628_v51 = vpop.eup %2627 }
 0xba2   :  { %v2006_v13 = vadd.f32 %v1998_v47, %v1990_v33  ;;  %v1999_v25 = vmul.f32 0.5, %v1757_v50  ;;  %v1992_v19 = vmul.f32 0.5, %v1984_v41  ;;  %v1465_v49 = vmul.f32 64.0, %v2628_v51 }
 0xba3   :  { %vm1469_vm14 = vweird.f32 %v2628_v51 }
 0xba4   :  { %v2007_v56 = vadd.f32 %v1999_v25, %v1991_v60  ;;  %2403 = vmatmul.msk.f32.gmra.mxu0 %vm464_vm12, %v2006_v13  ;;  %v1466_v55 = vsub.f32 1.0, %v1465_v49 }
 0xba6   :  { %2404 = vmatmul.msk.f32.vlgmr.msra.gmra.mxu1 %vm464_vm12, %v2007_v56  ;;  %v1467_v62 = vmul.f32 %v2628_v51, %v1466_v55 }
 0xba7   :  { %v1740_v57 = vpop.f32.mrf.mxu1 }
 0xba8   :  { %v1758_v7 = vmul.f32 %v2626_v11, %v1740_v57  ;;  %v1468_v54 = vadd.f32 %v2628_v51, %v1467_v62  ;;  %v2208_v57 = vld [vmem:[%s3811_s5 + $0x38] sm:$0xff]  ;;  %v2202_v62 = vld [vmem:[%s3811_s5 + $0x8] sm:$0xff] }
 0xba9   :  { %2222 = vmatpush.msra.mxu3 %v2208_v57 }
 0xbaa   :  { %v2000_v44 = vmul.f32 0.5, %v1758_v7  ;;  %v1470_v26 = vsel %vm1469_vm14, %v2628_v51, %v1468_v54  ;;  %v2207_v7 = vld [vmem:[%s3811_s5 + $0x30] sm:$0xff]  ;;  %v2201_v54 = vld [vmem:[%s3811_s5] sm:$0xff] }
 0xbab   :  { %v1472_v12 = vmul.f32 %v1470_v26, %v1463_v46  ;;  %2223 = vmatpush.msra.mxu3 %v2207_v7 }
 0xbac   :  { %v2008_v61 = vadd.f32 %v2000_v44, %v1992_v19 }
 0xbad   :  { %v3732_v32 = vsub.f32 %v3715_v42, %v1472_v12 }
 0xbae   :  { %2405 = vmatmul.msk.f32.gmra.mxu1 %vm464_vm12, %v2008_v61 }
 0xbaf   :  { %v1476_v43 = vmul.f32 %v3732_v32, %v3732_v32 }
 0xbb1   :  { %v1480_v6 = vsel %vm333_vm3, %v1476_v43, 0.0 }
 0xc09   :  { %v2032_v4 = vpop.f32.mrf.mxu1 }
 0xc10   :  { %v2061_v10 = vpop.f32.mrf.mxu3 }
 0xc11   :  { %v2035_v30 = vpop.f32.mrf.mxu1  ;;  %v2062_v14 = vadd.f32 %v2061_v10, %v2032_v4  ;;  %v2206_v4 = vld [vmem:[%s3811_s5 + $0x28] sm:$0xff] }
 0xc12   :  { %2224 = vmatpush.msra.mxu3 %v2206_v4 }
 0xc13   :  { %v2090_v21 = vpop.f32.mrf.mxu0 }
 0xc14   :  { %v2096_v45 = vadd.f32 %v2090_v21, %v2062_v14 }
 0xc18   :  { %v2064_v0 = vpop.f32.mrf.mxu3 }
 0xc19   :  { %v2065_v40 = vadd.f32 %v2064_v0, %v2035_v30  ;;  %v2205_v30 = vld [vmem:[%s3811_s5 + $0x20] sm:$0xff] }
 0xc1a   :  { %2225 = vmatpush.msra.mxu3 %v2205_v30 }
 0xc21   :  { %v2093_v18 = vpop.f32.mrf.mxu0 }
 0xc22   :  { %v2097_v27 = vadd.f32 %v2093_v18, %v2065_v40 }
 0xc23   :  { %v2121_v22 = vpop.f32.mrf.mxu1 }
 0xc24   :  { %v2127_v53 = vadd.f32 %v2121_v22, %v2096_v45  ;;  %v2204_v45 = vld [vmem:[%s3811_s5 + $0x18] sm:$0xff] }
 0xc25   :  { %2226 = vmatpush.msra.mxu3 %v2204_v45 }
 0xc26   :  { %v2129_v39 = vsel %vm333_vm3, %v2127_v53, 0.0 }
 0xc27   :  { %2130 = vadd.xlane.f32.xlu1 %v2129_v39 }
 0xc2b   :  { %v2124_v52 = vpop.f32.mrf.mxu1 }
 0xc2c   :  { %v2128_v36 = vadd.f32 %v2124_v52, %v2097_v27 }
 0xc2e   :  { %v2132_v16 = vsel %vm333_vm3, %v2128_v36, 0.0 }
 0xc2f   :  { %2133 = vadd.xlane.f32.xlu0 %v2132_v16 }
 0xc37   :  { %1459 = vadd.xlane.f32.xlu0 %v1458_v9 }
 0xc3f   :  { %1481 = vadd.xlane.f32.xlu0 %v1480_v6  ;;  %v2478_v6 = vld [vmem:[%s3809_s3 + $0xa1] ss:$0 sm:$0xff] }
 0xc9a   :  { %v2131_v48 = vpop.xlane.xlu1 %2130 }
 0xc9b   :  { %v2135_v63 = vmul.f32 %v2131_v48, %v1470_v26 }
 0xc9d   :  { %v3739_v28 = vsub.f32 %v2127_v53, %v2135_v63  ;;  %v2203_v53 = vld [vmem:[%s3811_s5 + $0x10] sm:$0xff] }
 0xc9e   :  { %2227 = vmatpush.msra.mxu3 %v2203_v53 }
 0xc9f   :  { %v2139_v59 = vmul.f32 %v3739_v28, %v3739_v28 }
 0xca0   :  { %2228 = vmatpush.msra.mxu3 %v2202_v62 }
 0xca1   :  { %v2141_v42 = vsel %vm333_vm3, %v2139_v59, 0.0  ;;  %v2479_v59 = vld [vmem:[%s3809_s3 + $0xa2] ss:$0 sm:$0xff] }
 0xca2   :  { %v2134_v37 = vpop.xlane.xlu0 %2133  ;;  %2142 = vadd.xlane.f32.xlu2 %v2141_v42  ;;  %2229 = vmatpush.msra.mxu3 %v2201_v54 }
 0xca3   :  { %v2136_v2 = vmul.f32 %v2134_v37, %v1470_v26 }
 0xca5   :  { %v3744_v3 = vsub.f32 %v2128_v36, %v2136_v2 }
 0xca7   :  { %v2140_v15 = vmul.f32 %v3744_v3, %v3744_v3 }
 0xca9   :  { %v2144_v1 = vsel %vm333_vm3, %v2140_v15, 0.0 }
 0xcaa   :  { %2145 = vadd.xlane.f32.xlu1 %v2144_v1  ;;  %v1460_v35 = vpop.xlane.xlu0 %1459 }
 0xcab   :  { %v1471_v24 = vmul.f32 %v1470_v26, %v1460_v35 }
 0xcad   :  { %v3750_v17 = vsub.f32 %v3677_v34, %v1471_v24 }
 0xcaf   :  { %v1475_v31 = vmul.f32 %v3750_v17, %v3750_v17 }
 0xcb1   :  { %v1477_v38 = vsel %vm333_vm3, %v1475_v31, 0.0 }
 0xcb2   :  { %1478 = vadd.xlane.f32.xlu1 %v1477_v38  ;;  %v1482_v29 = vpop.xlane.xlu0 %1481 }
 0xcb3   :  { %v1484_v5 = vmul.f32 %v1482_v29, %v1470_v26  ;;  %v2177_v29 = vld [vmem:[%s3808_s2 + $0xe3] sm:$0x3] }
 0xcb5   :  { %v1486_v23 = vadd.f32 1e-05, %v1484_v5 }
 0xcb7   :  { %2629 = vrsqrt.f32 %v1486_v23  ;;  %vm1503_vm5 = vweird.f32 %v1486_v23 }
 0xcbd   :  { %v2630_v60 = vpop.eup %2629 }
 0xcbe   :  { %v1498_v13 = vmul.f32 %v2630_v60, %v1486_v23  ;;  %vm1504_vm0 = vweird.f32 %v2630_v60  ;;  %v2480_v23 = vld [vmem:[%s3811_s5 + $0x40] ss:$0 sm:$0xff] }
 0xcbf   :  { %vm1505_vm7 = vmor %vm1503_vm5, %vm1504_vm0 }
 0xcc0   :  { %v1499_v56 = vmul.f32 %v2630_v60, %v1498_v13 }
 0xcc2   :  { %v1500_v19 = vmul.f32 0.5, %v1499_v56 }
 0xcc4   :  { %v1501_v21 = vsub.f32 1.5, %v1500_v19 }
 0xcc6   :  { %v1502_v0 = vmul.f32 %v2630_v60, %v1501_v21 }
 0xcc8   :  { %v1506_v36 = vsel %vm1505_vm7, %v2630_v60, %v1502_v0 }
 0xcc9   :  { %v1508_v48 = vmul.f32 %v1506_v36, %v3732_v32 }
 0xccb   :  { %v1511_v15 = vmul.f32 %v2478_v6, %v1508_v48 }
 0xccd   :  { %v1514_v24 = vadd.f32 %v2479_v59, %v1511_v15 }
 0xd15   :  { %v2143_v33 = vpop.xlane.xlu2 %2142 }
 0xd16   :  { %v2147_v47 = vmul.f32 %v2143_v33, %v1470_v26 }
 0xd18   :  { %v2149_v50 = vadd.f32 1e-05, %v2147_v47 }
 0xd1a   :  { %2631 = vrsqrt.f32 %v2149_v50  ;;  %vm2157_vm2 = vweird.f32 %v2149_v50 }
 0xd1d   :  { %v2146_v25 = vpop.xlane.xlu1 %2145 }
 0xd1e   :  { %v2148_v8 = vmul.f32 %v2146_v25, %v1470_v26 }
 0xd20   :  { %v2632_v34 = vpop.eup %2631  ;;  %v2150_v20 = vadd.f32 1e-05, %v2148_v8 }
 0xd21   :  { %v2152_v41 = vmul.f32 %v2632_v34, %v2149_v50  ;;  %vm2158_vm15 = vweird.f32 %v2632_v34 }
 0xd22   :  { %2633 = vrsqrt.f32 %v2150_v20  ;;  %vm3776_vm4 = vmor %vm2157_vm2, %vm2158_vm15  ;;  %vm2167_vm8 = vweird.f32 %v2150_v20 }
 0xd23   :  { %v2153_v11 = vmul.f32 %v2632_v34, %v2152_v41 }
 0xd25   :  { %v2154_v44 = vmul.f32 0.5, %v2153_v11  ;;  %v1479_v61 = vpop.xlane.xlu1 %1478 }
 0xd26   :  { %v1483_v58 = vmul.f32 %v1479_v61, %v1470_v26 }
 0xd27   :  { %v2155_v10 = vsub.f32 1.5, %v2154_v44 }
 0xd28   :  { %v2634_v51 = vpop.eup %2633  ;;  %v1485_v49 = vadd.f32 1e-05, %v1483_v58 }
 0xd29   :  { %v2162_v14 = vmul.f32 %v2634_v51, %v2150_v20  ;;  %v2156_v55 = vmul.f32 %v2632_v34, %v2155_v10  ;;  %vm2168_vm6 = vweird.f32 %v2634_v51 }
 0xd2a   :  { %2635 = vrsqrt.f32 %v1485_v49  ;;  %vm2169_vm9 = vmor %vm2167_vm8, %vm2168_vm6  ;;  %vm1493_vm11 = vweird.f32 %v1485_v49 }
 0xd2b   :  { %v2163_v22 = vmul.f32 %v2634_v51, %v2162_v14  ;;  %v2160_v40 = vsel %vm3776_vm4, %v2632_v34, %v2156_v55 }
 0xd2c   :  { %v2171_v46 = vmul.f32 %v2160_v40, %v3739_v28 }
 0xd2d   :  { %v2164_v39 = vmul.f32 0.5, %v2163_v22 }
 0xd2e   :  { %v2173_v37 = vmul.f32 %v2478_v6, %v2171_v46 }
 0xd2f   :  { %v2165_v27 = vsub.f32 1.5, %v2164_v39 }
 0xd30   :  { %v2636_v52 = vpop.eup %2635 }
 0xd31   :  { %v2166_v16 = vmul.f32 %v2634_v51, %v2165_v27  ;;  %v1488_v26 = vmul.f32 %v2636_v52, %v1485_v49  ;;  %vm1494_vm10 = vweird.f32 %v2636_v52 }
 0xd32   :  { %vm1495_vm12 = vmor %vm1493_vm11, %vm1494_vm10 }
 0xd33   :  { %v2170_v12 = vsel %vm2169_vm9, %v2634_v51, %v2166_v16  ;;  %v1489_v9 = vmul.f32 %v2636_v52, %v1488_v26 }
 0xd34   :  { %v2172_v43 = vmul.f32 %v2170_v12, %v3744_v3  ;;  %v2175_v3 = vadd.f32 %v2479_v59, %v2173_v37 }
 0xd35   :  { %v1490_v63 = vmul.f32 0.5, %v1489_v9 }
 0xd36   :  { %v2174_v42 = vmul.f32 %v2478_v6, %v2172_v43 }
 0xd37   :  { %v1491_v2 = vsub.f32 1.5, %v1490_v63 }
 0xd38   :  { %v2176_v28 = vadd.f32 %v2479_v59, %v2174_v42 }
 0xd39   :  { %v1492_v1 = vmul.f32 %v2636_v52, %v1491_v2 }
 0xd3a   :  { %2193 = vmatpush.msrb.mxu2 %v2176_v28 }
 0xd3b   :  { %v1496_v35 = vsel %vm1495_vm12, %v2636_v52, %v1492_v1 }
 0xd3c   :  { %2194 = vmatpush.msrb.mxu2 %v2175_v3  ;;  %v1507_v32 = vmul.f32 %v1496_v35, %v3750_v17 }
 0xd3e   :  { %2195 = vmatpush.msrb.mxu2 %v1514_v24  ;;  %v1510_v31 = vmul.f32 %v2478_v6, %v1507_v32 }
 0xd40   :  { %v1513_v38 = vadd.f32 %v2479_v59, %v1510_v31 }
 0xd42   :  { %2196 = vmatpush.msrb.mxu2 %v1513_v38 }
 0xd43   :  { %2406 = vmatmul.msk.f32.vlgmr.msrb.gmra.mxu2 %vm86_vm1, %v2177_v29 }
 0xdc6   :  { %v2198_v5 = vpop.f32.mrf.mxu2 }
 0xdc7   :  { %2407 = vmatmul.msk.f32.vlgmr.msra.gmra.mxu3 %vm333_vm3, %v2198_v5 }
 0xe4a   :  { %v2231_v17 = vpop.f32.mrf.mxu3 }
 0xe4b   :  { %v2232_v33 = vadd.f32 %v2480_v23, %v2231_v17 }
 0xe4d   :  { %2235 = vst.msk [vmem:[#allocation2] sm:$0x3] %vm2234_vm13, %v2232_v33 }
 0xe4e   :  { %2246 = dma.vmem_to_hbm [thread:$0]  %s2242_s16, 32, %s2244_s4, [#allocation3]  }
 0xe4f   :  { %2661 = dma.done.wait [#allocation3], 32  }
 0xe50   :  { %2662 = vsyncadd [#allocation3], 4294967264 }
 0xe51   :  { %2251 = vsyncpa [#allocation3], 1 }

</bundles_post_ra>
